<compile_context>
chip_gen: v7x
topology: tpu7x:2x2x1
jax: 0.10.0
libtpu: 0.0.40
codegen_flags: <defaults>
</compile_context>

<pallas_src>
import functools

import jax
import jax.numpy as jnp
from jax.experimental import pallas as pl
from jax.experimental.pallas import tpu as pltpu

_VMEM_LIMIT = 64 * 1024 * 1024  # fits v5e/v6e (128 MiB) and v7x (64 MiB)


# --------------------------------------------------------------------------
# BatchNorm folding (inference mode) and weight preparation.
# --------------------------------------------------------------------------
def fold_bn(gamma, beta, mean, var, eps=1e-5):
    scale = gamma / jnp.sqrt(var + eps)
    bias = beta - mean * scale
    return scale, bias


def _fold_weights3x3(w_oihw, scale):
    """OIHW 3x3 weights -> (9, Cin, Cout) bf16 with the BN scale folded in."""
    cout, cin = w_oihw.shape[0], w_oihw.shape[1]
    w = jnp.transpose(w_oihw, (2, 3, 1, 0)).reshape(9, cin, cout)
    return (w * scale.reshape(1, 1, cout)).astype(jnp.bfloat16)


# --------------------------------------------------------------------------
# Kernel 1 (stride 1): conv3x3 + BN1 + ReLU, result written straight into the
# zero-padded flat layout the second conv reads (shift by wi+1; garbage wide
# columns are zeroed via the mask and land exactly on the pad columns).
# --------------------------------------------------------------------------
def _make_conv1_s1_kernel(offsets, lo, wi):
    n_taps = len(offsets)

    def kernel(a_ref, w_ref, b_ref, m_ref, o_ref):
        a = a_ref[0]                                          # (La1, Cin) bf16
        acc = jnp.dot(a[offsets[0]:offsets[0] + lo, :], w_ref[0],
                      preferred_element_type=jnp.float32)
        for t in range(1, n_taps):
            off = offsets[t]
            acc = acc + jnp.dot(a[off:off + lo, :], w_ref[t],
                                preferred_element_type=jnp.float32)
        y = jnp.maximum(acc + b_ref[...], 0.0)                # (lo, Cout) f32
        # zero the 2 garbage wide columns -> they become conv2's zero padding
        y = (y * m_ref[...]).astype(o_ref.dtype)
        cout = y.shape[1]
        la2 = o_ref.shape[1]
        head = wi + 1                                         # top pad row + left pad col
        o_ref[0, pl.ds(0, head), :] = jnp.zeros((head, cout), o_ref.dtype)
        o_ref[0, pl.ds(head, lo), :] = y                      # shifted data write
        tail = la2 - head - lo                                # right pad col + bottom rows
        o_ref[0, pl.ds(head + lo, tail), :] = jnp.zeros((tail, cout), o_ref.dtype)

    return kernel


# --------------------------------------------------------------------------
# Kernel 1 (stride 2): conv3x3 (stride-1 taps) + BN1 + ReLU, then in-kernel
# row/column sub-sampling, written straight into conv2's padded flat layout.
# --------------------------------------------------------------------------
def _make_conv1_s2_kernel(offsets, lo, wi, ho, wo, wi2):
    n_taps = len(offsets)

    def kernel(a_ref, w_ref, b_ref, o_ref):
        a = a_ref[0]
        acc = jnp.dot(a[offsets[0]:offsets[0] + lo, :], w_ref[0],
                      preferred_element_type=jnp.float32)
        for t in range(1, n_taps):
            off = offsets[t]
            acc = acc + jnp.dot(a[off:off + lo, :], w_ref[t],
                                preferred_element_type=jnp.float32)
        # TODO(synk): space-to-depth rewrite; the full-resolution conv is still
        # computed here (only the writeback is quarter-sized).
        y = jnp.maximum(acc + b_ref[...], 0.0).astype(o_ref.dtype)
        cout = y.shape[1]
        la2 = o_ref.shape[1]
        # 0/1 matrix selecting the even columns of a wide row (via the MXU,
        # avoids strided/relayout-heavy slicing).
        ci = jax.lax.broadcasted_iota(jnp.int32, (wo, 2 * wo), 0)
        cj = jax.lax.broadcasted_iota(jnp.int32, (wo, 2 * wo), 1)
        sel = (cj == 2 * ci).astype(o_ref.dtype)
        o_ref[0] = jnp.zeros((la2, cout), o_ref.dtype)        # pad rows/cols
        for g in range(ho):                                   # static unroll (<= 28)
            seg = y[2 * g * wi:2 * g * wi + 2 * wo, :]        # wide row 2g, cols [0, 2wo)
            row = jnp.dot(sel, seg, preferred_element_type=jnp.float32)
            o_ref[0, pl.ds((g + 1) * wi2 + 1, wo), :] = row.astype(o_ref.dtype)

    return kernel


# --------------------------------------------------------------------------
# Kernel 2: conv3x3 + BN2 + (1x1-conv projection | identity residual) + add
# + ReLU, one image per grid step, bf16 output.
# --------------------------------------------------------------------------
def _make_conv2_kernel(offsets, lo, has_shortcut, has_residual, sc_offset):
    n_taps = len(offsets)

    def kernel(*refs):
        a_ref, w_ref, b_ref = refs[0], refs[1], refs[2]
        idx = 3
        if has_shortcut:
            xs_ref, ws_ref = refs[idx], refs[idx + 1]
            idx += 2
        if has_residual:
            res_ref = refs[idx]
            idx += 1
        o_ref = refs[idx]

        a = a_ref[0]                                          # (La2, Cmid) bf16
        acc = jnp.dot(a[offsets[0]:offsets[0] + lo, :], w_ref[0],
                      preferred_element_type=jnp.float32)
        for t in range(1, n_taps):
            off = offsets[t]
            acc = acc + jnp.dot(a[off:off + lo, :], w_ref[t],
                                preferred_element_type=jnp.float32)
        if has_shortcut:                                      # fused 1x1 projection
            xs = xs_ref[0][sc_offset:sc_offset + lo, :]
            acc = acc + jnp.dot(xs, ws_ref[...],
                                preferred_element_type=jnp.float32)
        y = acc + b_ref[...]                                  # folded BN bias(es)
        if has_residual:                                      # identity shortcut
            y = y + res_ref[0][sc_offset:sc_offset + lo, :].astype(jnp.float32)
        y = jnp.maximum(y, 0.0)
        o_ref[0] = y.astype(o_ref.dtype)

    return kernel


# --------------------------------------------------------------------------
# ResBlock forward (BatchNorm evaluated in inference mode).
# --------------------------------------------------------------------------
@functools.partial(jax.jit, static_argnums=2)
def resblock_forward(x_nchw, params, stride):
    x = jnp.transpose(x_nchw, (0, 2, 3, 1))                  # NCHW -> NHWC
    N, H, W, Cin = x.shape
    Cout = params["w1"].shape[0]
    if stride != 1:
        assert H % stride == 0 and W % stride == 0, "stride-2 path assumes even H, W"
    Ho, Wo = H // stride, W // stride

    s1, b1 = fold_bn(params["bn1_gamma"], params["bn1_beta"],
                     params["bn1_mean"], params["bn1_var"])
    s2, b2 = fold_bn(params["bn2_gamma"], params["bn2_beta"],
                     params["bn2_mean"], params["bn2_var"])

    Wi1 = W + 2                       # wide row width of conv1's padded input
    La1 = (H + 3) * Wi1               # pad: 1 top + 2 bottom rows, 1 + 1 cols
    Lo1 = H * Wi1
    Wi2 = Wo + 2                      # wide row width of conv2's padded input
    La2 = (Ho + 3) * Wi2
    Lo2 = Ho * Wi2

    # --- the ONLY wrapper-side pass over the input activations -------------
    xf = jnp.pad(x, ((0, 0), (1, 2), (1, 1), (0, 0)))
    xf = xf.reshape(N, La1, Cin).astype(jnp.bfloat16)

    # --- kernel 1: conv1(3x3, stride) + BN1 + ReLU --------------------------
    w1 = _fold_weights3x3(params["w1"], s1)
    b1v = b1.reshape(1, Cout).astype(jnp.float32)
    offs1 = tuple(kh * Wi1 + kw for kh in range(3) for kw in range(3))

    in_specs1 = [pl.BlockSpec((1, La1, Cin), lambda n: (n, 0, 0)),
                 pl.BlockSpec((9, Cin, Cout), lambda n: (0, 0, 0)),
                 pl.BlockSpec((1, Cout), lambda n: (0, 0))]
    if stride == 1:
        # (Lo1, 1) {0,1} mask zeroing the garbage wide columns.
        mask = (jnp.arange(Lo1, dtype=jnp.int32) % Wi1 < W)
        mask = mask.astype(jnp.float32).reshape(Lo1, 1)
        in_specs1.append(pl.BlockSpec((Lo1, 1), lambda n: (0, 0)))
        args1 = (xf, w1, b1v, mask)
        k1 = _make_conv1_s1_kernel(offs1, Lo1, Wi1)
    else:
        args1 = (xf, w1, b1v)
        k1 = _make_conv1_s2_kernel(offs1, Lo1, Wi1, Ho, Wo, Wi2)

    act2 = pl.pallas_call(
        k1,
        out_shape=jax.ShapeDtypeStruct((N, La2, Cout), jnp.bfloat16),
        grid_spec=pltpu.PrefetchScalarGridSpec(
            num_scalar_prefetch=0,
            grid=(N,),
            in_specs=in_specs1,
            out_specs=pl.BlockSpec((1, La2, Cout), lambda n: (n, 0, 0)),
        ),
        compiler_params=pltpu.CompilerParams(
            dimension_semantics=("parallel",),
            vmem_limit_bytes=_VMEM_LIMIT),
    )(*args1)

    # --- kernel 2: conv2(3x3) + BN2 + shortcut/residual + add + ReLU --------
    w2 = _fold_weights3x3(params["w2"], s2)
    offs2 = tuple(kh * Wi2 + kw for kh in range(3) for kw in range(3))
    projection = (stride != 1) or (Cin != Cout)

    in_specs2 = [pl.BlockSpec((1, La2, Cout), lambda n: (n, 0, 0)),
                 pl.BlockSpec((9, Cout, Cout), lambda n: (0, 0, 0)),
                 pl.BlockSpec((1, Cout), lambda n: (0, 0))]
    if projection:
        ss, bs = fold_bn(params["bns_gamma"], params["bns_beta"],
                         params["bns_mean"], params["bns_var"])
        ws = (params["ws"].reshape(Cout, Cin).T * ss.reshape(1, Cout))
        ws = ws.astype(jnp.bfloat16)
        b2v = (b2 + bs).reshape(1, Cout).astype(jnp.float32)
        if stride == 1:
            # shortcut input read from the SAME padded bf16 layout conv1 uses.
            xs, sc_off, xs_rows = xf, Wi1 + 1, La1
        else:
            # TODO(synk): read the strided rows in-kernel from xf instead of
            # this (quarter-sized) wrapper-side sub-sample.
            xs = x[:, ::stride, ::stride, :]
            xs = jnp.pad(xs, ((0, 0), (0, 0), (0, Wi2 - Wo), (0, 0)))
            xs = xs.reshape(N, Lo2, Cin).astype(jnp.bfloat16)
            sc_off, xs_rows = 0, Lo2
        in_specs2 += [pl.BlockSpec((1, xs_rows, Cin), lambda n: (n, 0, 0)),
                      pl.BlockSpec((Cin, Cout), lambda n: (0, 0))]
        extra_args = [xs, ws]
        k2 = _make_conv2_kernel(offs2, Lo2, True, False, sc_off)
    else:
        b2v = b2.reshape(1, Cout).astype(jnp.float32)
        # identity residual read straight from conv1's padded input layout.
        in_specs2.append(pl.BlockSpec((1, La1, Cin), lambda n: (n, 0, 0)))
        extra_args = [xf]
        k2 = _make_conv2_kernel(offs2, Lo2, False, True, Wi1 + 1)

    out = pl.pallas_call(
        k2,
        out_shape=jax.ShapeDtypeStruct((N, Lo2, Cout), jnp.bfloat16),
        grid_spec=pltpu.PrefetchScalarGridSpec(
            num_scalar_prefetch=0,
            grid=(N,),
            in_specs=in_specs2,
            out_specs=pl.BlockSpec((1, Lo2, Cout), lambda n: (n, 0, 0)),
        ),
        compiler_params=pltpu.CompilerParams(
            dimension_semantics=("parallel",),
            vmem_limit_bytes=_VMEM_LIMIT),
    )(act2, w2, b2v, *extra_args)

    # drop the wide garbage columns, NHWC -> NCHW (module interface), f32.
    out = out.reshape(N, Ho, Wi2, Cout)[:, :, :Wo, :]
    return jnp.transpose(out, (0, 3, 1, 2)).astype(jnp.float32)


# --------------------------------------------------------------------------
# Pure-JAX reference (lax conv) for correctness checking.
# --------------------------------------------------------------------------
def ref_resblock(x_nchw, params, stride, eps=1e-5):
    x = jnp.transpose(x_nchw, (0, 2, 3, 1))

    def conv(x, w_oihw, s, pad):
        w = jnp.transpose(w_oihw, (2, 3, 1, 0))               # OIHW -> HWIO
        return jax.lax.conv_general_dilated(
            x, w, (s, s), ((pad, pad), (pad, pad)),
            dimension_numbers=("NHWC", "HWIO", "NHWC"))

    def bn(x, g, b, m, v):
        return (x - m) / jnp.sqrt(v + eps) * g + b

    Cout = params["w1"].shape[0]
    out = jnp.maximum(bn(conv(x, params["w1"], stride, 1),
                         params["bn1_gamma"], params["bn1_beta"],
                         params["bn1_mean"], params["bn1_var"]), 0.0)
    out = bn(conv(out, params["w2"], 1, 1),
             params["bn2_gamma"], params["bn2_beta"],
             params["bn2_mean"], params["bn2_var"])
    if stride != 1 or x.shape[-1] != Cout:
        sc = bn(conv(x, params["ws"], stride, 0),
                params["bns_gamma"], params["bns_beta"],
                params["bns_mean"], params["bns_var"])
    else:
        sc = x
    out = jnp.maximum(out + sc, 0.0)
    return jnp.transpose(out, (0, 3, 1, 2))


# --------------------------------------------------------------------------
def make_params(key, inchannel, outchannel):
    ks = jax.random.split(key, 12)
    f32 = jnp.float32
    return {
        "w1": 0.1 * jax.random.normal(ks[0], (outchannel, inchannel, 3, 3), f32),
        "w2": 0.1 * jax.random.normal(ks[1], (outchannel, outchannel, 3, 3), f32),
        "bn1_gamma": 1.0 + 0.1 * jax.random.normal(ks[2], (outchannel,), f32),
        "bn1_beta": 0.1 * jax.random.normal(ks[3], (outchannel,), f32),
        "bn1_mean": 0.1 * jax.random.normal(ks[4], (outchannel,), f32),
        "bn1_var": 0.5 + jax.random.uniform(ks[5], (outchannel,), f32),
        "bn2_gamma": 1.0 + 0.1 * jax.random.normal(ks[6], (outchannel,), f32),
        "bn2_beta": 0.1 * jax.random.normal(ks[7], (outchannel,), f32),
        "bn2_mean": 0.1 * jax.random.normal(ks[8], (outchannel,), f32),
        "bn2_var": 0.5 + jax.random.uniform(ks[9], (outchannel,), f32),
        # shortcut (1x1 conv + BN); only used when stride != 1 or Cin != Cout
        "ws": 0.1 * jax.random.normal(ks[10], (outchannel, inchannel, 1, 1), f32),
        "bns_gamma": jnp.ones((outchannel,), f32),
        "bns_beta": jnp.zeros((outchannel,), f32),
        "bns_mean": 0.1 * jax.random.normal(ks[11], (outchannel,), f32),
        "bns_var": jnp.full((outchannel,), 0.9, f32),
    }


if __name__ == "__main__":
    key = jax.random.PRNGKey(0)

    configs = [
        # (N, Cin, Cout, H, W, stride)
        (2, 4, 8, 16, 16, 1),   # projection shortcut (Cin != Cout)
        (2, 8, 8, 16, 16, 1),   # identity shortcut
        (2, 4, 8, 16, 16, 2),   # strided block (projection shortcut)
    ]
    for idx, (N, Cin, Cout, H, W, stride) in enumerate(configs):
        k_x, k_p = jax.random.split(jax.random.fold_in(key, idx))
        x = jax.random.normal(k_x, (N, Cin, H, W), jnp.float32)   # PyTorch NCHW input
        params = make_params(k_p, Cin, Cout)

        out = jax.block_until_ready(resblock_forward(x, params, stride))
        ref = jax.block_until_ready(ref_resblock(x, params, stride))

        Ho = (H + 2 - 3) // stride + 1
        assert out.shape == ref.shape == (N, Cout, Ho, Ho)
        # bf16 matmul inputs / bf16 output -> loosened tolerance vs f32 reference.
        assert jnp.allclose(out, ref, atol=1e-1, rtol=1e-1), (
            f"mismatch vs reference for config {(N, Cin, Cout, H, W, stride)}")

    print("KERNEL_OK")
</pallas_src>

<mosaic_0001>
module attributes {stable_mosaic.version = 11 : i64} {
  func.func @kernel(%arg0: i32, %arg1: memref<1x342x4xbf16, #tpu.memory_space<vmem>>, %arg2: memref<9x4x8xbf16, #tpu.memory_space<vmem>>, %arg3: memref<1x8xf32, #tpu.memory_space<vmem>>, %arg4: memref<288x1xf32, #tpu.memory_space<vmem>>, %arg5: memref<1x342x8xbf16, #tpu.memory_space<vmem>>) attributes {dimension_semantics = [#tpu.dimension_semantics<parallel>], iteration_bounds = array<i64: 2>, scalar_prefetch = 0 : i64, scratch_operands = 0 : i64, tpu.core_type = #tpu.core_type<tc>, window_params = [{transform_indices = @transform_0, window_bounds = array<i64: 1, 342, 4>}, {pipeline_mode = #tpu.pipeline_mode<synchronous>, transform_indices = @transform_1, window_bounds = array<i64: 9, 4, 8>}, {pipeline_mode = #tpu.pipeline_mode<synchronous>, transform_indices = @transform_2, window_bounds = array<i64: 1, 8>}, {pipeline_mode = #tpu.pipeline_mode<synchronous>, transform_indices = @transform_3, window_bounds = array<i64: 288, 1>}, {transform_indices = @transform_4, window_bounds = array<i64: 1, 342, 8>}]} {
    %c0 = arith.constant 0 : index
    %c0_0 = arith.constant 0 : index
    %c0_1 = arith.constant 0 : index
    %0 = vector.load %arg1[%c0, %c0_0, %c0_1] : memref<1x342x4xbf16, #tpu.memory_space<vmem>>, vector<1x342x4xbf16>
    %1 = vector.shape_cast %0 : vector<1x342x4xbf16> to vector<342x4xbf16>
    %2 = vector.extract_strided_slice %1 {offsets = [0, 0], sizes = [288, 4], strides = [1, 1]} : vector<342x4xbf16> to vector<288x4xbf16>
    %c0_2 = arith.constant 0 : index
    %c0_3 = arith.constant 0 : index
    %c0_4 = arith.constant 0 : index
    %3 = vector.load %arg2[%c0_2, %c0_3, %c0_4] : memref<9x4x8xbf16, #tpu.memory_space<vmem>>, vector<1x4x8xbf16>
    %4 = vector.shape_cast %3 : vector<1x4x8xbf16> to vector<4x8xbf16>
    %cst = arith.constant dense<0.000000e+00> : vector<288x8xf32>
    %5 = tpu.matmul %2, %4, %cst {dimension_numbers = #tpu.dot_dimension_numbers<[1], [0], [0], [1], [0, 0, 1, 1], [], []>} : vector<288x4xbf16>, vector<4x8xbf16>, vector<288x8xf32> -> vector<288x8xf32>
    %6 = vector.extract_strided_slice %1 {offsets = [1, 0], sizes = [288, 4], strides = [1, 1]} : vector<342x4xbf16> to vector<288x4xbf16>
    %c1 = arith.constant 1 : index
    %c0_5 = arith.constant 0 : index
    %c0_6 = arith.constant 0 : index
    %7 = vector.load %arg2[%c1, %c0_5, %c0_6] : memref<9x4x8xbf16, #tpu.memory_space<vmem>>, vector<1x4x8xbf16>
    %8 = vector.shape_cast %7 : vector<1x4x8xbf16> to vector<4x8xbf16>
    %cst_7 = arith.constant dense<0.000000e+00> : vector<288x8xf32>
    %9 = tpu.matmul %6, %8, %cst_7 {dimension_numbers = #tpu.dot_dimension_numbers<[1], [0], [0], [1], [0, 0, 1, 1], [], []>} : vector<288x4xbf16>, vector<4x8xbf16>, vector<288x8xf32> -> vector<288x8xf32>
    %10 = arith.addf %5, %9 : vector<288x8xf32>
    %11 = vector.extract_strided_slice %1 {offsets = [2, 0], sizes = [288, 4], strides = [1, 1]} : vector<342x4xbf16> to vector<288x4xbf16>
    %c2 = arith.constant 2 : index
    %c0_8 = arith.constant 0 : index
    %c0_9 = arith.constant 0 : index
    %12 = vector.load %arg2[%c2, %c0_8, %c0_9] : memref<9x4x8xbf16, #tpu.memory_space<vmem>>, vector<1x4x8xbf16>
    %13 = vector.shape_cast %12 : vector<1x4x8xbf16> to vector<4x8xbf16>
    %cst_10 = arith.constant dense<0.000000e+00> : vector<288x8xf32>
    %14 = tpu.matmul %11, %13, %cst_10 {dimension_numbers = #tpu.dot_dimension_numbers<[1], [0], [0], [1], [0, 0, 1, 1], [], []>} : vector<288x4xbf16>, vector<4x8xbf16>, vector<288x8xf32> -> vector<288x8xf32>
    %15 = arith.addf %10, %14 : vector<288x8xf32>
    %16 = vector.extract_strided_slice %1 {offsets = [18, 0], sizes = [288, 4], strides = [1, 1]} : vector<342x4xbf16> to vector<288x4xbf16>
    %c3 = arith.constant 3 : index
    %c0_11 = arith.constant 0 : index
    %c0_12 = arith.constant 0 : index
    %17 = vector.load %arg2[%c3, %c0_11, %c0_12] : memref<9x4x8xbf16, #tpu.memory_space<vmem>>, vector<1x4x8xbf16>
    %18 = vector.shape_cast %17 : vector<1x4x8xbf16> to vector<4x8xbf16>
    %cst_13 = arith.constant dense<0.000000e+00> : vector<288x8xf32>
    %19 = tpu.matmul %16, %18, %cst_13 {dimension_numbers = #tpu.dot_dimension_numbers<[1], [0], [0], [1], [0, 0, 1, 1], [], []>} : vector<288x4xbf16>, vector<4x8xbf16>, vector<288x8xf32> -> vector<288x8xf32>
    %20 = arith.addf %15, %19 : vector<288x8xf32>
    %21 = vector.extract_strided_slice %1 {offsets = [19, 0], sizes = [288, 4], strides = [1, 1]} : vector<342x4xbf16> to vector<288x4xbf16>
    %c4 = arith.constant 4 : index
    %c0_14 = arith.constant 0 : index
    %c0_15 = arith.constant 0 : index
    %22 = vector.load %arg2[%c4, %c0_14, %c0_15] : memref<9x4x8xbf16, #tpu.memory_space<vmem>>, vector<1x4x8xbf16>
    %23 = vector.shape_cast %22 : vector<1x4x8xbf16> to vector<4x8xbf16>
    %cst_16 = arith.constant dense<0.000000e+00> : vector<288x8xf32>
    %24 = tpu.matmul %21, %23, %cst_16 {dimension_numbers = #tpu.dot_dimension_numbers<[1], [0], [0], [1], [0, 0, 1, 1], [], []>} : vector<288x4xbf16>, vector<4x8xbf16>, vector<288x8xf32> -> vector<288x8xf32>
    %25 = arith.addf %20, %24 : vector<288x8xf32>
    %26 = vector.extract_strided_slice %1 {offsets = [20, 0], sizes = [288, 4], strides = [1, 1]} : vector<342x4xbf16> to vector<288x4xbf16>
    %c5 = arith.constant 5 : index
    %c0_17 = arith.constant 0 : index
    %c0_18 = arith.constant 0 : index
    %27 = vector.load %arg2[%c5, %c0_17, %c0_18] : memref<9x4x8xbf16, #tpu.memory_space<vmem>>, vector<1x4x8xbf16>
    %28 = vector.shape_cast %27 : vector<1x4x8xbf16> to vector<4x8xbf16>
    %cst_19 = arith.constant dense<0.000000e+00> : vector<288x8xf32>
    %29 = tpu.matmul %26, %28, %cst_19 {dimension_numbers = #tpu.dot_dimension_numbers<[1], [0], [0], [1], [0, 0, 1, 1], [], []>} : vector<288x4xbf16>, vector<4x8xbf16>, vector<288x8xf32> -> vector<288x8xf32>
    %30 = arith.addf %25, %29 : vector<288x8xf32>
    %31 = vector.extract_strided_slice %1 {offsets = [36, 0], sizes = [288, 4], strides = [1, 1]} : vector<342x4xbf16> to vector<288x4xbf16>
    %c6 = arith.constant 6 : index
    %c0_20 = arith.constant 0 : index
    %c0_21 = arith.constant 0 : index
    %32 = vector.load %arg2[%c6, %c0_20, %c0_21] : memref<9x4x8xbf16, #tpu.memory_space<vmem>>, vector<1x4x8xbf16>
    %33 = vector.shape_cast %32 : vector<1x4x8xbf16> to vector<4x8xbf16>
    %cst_22 = arith.constant dense<0.000000e+00> : vector<288x8xf32>
    %34 = tpu.matmul %31, %33, %cst_22 {dimension_numbers = #tpu.dot_dimension_numbers<[1], [0], [0], [1], [0, 0, 1, 1], [], []>} : vector<288x4xbf16>, vector<4x8xbf16>, vector<288x8xf32> -> vector<288x8xf32>
    %35 = arith.addf %30, %34 : vector<288x8xf32>
    %36 = vector.extract_strided_slice %1 {offsets = [37, 0], sizes = [288, 4], strides = [1, 1]} : vector<342x4xbf16> to vector<288x4xbf16>
    %c7 = arith.constant 7 : index
    %c0_23 = arith.constant 0 : index
    %c0_24 = arith.constant 0 : index
    %37 = vector.load %arg2[%c7, %c0_23, %c0_24] : memref<9x4x8xbf16, #tpu.memory_space<vmem>>, vector<1x4x8xbf16>
    %38 = vector.shape_cast %37 : vector<1x4x8xbf16> to vector<4x8xbf16>
    %cst_25 = arith.constant dense<0.000000e+00> : vector<288x8xf32>
    %39 = tpu.matmul %36, %38, %cst_25 {dimension_numbers = #tpu.dot_dimension_numbers<[1], [0], [0], [1], [0, 0, 1, 1], [], []>} : vector<288x4xbf16>, vector<4x8xbf16>, vector<288x8xf32> -> vector<288x8xf32>
    %40 = arith.addf %35, %39 : vector<288x8xf32>
    %41 = vector.extract_strided_slice %1 {offsets = [38, 0], sizes = [288, 4], strides = [1, 1]} : vector<342x4xbf16> to vector<288x4xbf16>
    %c8 = arith.constant 8 : index
    %c0_26 = arith.constant 0 : index
    %c0_27 = arith.constant 0 : index
    %42 = vector.load %arg2[%c8, %c0_26, %c0_27] : memref<9x4x8xbf16, #tpu.memory_space<vmem>>, vector<1x4x8xbf16>
    %43 = vector.shape_cast %42 : vector<1x4x8xbf16> to vector<4x8xbf16>
    %cst_28 = arith.constant dense<0.000000e+00> : vector<288x8xf32>
    %44 = tpu.matmul %41, %43, %cst_28 {dimension_numbers = #tpu.dot_dimension_numbers<[1], [0], [0], [1], [0, 0, 1, 1], [], []>} : vector<288x4xbf16>, vector<4x8xbf16>, vector<288x8xf32> -> vector<288x8xf32>
    %45 = arith.addf %40, %44 : vector<288x8xf32>
    %c0_29 = arith.constant 0 : index
    %c0_30 = arith.constant 0 : index
    %46 = vector.load %arg3[%c0_29, %c0_30] : memref<1x8xf32, #tpu.memory_space<vmem>>, vector<1x8xf32>
    %47 = vector.broadcast %46 : vector<1x8xf32> to vector<288x8xf32>
    %48 = arith.addf %45, %47 : vector<288x8xf32>
    %cst_31 = arith.constant 0.000000e+00 : f32
    %49 = vector.broadcast %cst_31 : f32 to vector<288x8xf32>
    %50 = arith.maximumf %48, %49 : vector<288x8xf32>
    %c0_32 = arith.constant 0 : index
    %c0_33 = arith.constant 0 : index
    %51 = vector.load %arg4[%c0_32, %c0_33] : memref<288x1xf32, #tpu.memory_space<vmem>>, vector<288x1xf32>
    %52 = vector.broadcast %51 : vector<288x1xf32> to vector<288x8xf32>
    %53 = arith.mulf %50, %52 : vector<288x8xf32>
    %54 = arith.truncf %53 : vector<288x8xf32> to vector<288x8xbf16>
    %cst_34 = arith.constant 0.000000e+00 : bf16
    %55 = vector.broadcast %cst_34 : bf16 to vector<19x8xbf16>
    %c0_35 = arith.constant 0 : index
    %c0_36 = arith.constant 0 : index
    %c0_37 = arith.constant 0 : index
    %56 = vector.load %arg5[%c0_35, %c0_36, %c0_37] : memref<1x342x8xbf16, #tpu.memory_space<vmem>>, vector<1x19x8xbf16>
    %57 = vector.shape_cast %56 : vector<1x19x8xbf16> to vector<19x8xbf16>
    %58 = vector.shape_cast %55 : vector<19x8xbf16> to vector<1x19x8xbf16>
    tpu.vector_store %arg5[%c0_35, %c0_36, %c0_37], %58 {strides = array<i32>} : memref<1x342x8xbf16, #tpu.memory_space<vmem>>, vector<1x19x8xbf16>,
    %c0_38 = arith.constant 0 : index
    %c19 = arith.constant 19 : index
    %c0_39 = arith.constant 0 : index
    %59 = vector.load %arg5[%c0_38, %c19, %c0_39] : memref<1x342x8xbf16, #tpu.memory_space<vmem>>, vector<1x288x8xbf16>
    %60 = vector.shape_cast %59 : vector<1x288x8xbf16> to vector<288x8xbf16>
    %61 = vector.shape_cast %54 : vector<288x8xbf16> to vector<1x288x8xbf16>
    tpu.vector_store %arg5[%c0_38, %c19, %c0_39], %61 {strides = array<i32>} : memref<1x342x8xbf16, #tpu.memory_space<vmem>>, vector<1x288x8xbf16>,
    %cst_40 = arith.constant 0.000000e+00 : bf16
    %62 = vector.broadcast %cst_40 : bf16 to vector<35x8xbf16>
    %c0_41 = arith.constant 0 : index
    %c307 = arith.constant 307 : index
    %c0_42 = arith.constant 0 : index
    %63 = vector.load %arg5[%c0_41, %c307, %c0_42] : memref<1x342x8xbf16, #tpu.memory_space<vmem>>, vector<1x35x8xbf16>
    %64 = vector.shape_cast %63 : vector<1x35x8xbf16> to vector<35x8xbf16>
    %65 = vector.shape_cast %62 : vector<35x8xbf16> to vector<1x35x8xbf16>
    tpu.vector_store %arg5[%c0_41, %c307, %c0_42], %65 {strides = array<i32>} : memref<1x342x8xbf16, #tpu.memory_space<vmem>>, vector<1x35x8xbf16>,
    return
  }
  func.func @transform_0(%arg0: i32) -> (i32, i32, i32) {
    %c0_i32 = arith.constant 0 : i32
    %c0_i32_0 = arith.constant 0 : i32
    %c0_i32_1 = arith.constant 0 : i32
    return %arg0, %c0_i32, %c0_i32_0 : i32, i32, i32
  }
  func.func @transform_1(%arg0: i32) -> (i32, i32, i32) {
    %c0_i32 = arith.constant 0 : i32
    %c0_i32_0 = arith.constant 0 : i32
    %c0_i32_1 = arith.constant 0 : i32
    %c0_i32_2 = arith.constant 0 : i32
    return %c0_i32, %c0_i32_0, %c0_i32_1 : i32, i32, i32
  }
  func.func @transform_2(%arg0: i32) -> (i32, i32) {
    %c0_i32 = arith.constant 0 : i32
    %c0_i32_0 = arith.constant 0 : i32
    %c0_i32_1 = arith.constant 0 : i32
    return %c0_i32, %c0_i32_0 : i32, i32
  }
  func.func @transform_3(%arg0: i32) -> (i32, i32) {
    %c0_i32 = arith.constant 0 : i32
    %c0_i32_0 = arith.constant 0 : i32
    %c0_i32_1 = arith.constant 0 : i32
    return %c0_i32, %c0_i32_0 : i32, i32
  }
  func.func @transform_4(%arg0: i32) -> (i32, i32, i32) {
    %c0_i32 = arith.constant 0 : i32
    %c0_i32_0 = arith.constant 0 : i32
    %c0_i32_1 = arith.constant 0 : i32
    return %arg0, %c0_i32, %c0_i32_0 : i32, i32, i32
  }
}

module attributes {stable_mosaic.version = 11 : i64} {
  func.func @kernel(%arg0: i32, %arg1: memref<1x342x8xbf16, #tpu.memory_space<vmem>>, %arg2: memref<9x8x8xbf16, #tpu.memory_space<vmem>>, %arg3: memref<1x8xf32, #tpu.memory_space<vmem>>, %arg4: memref<1x342x4xbf16, #tpu.memory_space<vmem>>, %arg5: memref<4x8xbf16, #tpu.memory_space<vmem>>, %arg6: memref<1x288x8xbf16, #tpu.memory_space<vmem>>) attributes {dimension_semantics = [#tpu.dimension_semantics<parallel>], iteration_bounds = array<i64: 2>, scalar_prefetch = 0 : i64, scratch_operands = 0 : i64, tpu.core_type = #tpu.core_type<tc>, window_params = [{transform_indices = @transform_0, window_bounds = array<i64: 1, 342, 8>}, {pipeline_mode = #tpu.pipeline_mode<synchronous>, transform_indices = @transform_1, window_bounds = array<i64: 9, 8, 8>}, {pipeline_mode = #tpu.pipeline_mode<synchronous>, transform_indices = @transform_2, window_bounds = array<i64: 1, 8>}, {transform_indices = @transform_3, window_bounds = array<i64: 1, 342, 4>}, {pipeline_mode = #tpu.pipeline_mode<synchronous>, transform_indices = @transform_4, window_bounds = array<i64: 4, 8>}, {transform_indices = @transform_5, window_bounds = array<i64: 1, 288, 8>}]} {
    %c0 = arith.constant 0 : index
    %c0_0 = arith.constant 0 : index
    %c0_1 = arith.constant 0 : index
    %0 = vector.load %arg1[%c0, %c0_0, %c0_1] : memref<1x342x8xbf16, #tpu.memory_space<vmem>>, vector<1x342x8xbf16>
    %1 = vector.shape_cast %0 : vector<1x342x8xbf16> to vector<342x8xbf16>
    %2 = vector.extract_strided_slice %1 {offsets = [0, 0], sizes = [288, 8], strides = [1, 1]} : vector<342x8xbf16> to vector<288x8xbf16>
    %c0_2 = arith.constant 0 : index
    %c0_3 = arith.constant 0 : index
    %c0_4 = arith.constant 0 : index
    %3 = vector.load %arg2[%c0_2, %c0_3, %c0_4] : memref<9x8x8xbf16, #tpu.memory_space<vmem>>, vector<1x8x8xbf16>
    %4 = vector.shape_cast %3 : vector<1x8x8xbf16> to vector<8x8xbf16>
    %cst = arith.constant dense<0.000000e+00> : vector<288x8xf32>
    %5 = tpu.matmul %2, %4, %cst {dimension_numbers = #tpu.dot_dimension_numbers<[1], [0], [0], [1], [0, 0, 1, 1], [], []>} : vector<288x8xbf16>, vector<8x8xbf16>, vector<288x8xf32> -> vector<288x8xf32>
    %6 = vector.extract_strided_slice %1 {offsets = [1, 0], sizes = [288, 8], strides = [1, 1]} : vector<342x8xbf16> to vector<288x8xbf16>
    %c1 = arith.constant 1 : index
    %c0_5 = arith.constant 0 : index
    %c0_6 = arith.constant 0 : index
    %7 = vector.load %arg2[%c1, %c0_5, %c0_6] : memref<9x8x8xbf16, #tpu.memory_space<vmem>>, vector<1x8x8xbf16>
    %8 = vector.shape_cast %7 : vector<1x8x8xbf16> to vector<8x8xbf16>
    %cst_7 = arith.constant dense<0.000000e+00> : vector<288x8xf32>
    %9 = tpu.matmul %6, %8, %cst_7 {dimension_numbers = #tpu.dot_dimension_numbers<[1], [0], [0], [1], [0, 0, 1, 1], [], []>} : vector<288x8xbf16>, vector<8x8xbf16>, vector<288x8xf32> -> vector<288x8xf32>
    %10 = arith.addf %5, %9 : vector<288x8xf32>
    %11 = vector.extract_strided_slice %1 {offsets = [2, 0], sizes = [288, 8], strides = [1, 1]} : vector<342x8xbf16> to vector<288x8xbf16>
    %c2 = arith.constant 2 : index
    %c0_8 = arith.constant 0 : index
    %c0_9 = arith.constant 0 : index
    %12 = vector.load %arg2[%c2, %c0_8, %c0_9] : memref<9x8x8xbf16, #tpu.memory_space<vmem>>, vector<1x8x8xbf16>
    %13 = vector.shape_cast %12 : vector<1x8x8xbf16> to vector<8x8xbf16>
    %cst_10 = arith.constant dense<0.000000e+00> : vector<288x8xf32>
    %14 = tpu.matmul %11, %13, %cst_10 {dimension_numbers = #tpu.dot_dimension_numbers<[1], [0], [0], [1], [0, 0, 1, 1], [], []>} : vector<288x8xbf16>, vector<8x8xbf16>, vector<288x8xf32> -> vector<288x8xf32>
    %15 = arith.addf %10, %14 : vector<288x8xf32>
    %16 = vector.extract_strided_slice %1 {offsets = [18, 0], sizes = [288, 8], strides = [1, 1]} : vector<342x8xbf16> to vector<288x8xbf16>
    %c3 = arith.constant 3 : index
    %c0_11 = arith.constant 0 : index
    %c0_12 = arith.constant 0 : index
    %17 = vector.load %arg2[%c3, %c0_11, %c0_12] : memref<9x8x8xbf16, #tpu.memory_space<vmem>>, vector<1x8x8xbf16>
    %18 = vector.shape_cast %17 : vector<1x8x8xbf16> to vector<8x8xbf16>
    %cst_13 = arith.constant dense<0.000000e+00> : vector<288x8xf32>
    %19 = tpu.matmul %16, %18, %cst_13 {dimension_numbers = #tpu.dot_dimension_numbers<[1], [0], [0], [1], [0, 0, 1, 1], [], []>} : vector<288x8xbf16>, vector<8x8xbf16>, vector<288x8xf32> -> vector<288x8xf32>
    %20 = arith.addf %15, %19 : vector<288x8xf32>
    %21 = vector.extract_strided_slice %1 {offsets = [19, 0], sizes = [288, 8], strides = [1, 1]} : vector<342x8xbf16> to vector<288x8xbf16>
    %c4 = arith.constant 4 : index
    %c0_14 = arith.constant 0 : index
    %c0_15 = arith.constant 0 : index
    %22 = vector.load %arg2[%c4, %c0_14, %c0_15] : memref<9x8x8xbf16, #tpu.memory_space<vmem>>, vector<1x8x8xbf16>
    %23 = vector.shape_cast %22 : vector<1x8x8xbf16> to vector<8x8xbf16>
    %cst_16 = arith.constant dense<0.000000e+00> : vector<288x8xf32>
    %24 = tpu.matmul %21, %23, %cst_16 {dimension_numbers = #tpu.dot_dimension_numbers<[1], [0], [0], [1], [0, 0, 1, 1], [], []>} : vector<288x8xbf16>, vector<8x8xbf16>, vector<288x8xf32> -> vector<288x8xf32>
    %25 = arith.addf %20, %24 : vector<288x8xf32>
    %26 = vector.extract_strided_slice %1 {offsets = [20, 0], sizes = [288, 8], strides = [1, 1]} : vector<342x8xbf16> to vector<288x8xbf16>
    %c5 = arith.constant 5 : index
    %c0_17 = arith.constant 0 : index
    %c0_18 = arith.constant 0 : index
    %27 = vector.load %arg2[%c5, %c0_17, %c0_18] : memref<9x8x8xbf16, #tpu.memory_space<vmem>>, vector<1x8x8xbf16>
    %28 = vector.shape_cast %27 : vector<1x8x8xbf16> to vector<8x8xbf16>
    %cst_19 = arith.constant dense<0.000000e+00> : vector<288x8xf32>
    %29 = tpu.matmul %26, %28, %cst_19 {dimension_numbers = #tpu.dot_dimension_numbers<[1], [0], [0], [1], [0, 0, 1, 1], [], []>} : vector<288x8xbf16>, vector<8x8xbf16>, vector<288x8xf32> -> vector<288x8xf32>
    %30 = arith.addf %25, %29 : vector<288x8xf32>
    %31 = vector.extract_strided_slice %1 {offsets = [36, 0], sizes = [288, 8], strides = [1, 1]} : vector<342x8xbf16> to vector<288x8xbf16>
    %c6 = arith.constant 6 : index
    %c0_20 = arith.constant 0 : index
    %c0_21 = arith.constant 0 : index
    %32 = vector.load %arg2[%c6, %c0_20, %c0_21] : memref<9x8x8xbf16, #tpu.memory_space<vmem>>, vector<1x8x8xbf16>
    %33 = vector.shape_cast %32 : vector<1x8x8xbf16> to vector<8x8xbf16>
    %cst_22 = arith.constant dense<0.000000e+00> : vector<288x8xf32>
    %34 = tpu.matmul %31, %33, %cst_22 {dimension_numbers = #tpu.dot_dimension_numbers<[1], [0], [0], [1], [0, 0, 1, 1], [], []>} : vector<288x8xbf16>, vector<8x8xbf16>, vector<288x8xf32> -> vector<288x8xf32>
    %35 = arith.addf %30, %34 : vector<288x8xf32>
    %36 = vector.extract_strided_slice %1 {offsets = [37, 0], sizes = [288, 8], strides = [1, 1]} : vector<342x8xbf16> to vector<288x8xbf16>
    %c7 = arith.constant 7 : index
    %c0_23 = arith.constant 0 : index
    %c0_24 = arith.constant 0 : index
    %37 = vector.load %arg2[%c7, %c0_23, %c0_24] : memref<9x8x8xbf16, #tpu.memory_space<vmem>>, vector<1x8x8xbf16>
    %38 = vector.shape_cast %37 : vector<1x8x8xbf16> to vector<8x8xbf16>
    %cst_25 = arith.constant dense<0.000000e+00> : vector<288x8xf32>
    %39 = tpu.matmul %36, %38, %cst_25 {dimension_numbers = #tpu.dot_dimension_numbers<[1], [0], [0], [1], [0, 0, 1, 1], [], []>} : vector<288x8xbf16>, vector<8x8xbf16>, vector<288x8xf32> -> vector<288x8xf32>
    %40 = arith.addf %35, %39 : vector<288x8xf32>
    %41 = vector.extract_strided_slice %1 {offsets = [38, 0], sizes = [288, 8], strides = [1, 1]} : vector<342x8xbf16> to vector<288x8xbf16>
    %c8 = arith.constant 8 : index
    %c0_26 = arith.constant 0 : index
    %c0_27 = arith.constant 0 : index
    %42 = vector.load %arg2[%c8, %c0_26, %c0_27] : memref<9x8x8xbf16, #tpu.memory_space<vmem>>, vector<1x8x8xbf16>
    %43 = vector.shape_cast %42 : vector<1x8x8xbf16> to vector<8x8xbf16>
    %cst_28 = arith.constant dense<0.000000e+00> : vector<288x8xf32>
    %44 = tpu.matmul %41, %43, %cst_28 {dimension_numbers = #tpu.dot_dimension_numbers<[1], [0], [0], [1], [0, 0, 1, 1], [], []>} : vector<288x8xbf16>, vector<8x8xbf16>, vector<288x8xf32> -> vector<288x8xf32>
    %45 = arith.addf %40, %44 : vector<288x8xf32>
    %c0_29 = arith.constant 0 : index
    %c0_30 = arith.constant 0 : index
    %c0_31 = arith.constant 0 : index
    %46 = vector.load %arg4[%c0_29, %c0_30, %c0_31] : memref<1x342x4xbf16, #tpu.memory_space<vmem>>, vector<1x342x4xbf16>
    %47 = vector.shape_cast %46 : vector<1x342x4xbf16> to vector<342x4xbf16>
    %48 = vector.extract_strided_slice %47 {offsets = [19, 0], sizes = [288, 4], strides = [1, 1]} : vector<342x4xbf16> to vector<288x4xbf16>
    %c0_32 = arith.constant 0 : index
    %c0_33 = arith.constant 0 : index
    %49 = vector.load %arg5[%c0_32, %c0_33] : memref<4x8xbf16, #tpu.memory_space<vmem>>, vector<4x8xbf16>
    %cst_34 = arith.constant dense<0.000000e+00> : vector<288x8xf32>
    %50 = tpu.matmul %48, %49, %cst_34 {dimension_numbers = #tpu.dot_dimension_numbers<[1], [0], [0], [1], [0, 0, 1, 1], [], []>} : vector<288x4xbf16>, vector<4x8xbf16>, vector<288x8xf32> -> vector<288x8xf32>
    %51 = arith.addf %45, %50 : vector<288x8xf32>
    %c0_35 = arith.constant 0 : index
    %c0_36 = arith.constant 0 : index
    %52 = vector.load %arg3[%c0_35, %c0_36] : memref<1x8xf32, #tpu.memory_space<vmem>>, vector<1x8xf32>
    %53 = vector.broadcast %52 : vector<1x8xf32> to vector<288x8xf32>
    %54 = arith.addf %51, %53 : vector<288x8xf32>
    %cst_37 = arith.constant 0.000000e+00 : f32
    %55 = vector.broadcast %cst_37 : f32 to vector<288x8xf32>
    %56 = arith.maximumf %54, %55 : vector<288x8xf32>
    %57 = arith.truncf %56 : vector<288x8xf32> to vector<288x8xbf16>
    %c0_38 = arith.constant 0 : index
    %c0_39 = arith.constant 0 : index
    %c0_40 = arith.constant 0 : index
    %58 = vector.load %arg6[%c0_38, %c0_39, %c0_40] : memref<1x288x8xbf16, #tpu.memory_space<vmem>>, vector<1x288x8xbf16>
    %59 = vector.shape_cast %58 : vector<1x288x8xbf16> to vector<288x8xbf16>
    %60 = vector.shape_cast %57 : vector<288x8xbf16> to vector<1x288x8xbf16>
    tpu.vector_store %arg6[%c0_38, %c0_39, %c0_40], %60 {strides = array<i32>} : memref<1x288x8xbf16, #tpu.memory_space<vmem>>, vector<1x288x8xbf16>,
    return
  }
  func.func @transform_0(%arg0: i32) -> (i32, i32, i32) {
    %c0_i32 = arith.constant 0 : i32
    %c0_i32_0 = arith.constant 0 : i32
    %c0_i32_1 = arith.constant 0 : i32
    return %arg0, %c0_i32, %c0_i32_0 : i32, i32, i32
  }
  func.func @transform_1(%arg0: i32) -> (i32, i32, i32) {
    %c0_i32 = arith.constant 0 : i32
    %c0_i32_0 = arith.constant 0 : i32
    %c0_i32_1 = arith.constant 0 : i32
    %c0_i32_2 = arith.constant 0 : i32
    return %c0_i32, %c0_i32_0, %c0_i32_1 : i32, i32, i32
  }
  func.func @transform_2(%arg0: i32) -> (i32, i32) {
    %c0_i32 = arith.constant 0 : i32
    %c0_i32_0 = arith.constant 0 : i32
    %c0_i32_1 = arith.constant 0 : i32
    return %c0_i32, %c0_i32_0 : i32, i32
  }
  func.func @transform_3(%arg0: i32) -> (i32, i32, i32) {
    %c0_i32 = arith.constant 0 : i32
    %c0_i32_0 = arith.constant 0 : i32
    %c0_i32_1 = arith.constant 0 : i32
    return %arg0, %c0_i32, %c0_i32_0 : i32, i32, i32
  }
  func.func @transform_4(%arg0: i32) -> (i32, i32) {
    %c0_i32 = arith.constant 0 : i32
    %c0_i32_0 = arith.constant 0 : i32
    %c0_i32_1 = arith.constant 0 : i32
    return %c0_i32, %c0_i32_0 : i32, i32
  }
  func.func @transform_5(%arg0: i32) -> (i32, i32, i32) {
    %c0_i32 = arith.constant 0 : i32
    %c0_i32_0 = arith.constant 0 : i32
    %c0_i32_1 = arith.constant 0 : i32
    return %arg0, %c0_i32, %c0_i32_0 : i32, i32, i32
  }
}

</mosaic_0001>

<bundles_post_ra>
// kernel: resblock_forward.2
= control target key start
LH: loop header
LB: loop body
LE: loop exit
PB: predicated region body
PF: predicated region fallthrough
CT: control target
= control target key end

     0   :  { %9 = vsyncpa [#allocation3], 0  ;;  %s7109_s0 = inlined_call_operand.hbm [shape: bf16[2,342,4], index: 0, kind: input, shape index: {}]   ;;  %s7110_s1 = inlined_call_operand.hbm [shape: bf16[9,4,8], index: 1, kind: input, shape index: {}]   ;;  %s7111_s2 = inlined_call_operand.hbm [shape: f32[1,8], index: 2, kind: input, shape index: {}]   ;;  %s7112_s3 = inlined_call_operand.hbm [shape: f32[288,1], index: 3, kind: input, shape index: {}]   ;;  %s7113_s4 = inlined_call_operand.hbm [shape: bf16[2,342,8], index: 4, kind: output, shape index: {}]  }
   0x1   :  { %11 = vsyncpa [#allocation3 + $0x1], 0 }
   0x2   :  { %12 = vsyncpa [#allocation6], 0 }
   0x3   :  { %13 = vsyncpa [#allocation9], 0 }
   0x4   :  { %14 = vsyncpa [#allocation4], 0 }
   0x5   :  { %16 = vsyncpa [#allocation4 + $0x1], 0  ;;  %s5564_s15 = smov 0   ;;  %s5566_s16 = smov 0  }
   0x6   :  { %s5568_s17 = smov 0   ;;  %s5570_s18 = smov 0  }
   0x7 LB: > { %s5585_s19 = sadd.s32 4294967295, %s5523_s18   ;;  %s4125_s20 = sadd.s32 4294967294, %s5523_s18   ;;  %s5523_s18 = sphi %s5570_s18, %s7208_s18   ;;  %s5519_s17 = sphi %s5568_s17, %s7207_s17   ;;  %s5515_s16 = sphi %s5566_s16, %s7206_s16   ;;  %s5511_s15 = sphi %s5564_s15, %s7205_s15  }
   0x8   : > { %p42_p0 = scmp.ne.s32.totalorder %s5515_s16, %s5511_s15  ;;  %p7114_p1 = scmp.eq.s32.totalorder %s5585_s19, 0 }
   0x9   : > { %p135_p3 = scmp.eq.s32.totalorder %s4125_s20, 1  ;;  %p4126_p5 = scmp.ge.s32.totalorder %s5523_s18, 1 }
   0xa   : > { %p5594_p4 = por %p7114_p1, %p42_p0  ;;  %p142_p7 = scmp.lt.s32.totalorder %s5523_s18, 3 }
   0xb   : > { %p5599_p6 = por %p135_p3, %p42_p0  ;;  %s5525_s24 = smov [#allocation5]  }
   0xc   : > { %s7148_s21 = scalar_select %p5594_p4, 1, 0 }
   0xd   : > { %s7149_s22 = scalar_select %p5599_p6, 1, 0 }
   0xe   : > { %p5604_p8 = pnand %p4126_p5, %p142_p7  ;;  %s154_s25 = sshll.u32 %s5525_s24, 4  ;;  %s5608_s25 = int_to_ptr.vmem [resolvable:$true] %s154_s25 }
   0xf   : > { %s5526_s27 = smov [#allocation7]   ;;  %s5527_s29 = smov [#allocation8]  }
  0x10   : > { %s7150_s23 = scalar_select %p5604_p8, 1, 0 }
  0x11   : > { %p5230_p9 = pneg %p5604_p8  ;;  %s168_s28 = sshll.u32 %s5526_s27, 4  ;;  %s5619_s28 = int_to_ptr.vmem [resolvable:$true] %s168_s28 }
  0x12   : > { %s5621_s30 = sshll.u32 %s5527_s29, 4  ;;  %s5335_s7 = scalar_lea.hbm %s7110_s1, 288  ;;  %s179_s30 = int_to_ptr.vmem [resolvable:$true] %s5621_s30 }
  0x13   : > { %p5615_p11 = pnand %p5230_p9, %p7114_p1  ;;  %p5336_p12 = scmp.ne.s32.totalorder %s7110_s1, %s5335_s7 }
  0x14   : > { %p5342_p5 = scmp.lt.u32.totalorder %s5335_s7, %s7110_s1 }
  0x15   : > { %p5631_p13 = pneg %p5615_p11 }
  0x17   : > { %p5338_p0 = pnand %p5631_p13, %p5336_p12 }
  0x19   : > { %p5339_p3 = pneg %p5338_p0 }
  0x1b   : > { %p5344_p7 = pnand %p5342_p5, %p5339_p3 }
  0x1d   : > { %5347 = shalt.err (!%p5344_p7)
}
  0x1e   : > { %s5348_s13 = scalar_lea.vmem %s5608_s25, 288  ;;  %p5356_p2 = scmp.lt.s32.totalorder %s5608_s25, %s5608_s25 }
  0x1f   : > { %p5349_p9 = scmp.ne.s32.totalorder %s5608_s25, %s5348_s13  ;;  %p5357_p6 = scmp.lt.s32.totalorder %s5348_s13, %s5348_s13 }
  0x21   : > { %p5351_p10 = pnand %p5349_p9, %p5631_p13  ;;  %p5358_p12 = por %p5357_p6, %p5356_p2 }
  0x23   : > { %p5352_p1 = pneg %p5351_p10 }
  0x25   : > { %p5359_p0 = pnand %p5358_p12, %p5352_p1 }
  0x27   : > { %5362 = shalt.err (!%p5359_p0)
}
  0x28   : > { %s5528_s14 = smov 32   ;;  %s5529_s20 = smov 2  }
  0x29   : > { %5233 = dma.hbm_to_vmem [thread:$0]  (!%p5615_p11), %s7110_s1, 288, %s5608_s25, [#allocation6], %s5528_s14, %s5528_s14, %s5529_s20  }
  0x2a   : > { %s5363_s6 = scalar_lea.hbm %s7111_s2, 16 }
  0x2b   : > { %p5364_p2 = scmp.ne.s32.totalorder %s7111_s2, %s5363_s6  ;;  %p5370_p10 = scmp.lt.u32.totalorder %s5363_s6, %s7111_s2 }
  0x2d   : > { %p5366_p1 = pnand %p5364_p2, %p5631_p13 }
  0x2f   : > { %p5367_p6 = pneg %p5366_p1 }
  0x31   : > { %p5372_p3 = pnand %p5370_p10, %p5367_p6 }
  0x33   : > { %5375 = shalt.err (!%p5372_p3)
}
  0x34   : > { %s5376_s25 = scalar_lea.vmem %s5619_s28, 16  ;;  %s5383_s12 = scalar_lea.vmem %s5619_s28, 32 }
  0x35   : > { %p5377_p5 = scmp.ne.s32.totalorder %s5619_s28, %s5376_s25  ;;  %p5384_p12 = scmp.lt.s32.totalorder %s5619_s28, %s5619_s28 }
  0x36   : > { %p5385_p0 = scmp.lt.s32.totalorder %s5383_s12, %s5376_s25 }
  0x37   : > { %p5379_p7 = pnand %p5377_p5, %p5631_p13 }
  0x38   : > { %p5386_p2 = por %p5385_p0, %p5384_p12 }
  0x39   : > { %p5380_p9 = pneg %p5379_p7 }
  0x3b   : > { %p5387_p1 = pnand %p5386_p2, %p5380_p9 }
  0x3d   : > { %5390 = shalt.err (!%p5387_p1)
}
  0x3e   : > { %5236 = dma.hbm_to_vmem [thread:$0]  (!%p5615_p11), %s7111_s2, 16, %s5619_s28, [#allocation6]  }
  0x3f   : > { %s5391_s27 = scalar_lea.hbm %s7112_s3, 4608 }
  0x40   : > { %p5392_p6 = scmp.ne.s32.totalorder %s7112_s3, %s5391_s27  ;;  %p5398_p5 = scmp.lt.u32.totalorder %s5391_s27, %s7112_s3 }
  0x42   : > { %p5394_p10 = pnand %p5392_p6, %p5631_p13 }
  0x44   : > { %p5395_p3 = pneg %p5394_p10 }
  0x46   : > { %p5400_p7 = pnand %p5398_p5, %p5395_p3 }
  0x48   : > { %5403 = shalt.err (!%p5400_p7)
}
  0x49   : > { %s5404_s8 = scalar_lea.vmem %s179_s30, 4608  ;;  %p5412_p2 = scmp.lt.s32.totalorder %s179_s30, %s179_s30 }
  0x4a   : > { %p5405_p9 = scmp.ne.s32.totalorder %s179_s30, %s5404_s8  ;;  %p5413_p1 = scmp.lt.s32.totalorder %s5404_s8, %s5404_s8 }
  0x4c   : > { %p5407_p12 = pnand %p5405_p9, %p5631_p13  ;;  %p5414_p4 = por %p5413_p1, %p5412_p2 }
  0x4e   : > { %p5408_p0 = pneg %p5407_p12 }
  0x50   : > { %p5415_p8 = pnand %p5414_p4, %p5408_p0 }
  0x52   : > { %5418 = shalt.err (!%p5415_p8)
}
  0x53   : > { %s5530_s28 = smov 128   ;;  %s5531_s10 = smov 8  }
  0x54   : > { %5239 = dma.hbm_to_vmem [thread:$0]  (!%p5615_p11), %s7112_s3, 4608, %s179_s30, [#allocation9], %s5530_s28, %s5530_s28, %s5531_s10  }
  0x55   : > { %s5696_s25 = sadd.s32 1, %s5523_s18   ;;  %s29_s13 = sadd.s32 1, %s5519_s17 }
  0x56   : > { %s26_s12 = ssub.s32 %s5523_s18, %s5696_s25  ;;  %p36_p8 = scmp.ne.s32.totalorder %s5519_s17, %s5515_s16 }
  0x57   : > { %p27_p4 = scmp.eq.s32.totalorder %s26_s12, 0  ;;  %p37_p13 = scmp.eq.s32.totalorder %s5523_s18, 0 }
  0x58   : > { %p5251_p6 = scmp.lt.s32.totalorder %s5523_s18, 2  ;;  %p7153_p3 = scmp.eq.s32.totalorder %s5585_s19, 1 }
  0x59   : > { %s5706_s14 = scalar_select %p27_p4, %s5519_s17, %s29_s13  }
  0x5a   : > { %p38_p10 = por %p37_p13, %p36_p8  ;;  %p5710_p5 = por %p7153_p3, %p36_p8 }
  0x5b   : > { %s192_s26 = sand.u32 1, %s5519_s17   ;;  %s5211_s24 = smul.u32 2752, %s5523_s18 }
  0x5c   : > { %s5210_s30 = smul.u32 172, %s192_s26  ;;  %p5721_p11 = pnand %p5251_p6, %p38_p10 }
  0x5d   : > { %s5719_s5 = scalar_lea.hbm %s7109_s0, %s5211_s24  ;;  %s5727_s28 = scalar_lea.sflag [#allocation3], %s192_s26 }
  0x5e   : > { %s196_s7 = scalar_lea.vmem [#allocation2], %s5210_s30  ;;  %s5419_s10 = scalar_lea.hbm %s5719_s5, 2752 }
  0x5f   : > { %s203_s8 = sshll.u32 %s196_s7, 4  ;;  %p5420_p7 = scmp.ne.s32.totalorder %s5719_s5, %s5419_s10  ;;  %s5725_s8 = int_to_ptr.vmem [resolvable:$true] %s203_s8 }
  0x60   : > { %p5421_p9 = pneg %p5721_p11  ;;  %s5424_s12 = scalar_lea.hbm %s7109_s0, 5504 }
  0x61   : > { %p5425_p2 = scmp.lt.u32.totalorder %s5719_s5, %s7109_s0  ;;  %p5426_p1 = scmp.lt.u32.totalorder %s5424_s12, %s5419_s10 }
  0x62   : > { %p5422_p12 = pnand %p5421_p9, %p5420_p7  ;;  %p5428_p8 = scmp.lt.u32.totalorder %s5419_s10, %s5719_s5 }
  0x63   : > { %p5427_p4 = por %p5426_p1, %p5425_p2 }
  0x64   : > { %p5423_p0 = pneg %p5422_p12 }
  0x65   : > { %p5429_p13 = por %p5428_p8, %p5427_p4 }
  0x67   : > { %p5430_p6 = pnand %p5429_p13, %p5423_p0 }
  0x69   : > { %5433 = shalt.err (!%p5430_p6)
}
  0x6a   : > { %s5434_s26 = scalar_lea.vmem %s5725_s8, 2752  ;;  %s5532_s30 = smov [#allocation2]  }
  0x6b   : > { %p5435_p10 = scmp.ne.s32.totalorder %s5725_s8, %s5434_s26  ;;  %s5439_s27 = sshll.u32 %s5532_s30, 4  ;;  %s5440_s27 = int_to_ptr.vmem [resolvable:$false] %s5439_s27 }
  0x6c   : > { %s5441_s29 = scalar_lea.vmem %s5440_s27, 5504  ;;  %p5442_p12 = scmp.lt.s32.totalorder %s5725_s8, %s5440_s27 }
  0x6d   : > { %p5437_p3 = pnand %p5435_p10, %p5421_p9  ;;  %p5443_p2 = scmp.lt.s32.totalorder %s5441_s29, %s5434_s26 }
  0x6f   : > { %p5438_p7 = pneg %p5437_p3  ;;  %p5444_p1 = por %p5443_p2, %p5442_p12 }
  0x71   : > { %p5445_p4 = pnand %p5444_p1, %p5438_p7 }
  0x73   : > { %5448 = shalt.err (!%p5445_p4)
}
  0x74   : > { %s5533_s7 = smov 64   ;;  %s5534_s10 = smov 4  }
  0x75   : > { %5243 = dma.hbm_to_vmem [thread:$0]  (!%p5721_p11), %s5719_s5, 2752, %s5725_s8, %s5727_s28, %s5533_s7, %s5533_s7, %s5534_s10  }
  0x76   : > { %p7156_p9 = scmp.ne.s32.totalorder %s7150_s23, 0 }
  0x78   : > { %215 = sbr.rel (%p7156_p9) target bundleno = 763 (0x2fb), region = 36 }
  0x7f   : > { %s5758_s9 = sand.u32 1, %s5515_s16   ;;  %p7157_p0 = scmp.ne.s32.totalorder %s7148_s21, 0 }
  0x80   : > { %s5212_s11 = smul.u32 172, %s5758_s9  ;;  %s218_s12 = scalar_lea.sflag [#allocation3], %s5758_s9 }
  0x82   : > { %s5764_s13 = scalar_lea.vmem [#allocation2], %s5212_s11 }
  0x83   : > { %5494 = dma.done.wait (%p7157_p0), %s218_s12, 2752  }
  0x84   : > { %5496 = vsyncadd (%p7157_p0), %s218_s12, 4294964544  ;;  %p7158_p11 = scmp.eq.s32.totalorder %s5585_s19, 0 }
  0x86   : > { %5498 = dma.done.wait (%p7158_p11), [#allocation6], 304   ;;  %p7159_p8 = pmov %p7158_p11 }
  0x88   : > { %5500 = vsyncadd (%p7159_p8), [#allocation6], 4294966992  ;;  %p7160_p13 = pmov %p7159_p8 }
  0x89   : > { %p7161_p6 = pmov %p7159_p8 }
  0x8a   : > { %5502 = dma.done.wait (%p7160_p13), [#allocation9], 4608  }
  0x8b   : > { %5504 = vsyncadd (%p7161_p6), [#allocation9], 4294962688  ;;  %vm600_vm0 = vcmask 1041408   ;;  %vm396_vm1 = vsmask.f32 7424  ;;  %v5790_v4 = vld [vmem:[%s5764_s13] sm:$0xff]  }
  0x8c   : > { %v5778_v0 = vld [vmem:[#allocation5 + $0x8] sm:$0x3]  ;;  %v302_v1 = vld [vmem:[#allocation5 + $0x2] sm:$0x3]  ;;  %vm1543_vm2 = vsmask.f32 6400 }
  0x8d   : > { %5204 = vmatprep.subr.msk.bf16.mxu0 %vm600_vm0, %v5778_v0  ;;  %5200 = vmatprep.subr.msk.bf16.mxu1 %vm600_vm0, %v302_v1  ;;  %v5785_v2 = vsel %vm600_vm0, %v5778_v0, 0  ;;  %v602_v3 = vsel %vm600_vm0, %v302_v1, 0  ;;  %v5793_v5 = vld [vmem:[%s5764_s13 + $0x8] sm:$0xff]   ;;  %vm545_vm3 = vcmask 31744   ;;  %v5796_v6 = vld [vmem:[%s5764_s13 + $0x10] sm:$0xff]   ;;  %v398_v7 = vshrl.u32 %v5790_v4, 16 }
  0x8e   : > { %7162 = vst [vmem:[#allocation15_spill] sm:$0xff] %v5785_v2  ;;  %4721 = vmatpush3.bf16.msra.mxu0 %v5785_v2  ;;  %4569 = vmatpush3.bf16.msra.mxu1 %v602_v3  ;;  %v400_v8 = vshll.u32 %v5790_v4, 16  ;;  %v405_v9 = vshll.u32 %v5793_v5, 16  ;;  %v409_v10 = vshrl.u32 %v5793_v5, 16  ;;  %v1900_v11 = vld [vmem:[#allocation5 + $0xa] sm:$0x3] }
  0x8f   : > { %v5803_v12 = vshll.u32 %v5796_v6, 16  ;;  %v5806_v13 = vshrl.u32 %v5796_v6, 16  ;;  %5206 = vmatprep.subr.msk.bf16.mxu0 %vm600_vm0, %v1900_v11  ;;  %v5810_v18 = vld [vmem:[%s5764_s13 + $0x18] sm:$0xff]   ;;  %v5813_v19 = vld [vmem:[%s5764_s13 + $0x20] sm:$0xff]   ;;  %v1994_v23 = vsel %vm600_vm0, %v1900_v11, 0  ;;  %v5824_v29 = vld [vmem:[%s5764_s13 + $0x28] sm:$0xff]  }
  0x90   : > { %v402_v14 = vrot.slane %v400_v8, 1  ;;  %v407_v15 = vrot.slane %v405_v9, 1  ;;  %v1544_v16 = vrot.slane %v409_v10, 1  ;;  %v1545_v17 = vrot.slane %v405_v9, 2  ;;  %v300_v24 = vld [vmem:[#allocation5] sm:$0x3] }
  0x91   : > { %v1547_v20 = vrot.slane %v5806_v13, 1  ;;  %v1548_v21 = vrot.slane %v5803_v12, 2  ;;  %v415_v22 = vrot.slane %v5803_v12, 1  ;;  %v5820_v28 = vshll.u32 %v5810_v18, 16  ;;  %5201 = vmatprep.subr.msk.bf16.mxu1 %vm600_vm0, %v300_v24  ;;  %v5845_v42 = vld [vmem:[%s5764_s13 + $0x30] sm:$0xff]   ;;  %v5862_v51 = vld [vmem:[%s5764_s13 + $0x38] sm:$0xff]  }
  0x92   : > { %v403_v25 = vor.u32 %v402_v14, %v398_v7  ;;  %v411_v26 = vor.u32 %v409_v10, %v407_v15  ;;  %v1546_v27 = vor.u32 %v1545_v17, %v1544_v16  ;;  %v5827_v31 = vshrl.u32 %v5810_v18, 16  ;;  %v5880_v63 = vld [vmem:[%s5764_s13 + $0x40] sm:$0xff]   ;;  %s6362_s21 = scalar_lea.vmem [#allocation10], %s5212_s11  ;;  %s5213_s23 = smul.u32 2752, %s5585_s19 }
  0x93   : > { %v1549_v30 = vor.u32 %v1548_v21, %v1547_v20  ;;  %v419_v32 = vor.u32 %v5806_v13, %v415_v22  ;;  %v5831_v33 = vshll.u32 %v5813_v19, 16  ;;  %v1552_v36 = vrot.slane %v5820_v28, 2  ;;  %v5891_v11 = vld [vmem:[#allocation5 + $0xc] sm:$0x3]  ;;  %s4023_s5 = sshll.u32 %s6362_s21, 4  ;;  %s4010_s19 = scalar_lea.sflag [#allocation4], %s5758_s9  ;;  %s7062_s5 = int_to_ptr.vmem [resolvable:$true] %s4023_s5 }
  0x94   : > { %v408_v34 = vsel %vm396_vm1, %v403_v25, %v407_v15  ;;  %v416_v35 = vsel %vm396_vm1, %v411_v26, %v415_v22  ;;  %v423_v37 = vrot.slane %v5820_v28, 1  ;;  %v1551_v39 = vrot.slane %v5827_v31, 1  ;;  %v5895_v15 = vld [vmem:[%s5764_s13 + $0x48] sm:$0xff]   ;;  %s7059_s28 = scalar_lea.hbm %s7113_s4, %s5213_s23  ;;  %s5449_s24 = scalar_lea.vmem %s7062_s5, 2752 }
  0x95   : > { %4570 = vmatprep.mubr.msk.bf16.mxu1 %vm545_vm3, %v408_v34  ;;  %v1550_v38 = vsel %vm1543_vm2, %v1546_v27, %v1549_v30  ;;  %v5841_v40 = vshrl.u32 %v5813_v19, 16  ;;  %v1556_v41 = vrot.slane %v5831_v33, 2  ;;  %v431_v45 = vrot.slane %v5831_v33, 1  ;;  %p5450_p10 = scmp.ne.s32.totalorder %s7062_s5, %s5449_s24  ;;  %s5536_s26 = smov [#allocation10]  }
  0x96   : > { %4722 = vmatprep.mubr.msk.bf16.mxu0 %vm545_vm3, %v1550_v38  ;;  %4571 = vmatmul.mubr.msk.bf16.vlgmr.msra.gmra.mrb[0].mxu1 %vm545_vm3, %v416_v35  ;;  %v424_v43 = vsel %vm396_vm1, %v419_v32, %v423_v37  ;;  %v427_v44 = vor.u32 %v5827_v31, %v423_v37  ;;  %v818_v46 = vsel %vm600_vm0, %v300_v24, 0  ;;  %v1553_v47 = vor.u32 %v1552_v36, %v1551_v39  ;;  %v5917_v32 = vld [vmem:[%s5764_s13 + $0x50] sm:$0xff]   ;;  %s5453_s30 = sshll.u32 %s5536_s26, 4  ;;  %s5454_s30 = int_to_ptr.vmem [resolvable:$false] %s5453_s30 }
  0x97   : > { %4574 = vmatprep.mubr.msk.bf16.mxu1 %vm545_vm3, %v424_v43  ;;  %v1555_v48 = vrot.slane %v5841_v40, 1  ;;  %4607 = vmatpush3.bf16.msra.mxu1 %v818_v46  ;;  %v5856_v49 = vshll.u32 %v5824_v29, 16  ;;  %v5859_v50 = vshrl.u32 %v5824_v29, 16  ;;  %v435_v52 = vor.u32 %v5841_v40, %v431_v45  ;;  %v5938_v46 = vld [vmem:[#allocation5 + $0x4] sm:$0x3]  ;;  %p5451_p3 = pnand %p5450_p10, %p5710_p5  ;;  %s5455_s27 = scalar_lea.vmem %s5454_s30, 5504 }
  0x98   : > { %v5866_v53 = vshll.u32 %v5845_v42, 16  ;;  %v5869_v54 = vshrl.u32 %v5845_v42, 16  ;;  %v1554_v55 = vsel %vm1543_vm2, %v1549_v30, %v1553_v47  ;;  %v432_v59 = vsel %vm396_vm1, %v427_v44, %v431_v45  ;;  %5202 = vmatprep.subr.msk.bf16.mxu1 %vm600_vm0, %v5938_v46  ;;  %p5456_p12 = scmp.lt.s32.totalorder %s7062_s5, %s5454_s30  ;;  %p5457_p2 = scmp.lt.s32.totalorder %s5455_s27, %s5449_s24 }
  0x99   : > { %v1557_v56 = vor.u32 %v1556_v41, %v1555_v48  ;;  %v1559_v57 = vrot.slane %v5859_v50, 1  ;;  %v1560_v58 = vrot.slane %v5856_v49, 2  ;;  %4723 = vmatmul.mubr.msk.bf16.vlgmr.msra.gmra.mrb[0].mxu0 %vm545_vm3, %v1554_v55  ;;  %v439_v60 = vrot.slane %v5856_v49, 1  ;;  %p5452_p7 = pneg %p5451_p3 }
  0x9a   : > { %v1563_v61 = vrot.slane %v5869_v54, 1  ;;  %v1564_v62 = vrot.slane %v5866_v53, 2  ;;  %4759 = vmatpush3.bf16.msra.mxu0 %v1994_v23  ;;  %v5884_v7 = vshll.u32 %v5862_v51, 16  ;;  %v5887_v8 = vshrl.u32 %v5862_v51, 16  ;;  %p5458_p1 = por %p5457_p2, %p5456_p12 }
  0x9b   : > { %v1558_v1 = vsel %vm1543_vm2, %v1553_v47, %v1557_v56  ;;  %v1561_v3 = vor.u32 %v1560_v58, %v1559_v57  ;;  %v440_v9 = vsel %vm396_vm1, %v435_v52, %v439_v60  ;;  %v447_v14 = vrot.slane %v5866_v53, 1  ;;  %5207 = vmatprep.subr.msk.bf16.mxu0 %vm600_vm0, %v5891_v11 }
  0x9c   : > { %4726 = vmatprep.mubr.msk.bf16.mxu0 %vm545_vm3, %v1558_v1  ;;  %v1565_v10 = vor.u32 %v1564_v62, %v1563_v61  ;;  %v443_v16 = vor.u32 %v5859_v50, %v439_v60  ;;  %v5902_v17 = vshll.u32 %v5880_v63, 16  ;;  %v5905_v20 = vshrl.u32 %v5880_v63, 16  ;;  %p5459_p4 = pnand %p5458_p1, %p5452_p7 }
  0x9d   : > { %v1562_v21 = vsel %vm1543_vm2, %v1557_v56, %v1561_v3  ;;  %v1567_v22 = vrot.slane %v5887_v8, 1  ;;  %v1568_v23 = vrot.slane %v5884_v7, 2  ;;  %v451_v24 = vor.u32 %v5869_v54, %v447_v14  ;;  %v5946_v56 = vld [vmem:[%s5764_s13 + $0x58] sm:$0xff]  }
  0x9e   : > { %4575 = vmatmul.mubr.msk.bf16.gmra.mrb[4].mxu1 %vm545_vm3, %v432_v59  ;;  %v1566_v25 = vsel %vm1543_vm2, %v1561_v3, %v1565_v10  ;;  %v455_v26 = vrot.slane %v5884_v7, 1  ;;  %v1571_v27 = vrot.slane %v5905_v20, 1  ;;  %v1572_v30 = vrot.slane %v5902_v17, 2 }
  0x9f   : > { %4578 = vmatprep.mubr.msk.bf16.mxu1 %vm545_vm3, %v440_v9  ;;  %v448_v34 = vsel %vm396_vm1, %v443_v16, %v447_v14  ;;  %v1569_v35 = vor.u32 %v1568_v23, %v1567_v22  ;;  %v5923_v36 = vshll.u32 %v5895_v15, 16  ;;  %v5926_v37 = vshrl.u32 %v5895_v15, 16  ;;  %v5967_v16 = vld [vmem:[%s5764_s13 + $0x60] sm:$0xff]  }
  0xa0   : > { %v456_v38 = vsel %vm396_vm1, %v451_v24, %v455_v26  ;;  %v1573_v39 = vor.u32 %v1572_v30, %v1571_v27  ;;  %v5930_v41 = vshll.u32 %v5917_v32, 16  ;;  %v5933_v43 = vshrl.u32 %v5917_v32, 16  ;;  %v5978_v30 = vld [vmem:[%s5764_s13 + $0x68] sm:$0xff]  }
  0xa1   : > { %4727 = vmatmul.mubr.msk.bf16.gmra.mrb[4].mxu0 %vm545_vm3, %v1562_v21  ;;  %v459_v44 = vor.u32 %v5887_v8, %v455_v26  ;;  %v463_v45 = vrot.slane %v5902_v17, 1  ;;  %v1570_v47 = vsel %vm1543_vm2, %v1565_v10, %v1569_v35  ;;  %v1575_v48 = vrot.slane %v5926_v37, 1 }
  0xa2   : > { %4730 = vmatprep.mubr.msk.bf16.mxu0 %vm545_vm3, %v1566_v25  ;;  %v1576_v52 = vrot.slane %v5923_v36, 2  ;;  %v471_v55 = vrot.slane %v5923_v36, 1  ;;  %v1574_v57 = vsel %vm1543_vm2, %v1569_v35, %v1573_v39  ;;  %v1579_v59 = vrot.slane %v5933_v43, 1 }
  0xa3   : > { %v467_v58 = vor.u32 %v5905_v20, %v463_v45  ;;  %v1580_v60 = vrot.slane %v5930_v41, 2  ;;  %v464_v61 = vsel %vm396_vm1, %v459_v44, %v463_v45  ;;  %v5958_v1 = vshll.u32 %v5946_v56, 16 }
  0xa4   : > { %v1577_v62 = vor.u32 %v1576_v52, %v1575_v48  ;;  %v5961_v3 = vshrl.u32 %v5946_v56, 16  ;;  %v479_v14 = vrot.slane %v5930_v41, 1  ;;  %v475_v22 = vor.u32 %v5926_v37, %v471_v55 }
  0xa5   : > { %7163 = vst [vmem:[#allocation16_spill] sm:$0xff] %v5958_v1  ;;  %v472_v9 = vsel %vm396_vm1, %v467_v58, %v471_v55  ;;  %v1581_v10 = vor.u32 %v1580_v60, %v1579_v59  ;;  %v1584_v24 = vrot.slane %v5958_v1, 2  ;;  %v487_v27 = vrot.slane %v5958_v1, 1  ;;  %v6000_v55 = vld [vmem:[%s5764_s13 + $0x70] sm:$0xff]  }
  0xa6   : > { %4579 = vmatmul.mubr.msk.bf16.gmra.mrb[8].mxu1 %vm545_vm3, %v448_v34  ;;  %7164 = vst [vmem:[#allocation17_spill] sm:$0xff] %v5961_v3  ;;  %v1578_v21 = vsel %vm1543_vm2, %v1573_v39, %v1577_v62  ;;  %v1583_v23 = vrot.slane %v5961_v3, 1  ;;  %v483_v26 = vor.u32 %v5933_v43, %v479_v14  ;;  %v5982_v34 = vshll.u32 %v5967_v16, 16 }
  0xa7   : > { %4582 = vmatprep.mubr.msk.bf16.mxu1 %vm545_vm3, %v456_v38  ;;  %v1582_v25 = vsel %vm1543_vm2, %v1577_v62, %v1581_v10  ;;  %v480_v35 = vsel %vm396_vm1, %v475_v22, %v479_v14  ;;  %v1902_v39 = vrot.slane %v5793_v5, 2  ;;  %v1903_v45 = vrot.slane %v5796_v6, 2  ;;  %v6010_v62 = vld [vmem:[%s5764_s13 + $0x78] sm:$0xff]  }
  0xa8   : > { %7165 = vst [vmem:[#allocation18_spill] sm:$0xff] %v5982_v34  ;;  %v5986_v38 = vor.u32 %v1584_v24, %v1583_v23  ;;  %v488_v44 = vsel %vm396_vm1, %v483_v26, %v487_v27  ;;  %v5995_v48 = vshll.u32 %v5978_v30, 16  ;;  %vm1901_vm4 = vcmask 1045504  }
  0xa9   : > { %4731 = vmatmul.mubr.msk.bf16.gmra.mrb[8].mxu0 %vm545_vm3, %v1570_v47  ;;  %v5992_v47 = vshrl.u32 %v5967_v16, 16  ;;  %v495_v52 = vrot.slane %v5982_v34, 1  ;;  %v491_v58 = vor.u32 %v5961_v3, %v487_v27  ;;  %v1904_v59 = vsel %vm1901_vm4, %v1902_v39, %v1903_v45  ;;  %v6033_v27 = vld [vmem:[%s5764_s13 + $0x80] sm:$0xff]  }
  0xaa   : > { %4734 = vmatprep.mubr.msk.bf16.mxu0 %vm545_vm3, %v1574_v57  ;;  %7166 = vst [vmem:[#allocation19_spill] sm:$0xff] %v5986_v38  ;;  %7168 = vst [vmem:[#allocation21_spill] sm:$0xff] %v5995_v48  ;;  %v1586_v57 = vsel %vm1543_vm2, %v1581_v10, %v5986_v38  ;;  %v1905_v14 = vrot.slane %v5810_v18, 2  ;;  %v1907_v23 = vrot.slane %v5813_v19, 2  ;;  %v6025_v24 = vshrl.u32 %v6000_v55, 16 }
  0xab   : > { %7167 = vst [vmem:[#allocation20_spill] sm:$0xff] %v5992_v47  ;;  %v499_v60 = vor.u32 %v5992_v47, %v495_v52  ;;  %v496_v10 = vsel %vm396_vm1, %v491_v58, %v495_v52  ;;  %v2228_v52 = vsel %vm600_vm0, %v5891_v11, 0  ;;  %v6062_v11 = vld [vmem:[%s5764_s13 + $0x98] sm:$0xf]  ;;  %v1911_v2 = vrot.slane %v5845_v42, 2 }
  0xac   : > { %7171 = vst [vmem:[#allocation24_spill] sm:$0xff] %v6025_v24  ;;  %v6037_v39 = vsel %vm1901_vm4, %v1903_v45, %v1905_v14  ;;  %v6054_v45 = vld [vmem:[#allocation5 + $0xe] sm:$0x3]  ;;  %v1915_v1 = vrot.slane %v5880_v63, 2  ;;  %vm2445_vm5 = vsmask.f32 5376 }
  0xad   : > { %vm999_vm6 = vcmask 1046528   ;;  %vm3460_vm7 = vcmask 60416   ;;  %vm4007_vm8 = vcmask 59392   ;;  %vm2803_vm9 = vcmask 1044480  }
  0xae   : > { %4583 = vmatmul.mubr.msk.bf16.gmra.mrb[12].mxu1 %vm545_vm3, %v464_v61  ;;  %v503_v61 = vrot.slane %v5995_v48, 1  ;;  %v6078_v48 = vshrl.u32 %v6033_v27, 16  ;;  %vm3463_vm10 = vcmask 58368   ;;  %vm3464_vm11 = vsmask.f32 1280 }
  0xaf   : > { %4586 = vmatprep.mubr.msk.bf16.mxu1 %vm545_vm3, %v472_v9  ;;  %v6014_v9 = vshll.u32 %v6000_v55, 16  ;;  %vm6659_vm12 = vmand %vm3463_vm10, %vm3464_vm11  ;;  %vm3957_vm13 = vcmask 60417   ;;  %vm3958_vm14 = vsmask.f32 7942  ;;  %vm3559_vm15 = vsmask.f32 5392 }
  0xb0   : > { %v504_v22 = vsel %vm396_vm1, %v499_v60, %v503_v61  ;;  %v6049_v60 = vld [vmem:[%s5764_s13 + $0x88] sm:$0xff]   ;;  %7177 = vst [vmem:[#allocation30_spill] sm:$0xff] %v6078_v48 }
  0xb1   : > { %4735 = vmatmul.mubr.msk.bf16.gmra.mrb[12].mxu0 %vm545_vm3, %v1578_v21  ;;  %7169 = vst [vmem:[#allocation22_spill] sm:$0xff] %v6014_v9  ;;  %v6020_v21 = vshrl.u32 %v5978_v30, 16  ;;  %v511_v26 = vrot.slane %v6014_v9, 1 }
  0xb2   : > { %4738 = vmatprep.mubr.msk.bf16.mxu0 %vm545_vm3, %v1582_v25  ;;  %v6028_v25 = vshll.u32 %v6010_v62, 16 }
  0xb3   : > { %7170 = vst [vmem:[#allocation23_spill] sm:$0xff] %v6020_v21  ;;  %v515_v58 = vor.u32 %v6025_v24, %v511_v26 }
  0xb4   : > { %7172 = vst [vmem:[#allocation25_spill] sm:$0xff] %v6028_v25 }
  0xb6   : > { %4587 = vmatmul.mubr.msk.bf16.gmra.mrb[16].mxu1 %vm545_vm3, %v480_v35  ;;  %v296_v35 = vld [vmem:[%s5764_s13 + $0x94] sm:$0xf] }
  0xb7   : > { %4590 = vmatprep.mubr.msk.bf16.mxu1 %vm545_vm3, %v488_v44  ;;  %v507_v44 = vor.u32 %v6020_v21, %v503_v61  ;;  %v6059_v61 = vshll.u32 %v6033_v27, 16 }
  0xb9   : > { %4739 = vmatmul.mubr.msk.bf16.gmra.mrb[16].mxu0 %vm545_vm3, %v1586_v57  ;;  %v6044_v57 = vsel %vm1901_vm4, %v1905_v14, %v1907_v23  ;;  %7174 = vst [vmem:[#allocation27_spill] sm:$0xff] %v6059_v61  ;;  %v298_v14 = vld [vmem:[%s5764_s13 + $0x9c] sm:$0xf] }
  0xba   : > { %4760 = vmatprep.mubr.msk.bf16.mxu0 %vm545_vm3, %v1904_v59  ;;  %v519_v59 = vrot.slane %v6028_v25, 1  ;;  %v6070_v25 = vshrl.u32 %v6010_v62, 16  ;;  %v6073_v9 = vcombine.low %v6062_v11, %v298_v14 }
  0xbc   : > { %7175 = vst [vmem:[#allocation28_spill] sm:$0xff] %v6070_v25  ;;  %7176 = vst [vmem:[#allocation29_spill] sm:$0xff] %v6073_v9  ;;  %v520_v24 = vsel %vm396_vm1, %v515_v58, %v519_v59  ;;  %v527_v58 = vrot.slane %v6059_v61, 1  ;;  %v523_v21 = vor.u32 %v6070_v25, %v519_v59  ;;  %v6113_v59 = vshrl.u32 %v6049_v60, 16 }
  0xbe   : > { %4591 = vmatmul.mubr.msk.bf16.gmra.mrb[20].mxu1 %vm545_vm3, %v496_v10  ;;  %v295_v10 = vld [vmem:[%s5764_s13 + $0x90] sm:$0xf] }
  0xbf   : > { %4594 = vmatprep.mubr.msk.bf16.mxu1 %vm545_vm3, %v504_v22  ;;  %v6052_v38 = vcombine.low %v295_v10, %v296_v35  ;;  %v512_v22 = vsel %vm396_vm1, %v507_v44, %v511_v26  ;;  %v1909_v35 = vrot.slane %v5824_v29, 2  ;;  %v7135_v44 = vrot.slane %v6073_v9, 2 }
  0xc0   : > { %v6096_v34 = vcombine.low %v295_v10, %v295_v10  ;;  %v2446_v10 = vrot.slane %v5806_v13, 2  ;;  %v2454_v9 = vrot.slane %v5831_v33, 3  ;;  %v1917_v33 = vrot.slane %v5895_v15, 2 }
  0xc1   : > { %7173 = vst [vmem:[#allocation26_spill] sm:$0xff] %v6052_v38  ;;  %4761 = vmatmul.mubr.msk.bf16.vlgmr.msra.gmra.mrb[0].mxu0 %vm545_vm3, %v6037_v39  ;;  %v6086_v26 = vrot.slane %v6052_v38, 2  ;;  %v6092_v14 = vsel %vm1901_vm4, %v1907_v23, %v1909_v35  ;;  %v6105_v47 = vsel %vm1901_vm4, %v1909_v35, %v1911_v2  ;;  %v528_v35 = vsel %vm396_vm1, %v523_v21, %v527_v58 }
  0xc2   : > { %4797 = vmatpush3.bf16.msra.mxu0 %v2228_v52  ;;  %4764 = vmatprep.mubr.msk.bf16.mxu0 %vm545_vm3, %v6044_v57  ;;  %v6081_v52 = vshll.u32 %v6049_v60, 16  ;;  %v541_v61 = vshll.u32 %v6096_v34, 16 }
  0xc3   : > { %5208 = vmatprep.subr.msk.bf16.mxu0 %vm600_vm0, %v6054_v45  ;;  %v6102_v38 = vsel %vm1901_vm4, %v6086_v26, %v7135_v44  ;;  %v2447_v44 = vrot.slane %v5803_v12, 3  ;;  %v2453_v12 = vrot.slane %v5841_v40, 2 }
  0xc4   : > { %7178 = vst [vmem:[#allocation31_spill] sm:$0xff] %v6081_v52  ;;  %v535_v23 = vrot.slane %v6081_v52, 1  ;;  %v2449_v52 = vrot.slane %v5827_v31, 2  ;;  %v543_v31 = vrot.slane %v541_v61, 1 }
  0xc5   : > { %v2448_v3 = vor.u32 %v2447_v44, %v2446_v10  ;;  %v2462_v44 = vrot.slane %v5866_v53, 3  ;;  %v2465_v53 = vrot.slane %v5887_v8, 2  ;;  %v1921_v10 = vrot.slane %v5946_v56, 2 }
  0xc6   : > { %4595 = vmatmul.mubr.msk.bf16.gmra.mrb[24].mxu1 %vm545_vm3, %v512_v22  ;;  %v531_v22 = vor.u32 %v6078_v48, %v527_v58  ;;  %v2450_v48 = vrot.slane %v5820_v28, 3  ;;  %v539_v28 = vor.u32 %v6113_v59, %v535_v23 }
  0xc7   : > { %4598 = vmatprep.mubr.msk.bf16.mxu1 %vm545_vm3, %v520_v24  ;;  %v1913_v24 = vrot.slane %v5862_v51, 2 }
  0xc8   : > { %v536_v25 = vsel %vm396_vm1, %v531_v22, %v535_v23  ;;  %v2451_v13 = vor.u32 %v2450_v48, %v2449_v52  ;;  %v2455_v22 = vor.u32 %v2454_v9, %v2453_v12  ;;  %v2458_v9 = vrot.slane %v5856_v49, 3 }
  0xc9   : > { %4765 = vmatmul.mubr.msk.bf16.gmra.mrb[4].mxu0 %vm545_vm3, %v6092_v14  ;;  %v6129_v21 = vsel %vm1901_vm4, %v1911_v2, %v1913_v24  ;;  %v6137_v48 = vsel %vm1901_vm4, %v1913_v24, %v1915_v1  ;;  %v544_v2 = vsel %vm396_vm1, %v539_v28, %v543_v31  ;;  %v2461_v52 = vrot.slane %v5869_v54, 2  ;;  %v6178_v28 = vld [vmem:[#allocation5 + $0x6] sm:$0x3]  ;;  %vm6714_vm1 = vmor %vm3464_vm11, %vm3559_vm15 }
  0xca   : > { %4768 = vmatprep.mubr.msk.bf16.mxu0 %vm545_vm3, %v6105_v47  ;;  %v6134_v58 = vsel %vm2445_vm5, %v2448_v3, %v2451_v13  ;;  %v6140_v40 = vsel %vm2445_vm5, %v2451_v13, %v2455_v22  ;;  %v2457_v3 = vrot.slane %v5859_v50, 2  ;;  %v6155_v23 = vsel %vm1901_vm4, %v1915_v1, %v1917_v33 }
  0xcb   : > { %v2463_v50 = vor.u32 %v2462_v44, %v2461_v52  ;;  %v2466_v1 = vrot.slane %v5884_v7, 3  ;;  %v1092_v13 = vsel %vm600_vm0, %v5938_v46, 0  ;;  %v2469_v31 = vrot.slane %v5905_v20, 2 }
  0xcc   : > { %v2459_v61 = vor.u32 %v2458_v9, %v2457_v3  ;;  %v2473_v20 = vrot.slane %v5926_v37, 2  ;;  %v1925_v3 = vrot.slane %v5978_v30, 2  ;;  %v1927_v9 = vrot.slane %v6000_v55, 2 }
  0xcd   : > { %v2467_v12 = vor.u32 %v2466_v1, %v2465_v53  ;;  %v2478_v52 = vrot.slane %v5930_v41, 3  ;;  %v1931_v53 = vrot.slane %v6033_v27, 2 }
  0xce   : > { %4599 = vmatmul.mubr.msk.bf16.gmra.mrb[28].mxu1 %vm545_vm3, %v528_v35  ;;  %v6160_v24 = vsel %vm2445_vm5, %v2455_v22, %v2459_v61  ;;  %v6168_v54 = vsel %vm2445_vm5, %v2459_v61, %v2463_v50  ;;  %v1923_v35 = vrot.slane %v5967_v16, 2  ;;  %v2470_v22 = vrot.slane %v5902_v17, 3 }
  0xcf   : > { %4602 = vmatprep.mubr.msk.bf16.mxu1 %vm545_vm3, %v536_v25  ;;  %v1919_v25 = vrot.slane %v5917_v32, 2  ;;  %v6185_v7 = vsel %vm2445_vm5, %v2463_v50, %v2467_v12  ;;  %v2477_v61 = vrot.slane %v5933_v43, 2  ;;  %v6223_v50 = vsel %vm1901_vm4, %v1925_v3, %v1927_v9 }
  0xd0   : > { %v2471_v46 = vor.u32 %v2470_v22, %v2469_v31  ;;  %v1929_v43 = vrot.slane %v6010_v62, 2 }
  0xd1   : > { %4769 = vmatmul.mubr.msk.bf16.gmra.mrb[8].mxu0 %vm545_vm3, %v6129_v21  ;;  %v6163_v49 = vsel %vm1901_vm4, %v1917_v33, %v1919_v25  ;;  %v6188_v8 = vsel %vm1901_vm4, %v1919_v25, %v1921_v10  ;;  %v2474_v33 = vrot.slane %v5923_v36, 3  ;;  %v6216_v36 = vsel %vm1901_vm4, %v1923_v35, %v1925_v3 }
  0xd2   : > { %4772 = vmatprep.mubr.msk.bf16.mxu0 %vm545_vm3, %v6137_v48  ;;  %v6198_v17 = vsel %vm2445_vm5, %v2467_v12, %v2471_v46  ;;  %v6220_v37 = vor.u32 %v2478_v52, %v2477_v61  ;;  %v6238_v1 = vsel %vm1901_vm4, %v1927_v9, %v1929_v43  ;;  %v6259_v12 = vcombine.low %v6062_v11, %v6062_v11  ;;  %v6400_v61 = vld [vmem:[%s5764_s13 + $0xa0] ss:$0 sps:$4 sm:$0xff]  }
  0xd3   : > { %v2475_v25 = vor.u32 %v2474_v33, %v2473_v20  ;;  %v2586_v11 = vsel %vm600_vm0, %v6054_v45, 0  ;;  %v6285_v20 = vld [vmem:[#allocation5 + $0x10] sm:$0x3]  ;;  %v1003_v45 = vrot.slane %v5796_v6, 1  ;;  %v3191_v33 = vld [vmem:[#allocation8 + $0x8] sm:$0xff]  ;;  %v1021_v52 = vrot.slane %v5946_v56, 1 }
  0xd4   : > { %v1937_v22 = vrot.slane %v6259_v12, 2 }
  0xd5   : > { %v6213_v44 = vsel %vm2445_vm5, %v2471_v46, %v2475_v25  ;;  %v6227_v41 = vsel %vm2445_vm5, %v2475_v25, %v6220_v37  ;;  %v3195_v25 = vld [vmem:[#allocation8 + $0x28] sm:$0xff] }
  0xd6   : > { %4603 = vmatmul.mubr.msk.bf16.gmra.mrb[32].mxu1 %vm545_vm3, %v544_v2  ;;  %v6193_v2 = vsel %vm1901_vm4, %v1921_v10, %v1923_v35  ;;  %v6243_v10 = vsel %vm1901_vm4, %v1929_v43, %v1931_v53  ;;  %v1933_v35 = vrot.slane %v6049_v60, 2  ;;  %v1938_v46 = vsel %vm1901_vm4, %v6086_v26, %v1937_v22 }
  0xd7   : > { %4608 = vmatprep.mubr.msk.bf16.mxu1 %vm545_vm3, %v5790_v4  ;;  %v1025_v22 = vrot.slane %v5978_v30, 1 }
  0xd8   : > { %v6263_v31 = vsel %vm1901_vm4, %v1933_v35, %v6086_v26 }
  0xd9   : > { %4773 = vmatmul.mubr.msk.bf16.gmra.mrb[12].mxu0 %vm545_vm3, %v6155_v23 }
  0xda   : > { %4776 = vmatprep.mubr.msk.bf16.mxu0 %vm545_vm3, %v6163_v49 }
  0xde   : > { %4609 = vmatmul.mubr.msk.bf16.vlgmr.msra.gmra.mrb[0].mxu1 %vm545_vm3, %v5793_v5 }
  0xdf   : > { %4612 = vmatprep.mubr.msk.bf16.mxu1 %vm545_vm3, %v5796_v6  ;;  %4645 = vmatpush3.bf16.msra.mxu1 %v1092_v13  ;;  %v6253_v13 = vsel %vm1901_vm4, %v1931_v53, %v1933_v35  ;;  %v1007_v6 = vrot.slane %v5813_v19, 1  ;;  %v2219_v53 = vrot.slane %v6400_v61, 2  ;;  %v7179_v35 = vld [vmem:[#allocation29_spill] sm:$0xff] }
  0xe0   : > { %5203 = vmatprep.subr.msk.bf16.mxu1 %vm600_vm0, %v6178_v28 }
  0xe1   : > { %4777 = vmatmul.mubr.msk.bf16.gmra.mrb[16].mxu0 %vm545_vm3, %v6188_v8 }
  0xe2   : > { %4780 = vmatprep.mubr.msk.bf16.mxu0 %vm545_vm3, %v6193_v2 }
  0xe6   : > { %4613 = vmatmul.mubr.msk.bf16.gmra.mrb[4].mxu1 %vm545_vm3, %v5810_v18 }
  0xe7   : > { %4616 = vmatprep.mubr.msk.bf16.mxu1 %vm545_vm3, %v5813_v19  ;;  %v1013_v19 = vrot.slane %v5862_v51, 1 }
  0xe9   : > { %4781 = vmatmul.mubr.msk.bf16.gmra.mrb[20].mxu0 %vm545_vm3, %v6216_v36 }
  0xea   : > { %4784 = vmatprep.mubr.msk.bf16.mxu0 %vm545_vm3, %v6223_v50 }
  0xee   : > { %4617 = vmatmul.mubr.msk.bf16.gmra.mrb[8].mxu1 %vm545_vm3, %v5824_v29 }
  0xef   : > { %4620 = vmatprep.mubr.msk.bf16.mxu1 %vm545_vm3, %v5845_v42 }
  0xf1   : > { %4785 = vmatmul.mubr.msk.bf16.gmra.mrb[24].mxu0 %vm545_vm3, %v6238_v1 }
  0xf2   : > { %4788 = vmatprep.mubr.msk.bf16.mxu0 %vm545_vm3, %v6243_v10 }
  0xf6   : > { %4621 = vmatmul.mubr.msk.bf16.gmra.mrb[12].mxu1 %vm545_vm3, %v5862_v51  ;;  %v1015_v51 = vrot.slane %v5880_v63, 1 }
  0xf7   : > { %4624 = vmatprep.mubr.msk.bf16.mxu1 %vm545_vm3, %v5880_v63  ;;  %v3194_v63 = vld [vmem:[#allocation8 + $0x20] sm:$0xff] }
  0xf8   : > { %v6389_v3 = vsel %vm999_vm6, %v1013_v19, %v1015_v51 }
  0xf9   : > { %4789 = vmatmul.mubr.msk.bf16.gmra.mrb[28].mxu0 %vm545_vm3, %v6253_v13 }
  0xfa   : > { %4792 = vmatprep.mubr.msk.bf16.mxu0 %vm545_vm3, %v6263_v31 }
  0xfe   : > { %4625 = vmatmul.mubr.msk.bf16.gmra.mrb[16].mxu1 %vm545_vm3, %v5895_v15 }
  0xff   : > { %4628 = vmatprep.mubr.msk.bf16.mxu1 %vm545_vm3, %v5917_v32 }
 0x101   : > { %4793 = vmatmul.mubr.msk.bf16.gmra.mrb[32].mxu0 %vm545_vm3, %v1938_v46  ;;  %v3201_v46 = vld [vmem:[#allocation8 + $0x58] sm:$0xff] }
 0x102   : > { %4798 = vmatprep.mubr.msk.bf16.mxu0 %vm545_vm3, %v6037_v39  ;;  %v1000_v39 = vrot.slane %v5790_v4, 1  ;;  %v1005_v4 = vrot.slane %v5810_v18, 1  ;;  %v1009_v18 = vrot.slane %v5824_v29, 1  ;;  %v3192_v29 = vld [vmem:[#allocation8 + $0x10] sm:$0xff] }
 0x104   : > { %v6325_v26 = vsel %vm999_vm6, %v1003_v45, %v1005_v4 }
 0x106   : > { %4629 = vmatmul.mubr.msk.bf16.gmra.mrb[20].mxu1 %vm545_vm3, %v5946_v56 }
 0x107   : > { %4632 = vmatprep.mubr.msk.bf16.mxu1 %vm545_vm3, %v5967_v16 }
 0x109   : > { %4799 = vmatmul.mubr.msk.bf16.vlgmr.msra.gmra.mrb[0].mxu0 %vm545_vm3, %v6044_v57  ;;  %v1001_v57 = vrot.slane %v5793_v5, 1 }
 0x10a   : > { %4835 = vmatpush3.bf16.msra.mxu0 %v2586_v11  ;;  %4802 = vmatprep.mubr.msk.bf16.mxu0 %vm545_vm3, %v6092_v14  ;;  %v1326_v14 = vsel %vm600_vm0, %v6178_v28, 0  ;;  %v5535_v28 = vmov 0   ;;  %v3200_v11 = vld [vmem:[#allocation8 + $0x50] sm:$0xff] }
 0x10b   : > { %5209 = vmatprep.subr.msk.bf16.mxu0 %vm600_vm0, %v6285_v20  ;;  %v6322_v5 = vsel %vm999_vm6, %v1001_v57, %v1003_v45  ;;  %5301 = vset.pattern.permute.xlu1 %v5535_v28  ;;  %3461 = vst.msk [vmem:[%s6362_s21] sm:$0xf] %vm3460_vm7, %v5535_v28  ;;  %3462 = vst.msk [vmem:[%s6362_s21 + $0x4] sm:$0xf] %vm3460_vm7, %v5535_v28  ;;  %v3202_v45 = vld [vmem:[#allocation8 + $0x60] sm:$0xff] }
 0x10c   : > { %4004 = vst.msk [vmem:[%s6362_s21 + $0x9c] sm:$0xf] %vm3460_vm7, %v5535_v28  ;;  %4005 = vst.msk [vmem:[%s6362_s21 + $0xa0] sm:$0xf] %vm3460_vm7, %v5535_v28  ;;  %5300 = vset.pattern.permute.xlu0 %v5535_v28  ;;  %3238 = vperm.xlu1 %5301, %v3192_v29   ;;  %v3205_v29 = vld [vmem:[#allocation8 + $0x78] sm:$0xff] }
 0x10d   : > { %4006 = vst.msk [vmem:[%s6362_s21 + $0xa4] sm:$0xf] %vm3460_vm7, %v5535_v28 }
 0x10e   : > { %4633 = vmatmul.mubr.msk.bf16.gmra.mrb[24].mxu1 %vm545_vm3, %v5978_v30  ;;  %4008 = vst.msk [vmem:[%s6362_s21 + $0xa8] sm:$0x7] %vm4007_vm8, %v5535_v28  ;;  %v3207_v28 = vld [vmem:[#allocation8 + $0x88] sm:$0xff] }
 0x10f   : > { %4636 = vmatprep.mubr.msk.bf16.mxu1 %vm545_vm3, %v6000_v55 }
 0x111   : > { %4803 = vmatmul.mubr.msk.bf16.gmra.mrb[4].mxu0 %vm545_vm3, %v6105_v47  ;;  %v1002_v47 = vsel %vm999_vm6, %v1000_v39, %v1001_v57 }
 0x112   : > { %4806 = vmatprep.mubr.msk.bf16.mxu0 %vm545_vm3, %v6129_v21  ;;  %v6342_v21 = vsel %vm999_vm6, %v1005_v4, %v1007_v6  ;;  %v1027_v4 = vrot.slane %v6000_v55, 1 }
 0x116   : > { %4637 = vmatmul.mubr.msk.bf16.gmra.mrb[28].mxu1 %vm545_vm3, %v6010_v62 }
 0x117   : > { %4640 = vmatprep.mubr.msk.bf16.mxu1 %vm545_vm3, %v6033_v27 }
 0x119   : > { %4807 = vmatmul.mubr.msk.bf16.gmra.mrb[8].mxu0 %vm545_vm3, %v6137_v48  ;;  %v6345_v48 = vsel %vm999_vm6, %v1007_v6, %v1009_v18  ;;  %v3204_v6 = vld [vmem:[#allocation8 + $0x70] sm:$0xff] }
 0x11a   : > { %4810 = vmatprep.mubr.msk.bf16.mxu0 %vm545_vm3, %v6155_v23  ;;  %v3190_v23 = vld [vmem:[#allocation8] sm:$0xff] }
 0x11b   : > { %3228 = vperm.xlu0 %5300, %v3190_v23   ;;  %v3208_v23 = vld [vmem:[#allocation8 + $0x90] sm:$0xff] }
 0x11e   : > { %4641 = vmatmul.mubr.msk.bf16.gmra.mrb[32].mxu1 %vm545_vm3, %v6049_v60 }
 0x11f   : > { %4646 = vmatprep.mubr.msk.bf16.mxu1 %vm545_vm3, %v1002_v47  ;;  %3233 = vperm.xlu0 %5300, %v3191_v33   ;;  %v3203_v47 = vld [vmem:[#allocation8 + $0x68] sm:$0xff]  ;;  %v3209_v33 = vld [vmem:[#allocation8 + $0x98] sm:$0xff] }
 0x121   : > { %4811 = vmatmul.mubr.msk.bf16.gmra.mrb[12].mxu0 %vm545_vm3, %v6163_v49 }
 0x122   : > { %4814 = vmatprep.mubr.msk.bf16.mxu0 %vm545_vm3, %v6188_v8  ;;  %v1017_v8 = vrot.slane %v5895_v15, 1  ;;  %v1019_v15 = vrot.slane %v5917_v32, 1 }
 0x123   : > { %3248 = vperm.xlu0 %5300, %v3194_v63   ;;  %v7182_v63 = vld [vmem:[#allocation16_spill] sm:$0xff] }
 0x124   : > { %v6392_v9 = vsel %vm999_vm6, %v1015_v51, %v1017_v8  ;;  %v6408_v43 = vsel %vm999_vm6, %v1017_v8, %v1019_v15  ;;  %v6412_v32 = vsel %vm999_vm6, %v1019_v15, %v1021_v52  ;;  %v2482_v15 = vrot.slane %v7182_v63, 3  ;;  %v3221_v63 = vld [vmem:[#allocation8 + $0xf8] sm:$0xff] }
 0x126   : > { %4647 = vmatmul.mubr.msk.bf16.vlgmr.msra.gmra.mrb[0].mxu1 %vm545_vm3, %v6322_v5 }
 0x127   : > { %4650 = vmatprep.mubr.msk.bf16.mxu1 %vm545_vm3, %v6325_v26  ;;  %4683 = vmatpush3.bf16.msra.mxu1 %v1326_v14  ;;  %v1029_v14 = vrot.slane %v6010_v62, 1 }
 0x128   : > { %5205 = vmatprep.subr.msk.bf16.mxu1 %vm600_vm0, %v5778_v0  ;;  %v1011_v0 = vrot.slane %v5845_v42, 1 }
 0x129   : > { %4815 = vmatmul.mubr.msk.bf16.gmra.mrb[16].mxu0 %vm545_vm3, %v6193_v2  ;;  %v3193_v2 = vld [vmem:[#allocation8 + $0x18] sm:$0xff] }
 0x12a   : > { %4818 = vmatprep.mubr.msk.bf16.mxu0 %vm545_vm3, %v6216_v36  ;;  %v6358_v49 = vsel %vm999_vm6, %v1009_v18, %v1011_v0  ;;  %v6376_v42 = vsel %vm999_vm6, %v1011_v0, %v1013_v19  ;;  %3243 = vperm.xlu1 %5301, %v3193_v2   ;;  %v3197_v36 = vld [vmem:[#allocation8 + $0x38] sm:$0xff]  ;;  %v6445_v0 = vsel %vm999_vm6, %v1025_v22, %v1027_v4  ;;  %v3210_v2 = vld [vmem:[#allocation8 + $0xa0] sm:$0xff] }
 0x12b   : > { %v3225_v18 = vld [vmem:[#allocation8 + $0x118] sm:$0xff]  ;;  %v6448_v19 = vsel %vm999_vm6, %v1027_v4, %v1029_v14 }
 0x12e   : > { %4651 = vmatmul.mubr.msk.bf16.gmra.mrb[4].mxu1 %vm545_vm3, %v6342_v21  ;;  %3253 = vperm.xlu1 %5301, %v3195_v25  }
 0x12f   : > { %4654 = vmatprep.mubr.msk.bf16.mxu1 %vm545_vm3, %v6345_v48 }
 0x131   : > { %4819 = vmatmul.mubr.msk.bf16.gmra.mrb[20].mxu0 %vm545_vm3, %v6223_v50  ;;  %v3196_v50 = vld [vmem:[#allocation8 + $0x30] sm:$0xff] }
 0x132   : > { %4822 = vmatprep.mubr.msk.bf16.mxu0 %vm545_vm3, %v6238_v1  ;;  %3263 = vperm.xlu1 %5301, %v3197_v36   ;;  %v3199_v1 = vld [vmem:[#allocation8 + $0x48] sm:$0xff] }
 0x133   : > { %3258 = vperm.xlu0 %5300, %v3196_v50   ;;  %v3211_v36 = vld [vmem:[#allocation8 + $0xa8] sm:$0xff] }
 0x136   : > { %4655 = vmatmul.mubr.msk.bf16.gmra.mrb[8].mxu1 %vm545_vm3, %v6358_v49  ;;  %3273 = vperm.xlu1 %5301, %v3199_v1   ;;  %v3213_v1 = vld [vmem:[#allocation8 + $0xb8] sm:$0xff] }
 0x137   : > { %4658 = vmatprep.mubr.msk.bf16.mxu1 %vm545_vm3, %v6376_v42 }
 0x139   : > { %4823 = vmatmul.mubr.msk.bf16.gmra.mrb[24].mxu0 %vm545_vm3, %v6243_v10  ;;  %v3198_v10 = vld [vmem:[#allocation8 + $0x40] sm:$0xff] }
 0x13a   : > { %4826 = vmatprep.mubr.msk.bf16.mxu0 %vm545_vm3, %v6253_v13  ;;  %v7180_v13 = vrot.slane %v7179_v35, 2  ;;  %3268 = vperm.xlu0 %5300, %v3198_v10   ;;  %v7183_v10 = vld [vmem:[#allocation20_spill] sm:$0xff] }
 0x13b   : > { %3283 = vperm.xlu1 %5301, %v3201_v46   ;;  %v7186_v46 = vld [vmem:[#allocation21_spill] sm:$0xff] }
 0x13e   : > { %4659 = vmatmul.mubr.msk.bf16.gmra.mrb[12].mxu1 %vm545_vm3, %v6389_v3  ;;  %3278 = vperm.xlu0 %5300, %v3200_v11   ;;  %v2490_v11 = vrot.slane %v7186_v46, 3 }
 0x13f   : > { %4662 = vmatprep.mubr.msk.bf16.mxu1 %vm545_vm3, %v6392_v9  ;;  %3293 = vperm.xlu1 %5301, %v3203_v47   ;;  %v3216_v47 = vld [vmem:[#allocation8 + $0xd0] sm:$0xff] }
 0x141   : > { %4827 = vmatmul.mubr.msk.bf16.gmra.mrb[28].mxu0 %vm545_vm3, %v6263_v31  ;;  %v2220_v31 = vsel %vm1901_vm4, %v7180_v13, %v2219_v53  ;;  %v2485_v13 = vrot.slane %v7183_v10, 2 }
 0x142   : > { %4830 = vmatprep.mubr.msk.bf16.mxu0 %vm545_vm3, %v6102_v38  ;;  %v1023_v38 = vrot.slane %v5967_v16, 1  ;;  %3288 = vperm.xlu0 %5300, %v3202_v45   ;;  %v3215_v45 = vld [vmem:[#allocation8 + $0xc8] sm:$0xff] }
 0x143   : > { %3298 = vperm.xlu1 %5301, %v3204_v6   ;;  %v7187_v6 = vld [vmem:[#allocation15_spill] sm:$0xff] }
 0x144   : > { %v6427_v39 = vsel %vm999_vm6, %v1021_v52, %v1023_v38  ;;  %v6430_v57 = vsel %vm999_vm6, %v1023_v38, %v1025_v22  ;;  %v3212_v52 = vld [vmem:[#allocation8 + $0xb0] sm:$0xff]  ;;  %v7185_v38 = vld [vmem:[#allocation23_spill] sm:$0xff] }
 0x145   : > { %v2489_v22 = vrot.slane %v7185_v38, 2 }
 0x146   : > { %4663 = vmatmul.mubr.msk.bf16.gmra.mrb[16].mxu1 %vm545_vm3, %v6408_v43  ;;  %3403 = vperm.xlu0 %5300, %v3225_v18   ;;  %v7188_v18 = vld [vmem:[#allocation24_spill] sm:$0xff] }
 0x147   : > { %4666 = vmatprep.mubr.msk.bf16.mxu1 %vm545_vm3, %v6412_v32  ;;  %v2491_v4 = vor.u32 %v2490_v11, %v2489_v22  ;;  %v3223_v22 = vld [vmem:[#allocation8 + $0x108] sm:$0xff] }
 0x149   : > { %4831 = vmatmul.mubr.msk.bf16.gmra.mrb[32].mxu0 %vm545_vm3, %v2220_v31  ;;  %v7184_v31 = vld [vmem:[#allocation18_spill] sm:$0xff] }
 0x14a   : > { %4836 = vmatprep.mubr.msk.bf16.mxu0 %vm545_vm3, %v6134_v58  ;;  %v2896_v58 = vsel %vm600_vm0, %v6285_v20, 0  ;;  %v3206_v20 = vld [vmem:[#allocation8 + $0x80] sm:$0xff]  ;;  %3303 = vperm.xlu0 %5300, %v3205_v29   ;;  %vm6707_vm0 = vmand %vm3957_vm13, %vm3958_vm14 }
 0x14b   : > { %3308 = vperm.xlu1 %5301, %v3206_v20   ;;  %v7189_v20 = vld [vmem:[#allocation22_spill] sm:$0xff] }
 0x14c   : > { %v2494_v29 = vrot.slane %v7189_v20, 3 }
 0x14e   : > { %4667 = vmatmul.mubr.msk.bf16.gmra.mrb[20].mxu1 %vm545_vm3, %v6427_v39  ;;  %3313 = vperm.xlu0 %5300, %v3207_v28  }
 0x14f   : > { %4670 = vmatprep.mubr.msk.bf16.mxu1 %vm545_vm3, %v6430_v57  ;;  %3318 = vperm.xlu1 %5301, %v3208_v23   ;;  %v7190_v23 = vld [vmem:[#allocation28_spill] sm:$0xff] }
 0x150   : > { %v2497_v28 = vrot.slane %v7190_v23, 2 }
 0x151   : > { %4837 = vmatmul.mubr.msk.bf16.vlgmr.msra.gmra.mrb[0].mxu0 %vm545_vm3, %v6140_v40  ;;  %v1031_v40 = vrot.slane %v6033_v27, 1 }
 0x152   : > { %4873 = vmatpush3.bf16.msra.mxu0 %v2896_v58  ;;  %4840 = vmatprep.mubr.msk.bf16.mxu0 %vm545_vm3, %v6160_v24  ;;  %v6456_v24 = vrot.slane %v6049_v60, 1  ;;  %v3218_v58 = vld [vmem:[#allocation8 + $0xe0] sm:$0xff] }
 0x153   : > { %v6463_v51 = vsel %vm999_vm6, %v1029_v14, %v1031_v40  ;;  %3328 = vperm.xlu1 %5301, %v3210_v2   ;;  %3323 = vperm.xlu0 %5300, %v3209_v33   ;;  %v3217_v14 = vld [vmem:[#allocation8 + $0xd8] sm:$0xff]  ;;  %v7191_v2 = vld [vmem:[#allocation25_spill] sm:$0xff] }
 0x154   : > { %v6467_v8 = vsel %vm999_vm6, %v1031_v40, %v6456_v24  ;;  %v2498_v33 = vrot.slane %v7191_v2, 3 }
 0x156   : > { %4671 = vmatmul.mubr.msk.bf16.gmra.mrb[24].mxu1 %vm545_vm3, %v6445_v0 }
 0x157   : > { %4674 = vmatprep.mubr.msk.bf16.mxu1 %vm545_vm3, %v6448_v19  ;;  %3338 = vperm.xlu1 %5301, %v3212_v52   ;;  %v7192_v52 = vld [vmem:[#allocation30_spill] sm:$0xff] }
 0x158   : > { %3333 = vperm.xlu0 %5300, %v3211_v36   ;;  %v2501_v36 = vrot.slane %v7192_v52, 2 }
 0x159   : > { %4841 = vmatmul.mubr.msk.bf16.gmra.mrb[4].mxu0 %vm545_vm3, %v6168_v54  ;;  %v1035_v54 = vrot.slane %v6096_v34, 1  ;;  %v3214_v34 = vld [vmem:[#allocation8 + $0xc0] sm:$0xff] }
 0x15a   : > { %4844 = vmatprep.mubr.msk.bf16.mxu0 %vm545_vm3, %v6185_v7  ;;  %v7181_v7 = vld [vmem:[#allocation17_spill] sm:$0xff] }
 0x15b   : > { %v2481_v25 = vrot.slane %v7181_v7, 2  ;;  %v1036_v50 = vsel %vm999_vm6, %v6456_v24, %v1035_v54  ;;  %3348 = vperm.xlu1 %5301, %v3214_v34   ;;  %v3219_v54 = vld [vmem:[#allocation8 + $0xe8] sm:$0xff]  ;;  %v2499_v7 = vor.u32 %v2498_v33, %v2497_v28 }
 0x15c   : > { %3343 = vperm.xlu0 %5300, %v3213_v1   ;;  %v2505_v1 = vrot.slane %v6113_v59, 2 }
 0x15d   : > { %v2483_v53 = vor.u32 %v2482_v15, %v2481_v25  ;;  %v3222_v25 = vld [vmem:[#allocation8 + $0x100] sm:$0xff] }
 0x15e   : > { %4675 = vmatmul.mubr.msk.bf16.gmra.mrb[28].mxu1 %vm545_vm3, %v6463_v51 }
 0x15f   : > { %4678 = vmatprep.mubr.msk.bf16.mxu1 %vm545_vm3, %v6467_v8  ;;  %3358 = vperm.xlu1 %5301, %v3216_v47  }
 0x160   : > { %3353 = vperm.xlu0 %5300, %v3215_v45  }
 0x161   : > { %4845 = vmatmul.mubr.msk.bf16.gmra.mrb[8].mxu0 %vm545_vm3, %v6198_v17  ;;  %v2486_v17 = vrot.slane %v7184_v31, 3 }
 0x162   : > { %4848 = vmatprep.mubr.msk.bf16.mxu0 %vm545_vm3, %v6213_v44  ;;  %v2484_v44 = vsel %vm2445_vm5, %v6220_v37, %v2483_v53 }
 0x163   : > { %3368 = vperm.xlu1 %5301, %v3218_v58  }
 0x164   : > { %3363 = vperm.xlu0 %5300, %v3217_v14  }
 0x166   : > { %4679 = vmatmul.mubr.msk.bf16.gmra.mrb[32].mxu1 %vm545_vm3, %v1036_v50  ;;  %v7193_v50 = vld [vmem:[#allocation27_spill] sm:$0xff] }
 0x167   : > { %4684 = vmatprep.mubr.msk.bf16.mxu1 %vm545_vm3, %v6322_v5  ;;  %v2487_v5 = vor.u32 %v2486_v17, %v2485_v13  ;;  %v7194_v13 = vld [vmem:[#allocation31_spill] sm:$0xff] }
 0x168   : > { %3373 = vperm.xlu0 %5300, %v3219_v54   ;;  %v2506_v17 = vrot.slane %v7194_v13, 3 }
 0x169   : > { %4849 = vmatmul.mubr.msk.bf16.gmra.mrb[12].mxu0 %vm545_vm3, %v6227_v41  ;;  %v2488_v37 = vsel %vm2445_vm5, %v2483_v53, %v2487_v5  ;;  %v2493_v41 = vrot.slane %v7188_v18, 2  ;;  %v2492_v40 = vsel %vm2445_vm5, %v2487_v5, %v2491_v4  ;;  %v2502_v53 = vrot.slane %v7193_v50, 3 }
 0x16a   : > { %4852 = vmatprep.mubr.msk.bf16.mxu0 %vm545_vm3, %v2484_v44  ;;  %v3224_v44 = vld [vmem:[#allocation8 + $0x110] sm:$0xff]  ;;  %v2507_v45 = vor.u32 %v2506_v17, %v2505_v1  ;;  %v2514_v5 = vshrl.u32 %v7179_v35, 16  ;;  %v5328_v1 = vld [vmem:[%s5764_s13 + $0x28] sm:$0xff]  }
 0x16b   : > { %v2809_v17 = vrot.slane %v5328_v1, 3 }
 0x16c   : > { %3383 = vperm.xlu0 %5300, %v3221_v63  }
 0x16e   : > { %4685 = vmatmul.mubr.msk.bf16.vlgmr.msra.gmra.mrb[0].mxu1 %vm545_vm3, %v6325_v26  ;;  %v3220_v26 = vld [vmem:[#allocation8 + $0xf0] sm:$0xff] }
 0x16f   : > { %4688 = vmatprep.mubr.msk.bf16.mxu1 %vm545_vm3, %v6342_v21  ;;  %4911 = vmatpush3.bf16.msra.mxu1 %v7187_v6  ;;  %v2495_v21 = vor.u32 %v2494_v29, %v2493_v41  ;;  %v2516_v41 = vrot.slane %v2514_v5, 2 }
 0x170   : > { %3378 = vperm.xlu1 %5301, %v3220_v26   ;;  %3393 = vperm.xlu0 %5300, %v3223_v22  }
 0x171   : > { %4853 = vmatmul.mubr.msk.bf16.gmra.mrb[16].mxu0 %vm545_vm3, %v2488_v37  ;;  %v2496_v15 = vsel %vm2445_vm5, %v2491_v4, %v2495_v21  ;;  %v2500_v34 = vsel %vm2445_vm5, %v2495_v21, %v2499_v7  ;;  %v2517_v4 = vshll.u32 %v7179_v35, 16 }
 0x172   : > { %4856 = vmatprep.mubr.msk.bf16.mxu0 %vm545_vm3, %v2492_v40  ;;  %v2523_v40 = vshrl.u32 %v6400_v61, 16 }
 0x173   : > { %v2519_v29 = vrot.slane %v2517_v4, 3  ;;  %v5331_v4 = vld [vmem:[%s5764_s13 + $0x40] sm:$0xff]  }
 0x174   : > { %3388 = vperm.xlu1 %5301, %v3222_v25   ;;  %v2525_v26 = vrot.slane %v2523_v40, 2  ;;  %v5325_v25 = vld [vmem:[%s5764_s13 + $0x10] sm:$0xff]  }
 0x175   : > { %v2520_v28 = vor.u32 %v2519_v29, %v2516_v41  ;;  %v2804_v63 = vrot.slane %v5325_v25, 3  ;;  %v1317_v29 = vrot.slane %v6259_v12, 1 }
 0x176   : > { %4689 = vmatmul.mubr.msk.bf16.gmra.mrb[4].mxu1 %vm545_vm3, %v6345_v48  ;;  %v2503_v48 = vor.u32 %v2502_v53, %v2501_v36  ;;  %v5327_v53 = vld [vmem:[%s5764_s13 + $0x20] sm:$0xff]  }
 0x177   : > { %4692 = vmatprep.mubr.msk.bf16.mxu1 %vm545_vm3, %v6358_v49  ;;  %v7195_v49 = vld [vmem:[#allocation26_spill] sm:$0xff] }
 0x178   : > { %v1612_v11 = vshrl.u32 %v7195_v49, 16  ;;  %v1615_v47 = vshll.u32 %v7195_v49, 16  ;;  %3398 = vperm.xlu1 %5301, %v3224_v44   ;;  %v2504_v58 = vsel %vm2445_vm5, %v2499_v7, %v2503_v48  ;;  %v2508_v6 = vsel %vm2445_vm5, %v2503_v48, %v2507_v45  ;;  %v5329_v44 = vld [vmem:[%s5764_s13 + $0x30] sm:$0xff]   ;;  %v5330_v48 = vld [vmem:[%s5764_s13 + $0x38] sm:$0xff]  }
 0x179   : > { %4857 = vmatmul.mubr.msk.bf16.gmra.mrb[20].mxu0 %vm545_vm3, %v2496_v15  ;;  %v5326_v15 = vld [vmem:[%s5764_s13 + $0x18] sm:$0xff]   ;;  %v2811_v22 = vrot.slane %v5329_v44, 3  ;;  %v1315_v5 = vrot.slane %v7195_v49, 1 }
 0x17a   : > { %4860 = vmatprep.mubr.msk.bf16.mxu0 %vm545_vm3, %v2500_v34  ;;  %v2509_v14 = vrot.slane %v1612_v11, 2  ;;  %v2510_v37 = vrot.slane %v1615_v47, 3  ;;  %v2807_v34 = vrot.slane %v5327_v53, 3 }
 0x17e   : > { %4693 = vmatmul.mubr.msk.bf16.gmra.mrb[8].mxu1 %vm545_vm3, %v6376_v42  ;;  %v2511_v42 = vor.u32 %v2510_v37, %v2509_v14  ;;  %v1316_v14 = vsel %vm999_vm6, %v6456_v24, %v1315_v5  ;;  %v1318_v24 = vsel %vm999_vm6, %v1315_v5, %v1317_v29 }
 0x17f   : > { %4696 = vmatprep.mubr.msk.bf16.mxu1 %vm545_vm3, %v6389_v3  ;;  %v2526_v3 = vshll.u32 %v6400_v61, 16 }
 0x180   : > { %v2512_v33 = vsel %vm2445_vm5, %v2507_v45, %v2511_v42  ;;  %v2521_v21 = vsel %vm2445_vm5, %v2511_v42, %v2520_v28  ;;  %v2813_v45 = vrot.slane %v5330_v48, 3 }
 0x181   : > { %4861 = vmatmul.mubr.msk.bf16.gmra.mrb[24].mxu0 %vm545_vm3, %v2504_v58  ;;  %v2528_v54 = vrot.slane %v2526_v3, 3  ;;  %v2815_v58 = vrot.slane %v5331_v4, 3  ;;  %v1591_v3 = vrot.slane %v7185_v38, 1 }
 0x182   : > { %4864 = vmatprep.mubr.msk.bf16.mxu0 %vm545_vm3, %v2508_v6  ;;  %v1587_v6 = vrot.slane %v7183_v10, 1  ;;  %v5333_v10 = vld [vmem:[%s5764_s13 + $0x50] sm:$0xff]  }
 0x183   : > { %v2529_v7 = vor.u32 %v2528_v54, %v2525_v26  ;;  %v2816_v41 = vsel %vm2803_vm9, %v2813_v45, %v2815_v58  ;;  %v2821_v26 = vrot.slane %v5946_v56, 3  ;;  %v1595_v54 = vrot.slane %v7188_v18, 1 }
 0x184   : > { %v1599_v18 = vrot.slane %v7190_v23, 1 }
 0x186   : > { %4697 = vmatmul.mubr.msk.bf16.gmra.mrb[12].mxu1 %vm545_vm3, %v6392_v9  ;;  %v2805_v9 = vrot.slane %v5326_v15, 3 }
 0x187   : > { %4700 = vmatprep.mubr.msk.bf16.mxu1 %vm545_vm3, %v6408_v43  ;;  %v2530_v43 = vsel %vm2445_vm5, %v2520_v28, %v2529_v7  ;;  %v7196_v28 = vld [vmem:[#allocation19_spill] sm:$0xff] }
 0x188   : > { %v2806_v36 = vsel %vm2803_vm9, %v2804_v63, %v2805_v9 }
 0x189   : > { %4865 = vmatmul.mubr.msk.bf16.gmra.mrb[28].mxu0 %vm545_vm3, %v2512_v33 }
 0x18a   : > { %4868 = vmatprep.mubr.msk.bf16.mxu0 %vm545_vm3, %v2521_v21  ;;  %v1596_v21 = vrot.slane %v7189_v20, 2  ;;  %v1600_v20 = vrot.slane %v7191_v2, 2  ;;  %v2827_v2 = vrot.slane %v6000_v55, 3 }
 0x18c   : > { %v1597_v63 = vor.u32 %v1596_v21, %v1595_v54 }
 0x18e   : > { %4701 = vmatmul.mubr.msk.bf16.gmra.mrb[16].mxu1 %vm545_vm3, %v6412_v32  ;;  %v2808_v32 = vsel %vm2803_vm9, %v2805_v9, %v2807_v34  ;;  %v2825_v9 = vrot.slane %v5978_v30, 3 }
 0x18f   : > { %4704 = vmatprep.mubr.msk.bf16.mxu1 %vm545_vm3, %v6427_v39  ;;  %v2810_v39 = vsel %vm2803_vm9, %v2807_v34, %v2809_v17  ;;  %v1601_v34 = vor.u32 %v1600_v20, %v1599_v18  ;;  %v3239_v18 = vpop.permute.xlu1 %3238 }
 0x190   : > { %v2828_v44 = vsel %vm2803_vm9, %v2825_v9, %v2827_v2 }
 0x191   : > { %4869 = vmatmul.mubr.msk.bf16.gmra.mrb[32].mxu0 %vm545_vm3, %v2530_v43  ;;  %v1603_v43 = vrot.slane %v7192_v52, 1  ;;  %v1602_v30 = vsel %vm1543_vm2, %v1597_v63, %v1601_v34  ;;  %v1607_v52 = vrot.slane %v6113_v59, 1  ;;  %v1621_v59 = vshrl.u32 %v6259_v12, 16 }
 0x192   : > { %4874 = vmatprep.mubr.msk.bf16.mxu0 %vm545_vm3, %v2806_v36  ;;  %v1604_v36 = vrot.slane %v7193_v50, 2  ;;  %v1608_v50 = vrot.slane %v7194_v13, 2  ;;  %v1624_v13 = vshll.u32 %v6259_v12, 16 }
 0x193   : > { %v1623_v48 = vrot.slane %v1621_v59, 1 }
 0x194   : > { %v1605_v23 = vor.u32 %v1604_v36, %v1603_v43  ;;  %v1609_v55 = vor.u32 %v1608_v50, %v1607_v52 }
 0x196   : > { %4705 = vmatmul.mubr.msk.bf16.gmra.mrb[20].mxu1 %vm545_vm3, %v6430_v57  ;;  %v2812_v57 = vsel %vm2803_vm9, %v2809_v17, %v2811_v22  ;;  %v1606_v1 = vsel %vm1543_vm2, %v1601_v34, %v1605_v23  ;;  %v2829_v17 = vrot.slane %v6010_v62, 3 }
 0x197   : > { %4708 = vmatprep.mubr.msk.bf16.mxu1 %vm545_vm3, %v6445_v0  ;;  %v2814_v0 = vsel %vm2803_vm9, %v2811_v22, %v2813_v45  ;;  %v1626_v45 = vrot.slane %v1624_v13, 2 }
 0x198   : > { %v2830_v22 = vsel %vm2803_vm9, %v2827_v2, %v2829_v17 }
 0x199   : > { %4875 = vmatmul.mubr.msk.bf16.vlgmr.msra.gmra.mrb[0].mxu0 %vm545_vm3, %v2808_v32  ;;  %v1614_v32 = vrot.slane %v1612_v11, 1  ;;  %v1610_v11 = vsel %vm1543_vm2, %v1605_v23, %v1609_v55  ;;  %v1627_v5 = vor.u32 %v1626_v45, %v1623_v48 }
 0x19a   : > { %4878 = vmatprep.mubr.msk.bf16.mxu0 %vm545_vm3, %v2810_v39  ;;  %v1617_v39 = vrot.slane %v1615_v47, 2  ;;  %v2831_v47 = vrot.slane %v6033_v27, 3 }
 0x19c   : > { %v1618_v62 = vor.u32 %v1617_v39, %v1614_v32  ;;  %v2832_v12 = vsel %vm2803_vm9, %v2829_v17, %v2831_v47 }
 0x19e   : > { %4709 = vmatmul.mubr.msk.bf16.gmra.mrb[24].mxu1 %vm545_vm3, %v6448_v19  ;;  %v5332_v19 = vld [vmem:[%s5764_s13 + $0x48] sm:$0xff]   ;;  %v1628_v27 = vsel %vm1543_vm2, %v1618_v62, %v1627_v5 }
 0x19f   : > { %4712 = vmatprep.mubr.msk.bf16.mxu1 %vm545_vm3, %v6463_v51  ;;  %v2817_v37 = vrot.slane %v5332_v19, 3  ;;  %v1588_v51 = vrot.slane %v7184_v31, 2  ;;  %v2819_v31 = vrot.slane %v5333_v10, 3 }
 0x1a1   : > { %4879 = vmatmul.mubr.msk.bf16.gmra.mrb[4].mxu0 %vm545_vm3, %v2812_v57  ;;  %v2818_v42 = vsel %vm2803_vm9, %v2815_v58, %v2817_v37  ;;  %v1589_v40 = vor.u32 %v1588_v51, %v1587_v6  ;;  %v2820_v7 = vsel %vm2803_vm9, %v2817_v37, %v2819_v31  ;;  %v2822_v38 = vsel %vm2803_vm9, %v2819_v31, %v2821_v26 }
 0x1a2   : > { %4882 = vmatprep.mubr.msk.bf16.mxu0 %vm545_vm3, %v2814_v0  ;;  %v1619_v57 = vsel %vm1543_vm2, %v1609_v55, %v1618_v62  ;;  %v2833_v0 = vrot.slane %v6049_v60, 3  ;;  %v2835_v58 = vrot.slane %v7195_v49, 3  ;;  %v2837_v60 = vrot.slane %v7179_v35, 3  ;;  %v3466_v49 = vld [vmem:[%s6362_s21 + $0x8] sm:$0x3] }
 0x1a3   : > { %v1590_v33 = vsel %vm1543_vm2, %v7196_v28, %v1589_v40  ;;  %v2839_v37 = vrot.slane %v6400_v61, 3  ;;  %v3467_v51 = vsel %vm6659_vm12, 0, %v3466_v49 }
 0x1a4   : > { %v2834_v4 = vsel %vm2803_vm9, %v2831_v47, %v2833_v0  ;;  %v2838_v19 = vsel %vm2803_vm9, %v2835_v58, %v2837_v60  ;;  %3468 = vst [vmem:[%s6362_s21 + $0x8] sm:$0x3] %v3467_v51 }
 0x1a5   : > { %v2840_v6 = vsel %vm2803_vm9, %v2837_v60, %v2839_v37 }
 0x1a6   : > { %4713 = vmatmul.mubr.msk.bf16.gmra.mrb[28].mxu1 %vm545_vm3, %v6467_v8  ;;  %v1592_v8 = vrot.slane %v7186_v46, 2  ;;  %v2823_v46 = vrot.slane %v5967_v16, 3 }
 0x1a7   : > { %4716 = vmatprep.mubr.msk.bf16.mxu1 %vm545_vm3, %v1316_v14  ;;  %v2836_v14 = vsel %vm2803_vm9, %v2833_v0, %v2835_v58 }
 0x1a8   : > { %v1593_v25 = vor.u32 %v1592_v8, %v1591_v3  ;;  %v2824_v53 = vsel %vm2803_vm9, %v2821_v26, %v2823_v46  ;;  %v2826_v16 = vsel %vm2803_vm9, %v2823_v46, %v2825_v9  ;;  %v3229_v46 = vpop.permute.xlu0 %3228 }
 0x1a9   : > { %4883 = vmatmul.mubr.msk.bf16.gmra.mrb[8].mxu0 %vm545_vm3, %v2816_v41 }
 0x1aa   : > { %4886 = vmatprep.mubr.msk.bf16.mxu0 %vm545_vm3, %v2818_v42  ;;  %v1594_v56 = vsel %vm1543_vm2, %v1589_v40, %v1593_v25  ;;  %v1598_v15 = vsel %vm1543_vm2, %v1593_v25, %v1597_v63 }
 0x1ac   : > { %v3234_v9 = vpop.permute.xlu0 %3233 }
 0x1ae   : > { %4717 = vmatmul.mubr.msk.bf16.gmra.mrb[32].mxu1 %vm545_vm3, %v1318_v24 }
 0x1af   : > { %4742 = vmatprep.mubr.msk.bf16.mxu1 %vm545_vm3, %v1590_v33 }
 0x1b1   : > { %4887 = vmatmul.mubr.msk.bf16.gmra.mrb[12].mxu0 %vm545_vm3, %v2820_v7 }
 0x1b2   : > { %4890 = vmatprep.mubr.msk.bf16.mxu0 %vm545_vm3, %v2822_v38 }
 0x1b6   : > { %4743 = vmatmul.mubr.msk.bf16.vlgmr.msra.gmra.mrb[20].mxu1 %vm545_vm3, %v1594_v56 }
 0x1b7   : > { %4746 = vmatprep.mubr.msk.bf16.mxu1 %vm545_vm3, %v1598_v15  ;;  %v6695_v15 = vld [vmem:[#allocation7] ss:$0 sm:$0xff] }
 0x1b9   : > { %4891 = vmatmul.mubr.msk.bf16.gmra.mrb[16].mxu0 %vm545_vm3, %v2824_v53  ;;  %v3244_v53 = vpop.permute.xlu1 %3243 }
 0x1ba   : > { %4894 = vmatprep.mubr.msk.bf16.mxu0 %vm545_vm3, %v2826_v16 }
 0x1bd   : > { %v6701_v13 = vpop.permute.xlu1 %3253 }
 0x1be   : > { %4747 = vmatmul.mubr.msk.bf16.gmra.mrb[24].mxu1 %vm545_vm3, %v1602_v30 }
 0x1bf   : > { %4750 = vmatprep.mubr.msk.bf16.mxu1 %vm545_vm3, %v1606_v1 }
 0x1c1   : > { %4895 = vmatmul.mubr.msk.bf16.gmra.mrb[20].mxu0 %vm545_vm3, %v2828_v44  ;;  %v3249_v44 = vpop.permute.xlu0 %3248 }
 0x1c2   : > { %4898 = vmatprep.mubr.msk.bf16.mxu0 %vm545_vm3, %v2830_v22 }
 0x1c6   : > { %4751 = vmatmul.mubr.msk.bf16.gmra.mrb[28].mxu1 %vm545_vm3, %v1610_v11 }
 0x1c7   : > { %4754 = vmatprep.mubr.msk.bf16.mxu1 %vm545_vm3, %v1619_v57 }
 0x1c9   : > { %4899 = vmatmul.mubr.msk.bf16.gmra.mrb[24].mxu0 %vm545_vm3, %v2832_v12 }
 0x1ca   : > { %4902 = vmatprep.mubr.msk.bf16.mxu0 %vm545_vm3, %v2834_v4 }
 0x1ce   : > { %4755 = vmatmul.mubr.msk.bf16.gmra.mrb[32].mxu1 %vm545_vm3, %v1628_v27 }
 0x1d1   : > { %4903 = vmatmul.mubr.msk.bf16.gmra.mrb[28].mxu0 %vm545_vm3, %v2836_v14 }
 0x1d2   : > { %4906 = vmatprep.mubr.msk.bf16.mxu0 %vm545_vm3, %v2838_v19 }
 0x1d9   : > { %4907 = vmatmul.mubr.msk.bf16.gmra.mrb[32].mxu0 %vm545_vm3, %v2840_v6 }
 0x241   : > { %v4686_v41 = vpop.f32.mrb[0].mxu1 }
 0x242   : > { %v1362_v29 = vpop.f32.mrb[1].mxu1 }
 0x243   : > { %v4687_v42 = vpop.f32.mrb[2].mxu1 }
 0x244   : > { %v1365_v61 = vpop.f32.mrb[3].mxu1 }
 0x249   : > { %v4690_v40 = vpop.f32.mrb[4].mxu1 }
 0x24a   : > { %v1378_v24 = vpop.f32.mrb[5].mxu1 }
 0x24b   : > { %v6667_v10 = vpop.f32.mrb[6].mxu1 }
 0x24c   : > { %v6669_v31 = vpop.f32.mrb[7].mxu1 }
 0x251   : > { %v6671_v3 = vpop.f32.mrb[8].mxu1 }
 0x252   : > { %v6673_v8 = vpop.f32.mrb[9].mxu1 }
 0x253   : > { %v6675_v28 = vpop.f32.mrb[10].mxu1 }
 0x254   : > { %v6677_v33 = vpop.f32.mrb[11].mxu1 }
 0x259   : > { %v6679_v26 = vpop.f32.mrb[12].mxu1 }
 0x25a   : > { %v6681_v54 = vpop.f32.mrb[13].mxu1 }
 0x25b   : > { %v6683_v21 = vpop.f32.mrb[14].mxu1 }
 0x25c   : > { %v6685_v7 = vpop.f32.mrb[15].mxu1 }
 0x261   : > { %v6687_v25 = vpop.f32.mrb[16].mxu1 }
 0x262   : > { %v6689_v38 = vpop.f32.mrb[17].mxu1 }
 0x263   : > { %v6691_v63 = vpop.f32.mrb[18].mxu1 }
 0x264   : > { %v6693_v56 = vpop.f32.mrb[19].mxu1 }
 0x26c   : > { %v4876_v20 = vpop.f32.mrb[0].mxu0 }
 0x26d   : > { %v4912_v43 = vadd.f32 %v4876_v20, %v4686_v41  ;;  %v2932_v36 = vpop.f32.mrb[1].mxu0  ;;  %v3259_v41 = vpop.permute.xlu0 %3258 }
 0x26e   : > { %v4913_v34 = vadd.f32 %v2932_v36, %v1362_v29  ;;  %v4877_v16 = vpop.f32.mrb[2].mxu0 }
 0x26f   : > { %v3120_v23 = vadd.f32 %v4912_v43, %v6695_v15  ;;  %v4914_v30 = vadd.f32 %v4877_v16, %v4687_v42  ;;  %v2935_v2 = vpop.f32.mrb[3].mxu0 }
 0x270   : > { %v3118_v52 = vadd.f32 %v4913_v34, %v6695_v15  ;;  %v4915_v50 = vadd.f32 %v2935_v2, %v1365_v61 }
 0x271   : > { %v3156_v1 = vmax.f32 %v3120_v23, 0.0  ;;  %v3121_v17 = vadd.f32 %v4914_v30, %v6695_v15 }
 0x272   : > { %v3154_v32 = vmax.f32 %v3118_v52, 0.0  ;;  %v3119_v39 = vadd.f32 %v4915_v50, %v6695_v15 }
 0x273   : > { %v3408_v55 = vmul.f32 %v3239_v18, %v3156_v1  ;;  %v3157_v59 = vmax.f32 %v3121_v17, 0.0 }
 0x274   : > { %v3406_v22 = vmul.f32 %v3229_v46, %v3154_v32  ;;  %v3155_v62 = vmax.f32 %v3119_v39, 0.0  ;;  %v4880_v11 = vpop.f32.mrb[4].mxu0  ;;  %v3264_v46 = vpop.permute.xlu1 %3263 }
 0x275   : > { %v4363_v47 = vpack.c.bf16 %v3408_v55, %v3408_v55  ;;  %v3409_v48 = vmul.f32 %v3244_v53, %v3157_v59  ;;  %v4916_v45 = vadd.f32 %v4880_v11, %v4690_v40  ;;  %v2948_v57 = vpop.f32.mrb[5].mxu0  ;;  %v3960_v53 = vld [vmem:[%s6362_s21 + $0x8] sm:$0xe] }
 0x276   : > { %v4361_v0 = vpack.c.bf16 %v3406_v22, %v3406_v22  ;;  %v3407_v12 = vmul.f32 %v3234_v9, %v3155_v62  ;;  %v4917_v5 = vadd.f32 %v2948_v57, %v1378_v24  ;;  %v4881_v4 = vpop.f32.mrb[6].mxu0  ;;  %v3269_v57 = vpop.permute.xlu0 %3268 }
 0x277   : > { %v3581_v27 = vshrl.u32 %v4363_v47, 16  ;;  %v3584_v58 = vshll.u32 %v4363_v47, 16  ;;  %v4364_v60 = vpack.c.bf16 %v3409_v48, %v3409_v48  ;;  %v3124_v14 = vadd.f32 %v4916_v45, %v6695_v15  ;;  %v2951_v19 = vpop.f32.mrb[7].mxu0 }
 0x278   : > { %v3562_v37 = vshrl.u32 %v4361_v0, 16  ;;  %v3565_v6 = vshll.u32 %v4361_v0, 16  ;;  %v4362_v49 = vpack.c.bf16 %v3407_v12, %v3407_v12  ;;  %v3122_v51 = vadd.f32 %v4917_v5, %v6695_v15 }
 0x279   : > { %v3583_v29 = vrot.slane %v3581_v27, 6  ;;  %v3586_v42 = vrot.slane %v3584_v58, 7  ;;  %v3591_v61 = vshrl.u32 %v4364_v60, 16  ;;  %v3594_v40 = vshll.u32 %v4364_v60, 16 }
 0x27a   : > { %v3564_v24 = vrot.slane %v3562_v37, 6  ;;  %v3567_v18 = vrot.slane %v3565_v6, 7  ;;  %v3571_v20 = vshrl.u32 %v4362_v49, 16  ;;  %v3574_v9 = vshll.u32 %v4362_v49, 16 }
 0x27b   : > { %v3587_v43 = vor.u32 %v3586_v42, %v3583_v29  ;;  %v3593_v34 = vrot.slane %v3591_v61, 6  ;;  %v3596_v16 = vrot.slane %v3594_v40, 7  ;;  %v3160_v23 = vmax.f32 %v3124_v14, 0.0 }
 0x27c   : > { %v3568_v2 = vor.u32 %v3567_v18, %v3564_v24  ;;  %v3573_v52 = vrot.slane %v3571_v20, 6  ;;  %v3576_v50 = vrot.slane %v3574_v9, 7  ;;  %v3158_v1 = vmax.f32 %v3122_v51, 0.0  ;;  %v4884_v17 = vpop.f32.mrb[8].mxu0 }
 0x27d   : > { %v3589_v32 = vrot.slane %v3587_v43, 4  ;;  %v3597_v39 = vor.u32 %v3596_v16, %v3593_v34  ;;  %v3412_v55 = vmul.f32 %v3259_v41, %v3160_v23  ;;  %v4918_v59 = vadd.f32 %v4881_v4, %v6667_v10  ;;  %v2964_v22 = vpop.f32.mrb[9].mxu0  ;;  %v6725_v10 = vpop.permute.xlu1 %3273 }
 0x27e   : > { %v3569_v62 = vrot.slane %v3568_v2, 4  ;;  %v3961_v11 = vsel %vm6707_vm0, %v3568_v2, %v3960_v53  ;;  %v3577_v47 = vor.u32 %v3576_v50, %v3573_v52  ;;  %v3410_v48 = vmul.f32 %v3249_v44, %v3158_v1  ;;  %v4885_v45 = vpop.f32.mrb[10].mxu0  ;;  %v3279_v34 = vpop.permute.xlu0 %3278 }
 0x27f   : > { %3962 = vst [vmem:[%s6362_s21 + $0x8] sm:$0xe] %v3961_v11  ;;  %v3598_v0 = vsel %vm6714_vm1, %v3589_v32, %v3597_v39  ;;  %v3599_v12 = vrot.slane %v3597_v39, 4  ;;  %v4367_v5 = vpack.c.bf16 %v3412_v55, %v3412_v55  ;;  %v3125_v27 = vadd.f32 %v4918_v59, %v6695_v15  ;;  %v2967_v58 = vpop.f32.mrb[11].mxu0 }
 0x280   : > { %3965 = vst.msk [vmem:[%s6362_s21 + $0x14] sm:$0xf] %vm3460_vm7, %v3598_v0  ;;  %v3578_v4 = vsel %vm6714_vm1, %v3569_v62, %v3577_v47  ;;  %v3579_v44 = vrot.slane %v3577_v47, 4  ;;  %v4365_v60 = vpack.c.bf16 %v3410_v48, %v3410_v48  ;;  %v4919_v14 = vadd.f32 %v2951_v19, %v6669_v31 }
 0x281   : > { %3963 = vst.msk [vmem:[%s6362_s21 + $0xc] sm:$0xf] %vm3460_vm7, %v3578_v4  ;;  %v3621_v37 = vshrl.u32 %v4367_v5, 16  ;;  %v3624_v6 = vshll.u32 %v4367_v5, 16  ;;  %v3161_v49 = vmax.f32 %v3125_v27, 0.0  ;;  %v4920_v51 = vadd.f32 %v4884_v17, %v6671_v3  ;;  %v3284_v50 = vpop.permute.xlu1 %3283 }
 0x282   : > { %v3588_v41 = vsel %vm6714_vm1, %v3579_v44, %v3587_v43  ;;  %v3601_v29 = vshrl.u32 %v4365_v60, 16  ;;  %v3604_v42 = vshll.u32 %v4365_v60, 16  ;;  %v3123_v61 = vadd.f32 %v4919_v14, %v6695_v15  ;;  %v6765_v14 = vpop.permute.xlu0 %3288 }
 0x283   : > { %3964 = vst.msk [vmem:[%s6362_s21 + $0x10] sm:$0xf] %vm3460_vm7, %v3588_v41  ;;  %v3623_v40 = vrot.slane %v3621_v37, 6  ;;  %v3626_v24 = vrot.slane %v3624_v6, 7  ;;  %v3413_v18 = vmul.f32 %v3264_v46, %v3161_v49  ;;  %v3128_v31 = vadd.f32 %v4920_v51, %v6695_v15 }
 0x284   : > { %v3603_v19 = vrot.slane %v3601_v29, 6  ;;  %v3606_v20 = vrot.slane %v3604_v42, 7  ;;  %v3159_v9 = vmax.f32 %v3123_v61, 0.0  ;;  %v4921_v53 = vadd.f32 %v2964_v22, %v6673_v8  ;;  %v4888_v3 = vpop.f32.mrb[12].mxu0 }
 0x285   : > { %v6742_v16 = vor.u32 %v3626_v24, %v3623_v40  ;;  %v4368_v43 = vpack.c.bf16 %v3413_v18, %v3413_v18  ;;  %v3164_v23 = vmax.f32 %v3128_v31, 0.0  ;;  %v4922_v2 = vadd.f32 %v4885_v45, %v6675_v28  ;;  %v2980_v52 = vpop.f32.mrb[13].mxu0  ;;  %v6769_v29 = vpop.permute.xlu1 %3293 }
 0x286   : > { %v3607_v1 = vor.u32 %v3606_v20, %v3603_v19  ;;  %v3411_v46 = vmul.f32 %v6701_v13, %v3159_v9  ;;  %v3126_v17 = vadd.f32 %v4921_v53, %v6695_v15  ;;  %v4923_v32 = vadd.f32 %v2967_v58, %v6677_v33  ;;  %v6748_v39 = vpop.f32.mrb[14].mxu0 }
 0x287   : > { %v3629_v8 = vrot.slane %v6742_v16, 4  ;;  %v3631_v55 = vshrl.u32 %v4368_v43, 16  ;;  %v3634_v59 = vshll.u32 %v4368_v43, 16  ;;  %v3416_v22 = vmul.f32 %v3279_v34, %v3164_v23  ;;  %v6751_v62 = vpop.f32.mrb[15].mxu0 }
 0x288   : > { %v3608_v28 = vsel %vm6714_vm1, %v3599_v12, %v3607_v1  ;;  %v3609_v11 = vrot.slane %v3607_v1, 4  ;;  %v4366_v47 = vpack.c.bf16 %v3411_v46, %v3411_v46  ;;  %v3162_v48 = vmax.f32 %v3126_v17, 0.0 }
 0x289   : > { %v6755_v13 = vpop.f32.mrb[20].mxu1  ;;  %3966 = vst.msk [vmem:[%s6362_s21 + $0x18] sm:$0xf] %vm3460_vm7, %v3608_v28  ;;  %v3633_v33 = vrot.slane %v3631_v55, 6  ;;  %v3636_v45 = vrot.slane %v3634_v59, 7  ;;  %v4371_v0 = vpack.c.bf16 %v3416_v22, %v3416_v22  ;;  %v3129_v5 = vadd.f32 %v4922_v2, %v6695_v15 }
 0x28a   : > { %v6760_v27 = vpop.f32.mrb[21].mxu1  ;;  %v3611_v58 = vshrl.u32 %v4366_v47, 16  ;;  %v3614_v4 = vshll.u32 %v4366_v47, 16  ;;  %v3414_v44 = vmul.f32 %v3269_v57, %v3162_v48  ;;  %v3127_v60 = vadd.f32 %v4923_v32, %v6695_v15  ;;  %v6788_v47 = vpop.permute.xlu0 %3403 }
 0x28b   : > { %v6763_v12 = vpop.f32.mrb[22].mxu1  ;;  %v3637_v37 = vor.u32 %v3636_v45, %v3633_v33  ;;  %v3661_v6 = vshrl.u32 %v4371_v0, 16  ;;  %v3664_v49 = vshll.u32 %v4371_v0, 16  ;;  %v3165_v51 = vmax.f32 %v3129_v5, 0.0  ;;  %v3299_v48 = vpop.permute.xlu1 %3298 }
 0x28c   : > { %v6767_v41 = vpop.f32.mrb[23].mxu1  ;;  %v3613_v42 = vrot.slane %v3611_v58, 6  ;;  %v3616_v61 = vrot.slane %v3614_v4, 7  ;;  %v4369_v40 = vpack.c.bf16 %v3414_v44, %v3414_v44  ;;  %v3163_v24 = vmax.f32 %v3127_v60, 0.0  ;;  %v4892_v57 = vpop.f32.mrb[16].mxu0 }
 0x28d   : > { %v3638_v18 = vsel %vm6714_vm1, %v3629_v8, %v3637_v37  ;;  %v3639_v31 = vrot.slane %v3637_v37, 4  ;;  %v3663_v19 = vrot.slane %v3661_v6, 6  ;;  %v3666_v20 = vrot.slane %v3664_v49, 7  ;;  %v2996_v9 = vpop.f32.mrb[17].mxu0 }
 0x28e   : > { %3969 = vst.msk [vmem:[%s6362_s21 + $0x24] sm:$0xf] %vm3460_vm7, %v3638_v18  ;;  %v3617_v53 = vor.u32 %v3616_v61, %v3613_v42  ;;  %v3641_v34 = vshrl.u32 %v4369_v40, 16  ;;  %v3644_v43 = vshll.u32 %v4369_v40, 16  ;;  %v3417_v23 = vmul.f32 %v3284_v50, %v3165_v51  ;;  %v6775_v2 = vpop.f32.mrb[18].mxu0 }
 0x28f   : > { %v6777_v1 = vor.u32 %v3666_v20, %v3663_v19  ;;  %v3415_v46 = vmul.f32 %v6725_v10, %v3163_v24  ;;  %v4924_v17 = vadd.f32 %v4888_v3, %v6679_v26  ;;  %v4925_v32 = vadd.f32 %v2980_v52, %v6681_v54  ;;  %v6782_v8 = vpop.f32.mrb[19].mxu0 }
 0x290   : > { %v3618_v55 = vsel %vm6714_vm1, %v3609_v11, %v3617_v53  ;;  %v3619_v59 = vrot.slane %v3617_v53, 4  ;;  %v3643_v22 = vrot.slane %v3641_v34, 6  ;;  %v3646_v28 = vrot.slane %v3644_v43, 7  ;;  %v3304_v34 = vpop.permute.xlu0 %3303 }
 0x291   : > { %v6786_v50 = vpop.f32.mrb[24].mxu1  ;;  %3967 = vst.msk [vmem:[%s6362_s21 + $0x1c] sm:$0xf] %vm3460_vm7, %v3618_v55  ;;  %v3669_v10 = vrot.slane %v6777_v1, 4  ;;  %v4372_v26 = vpack.c.bf16 %v3417_v23, %v3417_v23  ;;  %v4370_v3 = vpack.c.bf16 %v3415_v46, %v3415_v46  ;;  %v3132_v54 = vadd.f32 %v4924_v17, %v6695_v15  ;;  %v3309_v55 = vpop.permute.xlu1 %3308 }
 0x292   : > { %v6794_v52 = vpop.f32.mrb[25].mxu1  ;;  %v3628_v11 = vsel %vm6714_vm1, %v3619_v59, %v6742_v16  ;;  %v3647_v33 = vor.u32 %v3646_v28, %v3643_v22  ;;  %v3130_v45 = vadd.f32 %v4925_v32, %v6695_v15  ;;  %v4926_v0 = vadd.f32 %v6748_v39, %v6683_v21 }
 0x293   : > { %v6802_v5 = vpop.f32.mrb[26].mxu1  ;;  %3968 = vst.msk [vmem:[%s6362_s21 + $0x20] sm:$0xf] %vm3460_vm7, %v3628_v11  ;;  %v3671_v58 = vshrl.u32 %v4372_v26, 16  ;;  %v3674_v4 = vshll.u32 %v4372_v26, 16  ;;  %v3651_v44 = vshrl.u32 %v4370_v3, 16  ;;  %v4928_v46 = vadd.f32 %v4892_v57, %v6687_v25 }
 0x294   : > { %v3654_v60 = vshll.u32 %v4370_v3, 16  ;;  %v6806_v37 = vpop.f32.mrb[27].mxu1  ;;  %v3648_v16 = vsel %vm6714_vm1, %v3639_v31, %v3647_v33  ;;  %v3649_v6 = vrot.slane %v3647_v33, 4  ;;  %v3168_v49 = vmax.f32 %v3132_v54, 0.0  ;;  %v6810_v42 = vpop.f32.mrb[20].mxu0 }
 0x295   : > { %v3166_v51 = vmax.f32 %v3130_v45, 0.0  ;;  %3970 = vst.msk [vmem:[%s6362_s21 + $0x28] sm:$0xf] %vm3460_vm7, %v3648_v16  ;;  %v3673_v21 = vrot.slane %v3671_v58, 6  ;;  %v3676_v39 = vrot.slane %v3674_v4, 7  ;;  %v3653_v61 = vrot.slane %v3651_v44, 6 }
 0x296   : > { %v3656_v40 = vrot.slane %v3654_v60, 7  ;;  %v6814_v24 = vpop.f32.mrb[21].mxu0  ;;  %v3420_v18 = vmul.f32 %v3299_v48, %v3168_v49  ;;  %v3133_v20 = vadd.f32 %v4926_v0, %v6695_v15  ;;  %v4927_v31 = vadd.f32 %v6751_v62, %v6685_v7  ;;  %v3314_v49 = vpop.permute.xlu0 %3313 }
 0x297   : > { %v3418_v19 = vmul.f32 %v6765_v14, %v3166_v51  ;;  %v6820_v53 = vpop.f32.mrb[22].mxu0  ;;  %v3677_v43 = vor.u32 %v3676_v39, %v3673_v21  ;;  %v4929_v17 = vadd.f32 %v2996_v9, %v6689_v38  ;;  %v3136_v0 = vadd.f32 %v4928_v46, %v6695_v15 }
 0x298   : > { %v3657_v23 = vor.u32 %v3656_v40, %v3653_v61  ;;  %v6824_v32 = vpop.f32.mrb[23].mxu0  ;;  %v4375_v14 = vpack.c.bf16 %v3420_v18, %v3420_v18  ;;  %v3169_v22 = vmax.f32 %v3133_v20, 0.0  ;;  %v3131_v28 = vadd.f32 %v4927_v31, %v6695_v15  ;;  %v3319_v40 = vpop.permute.xlu1 %3318 }
 0x299   : > { %v4373_v59 = vpack.c.bf16 %v3418_v19, %v3418_v19  ;;  %v6827_v7 = vpop.f32.mrb[28].mxu1  ;;  %v3678_v62 = vsel %vm6714_vm1, %v3669_v10, %v3677_v43  ;;  %v3679_v26 = vrot.slane %v3677_v43, 4  ;;  %v3172_v39 = vmax.f32 %v3136_v0, 0.0 }
 0x29a   : > { %v3658_v25 = vsel %vm6714_vm1, %v3649_v6, %v3657_v23  ;;  %v3659_v57 = vrot.slane %v3657_v23, 4  ;;  %v6833_v38 = vpop.f32.mrb[29].mxu1  ;;  %3973 = vst.msk [vmem:[%s6362_s21 + $0x34] sm:$0xf] %vm3460_vm7, %v3678_v62  ;;  %v3701_v9 = vshrl.u32 %v4375_v14, 16  ;;  %v3704_v3 = vshll.u32 %v4375_v14, 16 }
 0x29b   : > { %3971 = vst.msk [vmem:[%s6362_s21 + $0x2c] sm:$0xf] %vm3460_vm7, %v3658_v25  ;;  %v3681_v54 = vshrl.u32 %v4373_v59, 16  ;;  %v3684_v48 = vshll.u32 %v4373_v59, 16  ;;  %v6839_v11 = vpop.f32.mrb[30].mxu1  ;;  %v3421_v33 = vmul.f32 %v3304_v34, %v3169_v22  ;;  %v3167_v45 = vmax.f32 %v3131_v28, 0.0 }
 0x29c   : > { %v3668_v10 = vsel %vm6714_vm1, %v3659_v57, %v6777_v1  ;;  %v6845_v58 = vpop.f32.mrb[31].mxu1  ;;  %v3703_v4 = vrot.slane %v3701_v9, 6  ;;  %v3706_v44 = vrot.slane %v3704_v3, 7  ;;  %v6849_v6 = vpop.f32.mrb[24].mxu0  ;;  %v3134_v1 = vadd.f32 %v4929_v17, %v6695_v15 }
 0x29d   : > { %3972 = vst.msk [vmem:[%s6362_s21 + $0x30] sm:$0xf] %vm3460_vm7, %v3668_v10  ;;  %v3683_v60 = vrot.slane %v3681_v54, 6  ;;  %v3686_v16 = vrot.slane %v3684_v48, 7  ;;  %v4376_v51 = vpack.c.bf16 %v3421_v33, %v3421_v33  ;;  %v3419_v21 = vmul.f32 %v6769_v29, %v3167_v45  ;;  %v6853_v61 = vpop.f32.mrb[25].mxu0 }
 0x29e   : > { %v3707_v18 = vor.u32 %v3706_v44, %v3703_v4  ;;  %v4930_v20 = vadd.f32 %v6775_v2, %v6691_v63  ;;  %v4931_v31 = vadd.f32 %v6782_v8, %v6693_v56  ;;  %v6859_v34 = vpop.f32.mrb[26].mxu0  ;;  %v3424_v46 = vmul.f32 %v3319_v40, %v3172_v39  ;;  %v6879_v44 = vpop.permute.xlu1 %3328 }
 0x29f   : > { %v3687_v19 = vor.u32 %v3686_v16, %v3683_v60  ;;  %v3711_v43 = vshrl.u32 %v4376_v51, 16  ;;  %v3714_v23 = vshll.u32 %v4376_v51, 16  ;;  %v4374_v29 = vpack.c.bf16 %v3419_v21, %v3419_v21  ;;  %v6861_v14 = vpop.f32.mrb[27].mxu0 }
 0x2a0   : > { %v3709_v17 = vrot.slane %v3707_v18, 4  ;;  %v3170_v28 = vmax.f32 %v3134_v1, 0.0  ;;  %v4379_v57 = vpack.c.bf16 %v3424_v46, %v3424_v46  ;;  %v3137_v3 = vadd.f32 %v4930_v20, %v6695_v15 }
 0x2a1   : > { %v3688_v59 = vsel %vm6714_vm1, %v3679_v26, %v3687_v19  ;;  %v3689_v22 = vrot.slane %v3687_v19, 4  ;;  %v6865_v62 = vpop.f32.mrb[32].mxu1  ;;  %v3713_v63 = vrot.slane %v3711_v43, 6  ;;  %v3716_v56 = vrot.slane %v3714_v23, 7  ;;  %v3324_v26 = vpop.permute.xlu0 %3323 }
 0x2a2   : > { %3974 = vst.msk [vmem:[%s6362_s21 + $0x38] sm:$0xf] %vm3460_vm7, %v3688_v59  ;;  %v3691_v2 = vshrl.u32 %v4374_v29, 16  ;;  %v3694_v8 = vshll.u32 %v4374_v29, 16  ;;  %v6869_v25 = vpop.f32.mrb[33].mxu1  ;;  %v3422_v9 = vmul.f32 %v3309_v55, %v3170_v28  ;;  %v3135_v54 = vadd.f32 %v4931_v31, %v6695_v15 }
 0x2a3   : > { %v6873_v48 = vpop.f32.mrb[34].mxu1  ;;  %v3717_v10 = vor.u32 %v3716_v56, %v3713_v63  ;;  %v4932_v0 = vadd.f32 %v6810_v42, %v6755_v13  ;;  %v3741_v60 = vshrl.u32 %v4379_v57, 16  ;;  %v3744_v55 = vshll.u32 %v4379_v57, 16 }
 0x2a4   : > { %v3693_v33 = vrot.slane %v3691_v2, 6  ;;  %v3696_v45 = vrot.slane %v3694_v8, 7  ;;  %v6877_v4 = vpop.f32.mrb[35].mxu1  ;;  %v4377_v16 = vpack.c.bf16 %v3422_v9, %v3422_v9  ;;  %v3173_v51 = vmax.f32 %v3137_v3, 0.0  ;;  %v6881_v21 = vpop.f32.mrb[28].mxu0 }
 0x2a5   : > { %v3718_v39 = vsel %vm6714_vm1, %v3709_v17, %v3717_v10  ;;  %v3719_v1 = vrot.slane %v3717_v10, 4  ;;  %v3171_v19 = vmax.f32 %v3135_v54, 0.0  ;;  %v6885_v20 = vpop.f32.mrb[29].mxu0  ;;  %v3743_v13 = vrot.slane %v3741_v60, 6  ;;  %v6898_v57 = vpop.permute.xlu0 %3333 }
 0x2a6   : > { %v3697_v40 = vor.u32 %v3696_v45, %v3693_v33  ;;  %3977 = vst.msk [vmem:[%s6362_s21 + $0x44] sm:$0xf] %vm3460_vm7, %v3718_v39  ;;  %v3746_v42 = vrot.slane %v3744_v55, 7  ;;  %v3721_v31 = vshrl.u32 %v4377_v16, 16  ;;  %v3724_v43 = vshll.u32 %v4377_v16, 16  ;;  %v6889_v23 = vpop.f32.mrb[30].mxu0 }
 0x2a7   : > { %v3425_v17 = vmul.f32 %v3324_v26, %v3173_v51  ;;  %v3423_v59 = vmul.f32 %v3314_v49, %v3171_v19  ;;  %v6893_v28 = vpop.f32.mrb[31].mxu0  ;;  %v3140_v8 = vadd.f32 %v4932_v0, %v6695_v15  ;;  %v4933_v54 = vadd.f32 %v6814_v24, %v6760_v27  ;;  %v3339_v49 = vpop.permute.xlu1 %3338 }
 0x2a8   : > { %v3698_v29 = vsel %vm6714_vm1, %v3689_v22, %v3697_v40  ;;  %v3699_v46 = vrot.slane %v3697_v40, 4  ;;  %v3747_v63 = vor.u32 %v3746_v42, %v3743_v13  ;;  %v3723_v56 = vrot.slane %v3721_v31, 6 }
 0x2a9   : > { %3975 = vst.msk [vmem:[%s6362_s21 + $0x3c] sm:$0xf] %vm3460_vm7, %v3698_v29  ;;  %v3726_v2 = vrot.slane %v3724_v43, 7  ;;  %v4380_v3 = vpack.c.bf16 %v3425_v17, %v3425_v17  ;;  %v4378_v22 = vpack.c.bf16 %v3423_v59, %v3423_v59  ;;  %v3176_v33 = vmax.f32 %v3140_v8, 0.0 }
 0x2aa   : > { %v3708_v9 = vsel %vm6714_vm1, %v3699_v46, %v3707_v18  ;;  %v3749_v26 = vrot.slane %v3747_v63, 4  ;;  %v4934_v45 = vadd.f32 %v6820_v53, %v6763_v12  ;;  %v3138_v27 = vadd.f32 %v4933_v54, %v6695_v15  ;;  %v3344_v46 = vpop.permute.xlu0 %3343 }
 0x2ab   : > { %3976 = vst.msk [vmem:[%s6362_s21 + $0x40] sm:$0xf] %vm3460_vm7, %v3708_v9  ;;  %v3727_v10 = vor.u32 %v3726_v2, %v3723_v56  ;;  %v3751_v0 = vshrl.u32 %v4380_v3, 16  ;;  %v3754_v60 = vshll.u32 %v4380_v3, 16  ;;  %v3731_v55 = vshrl.u32 %v4378_v22, 16  ;;  %v3349_v9 = vpop.permute.xlu1 %3348 }
 0x2ac   : > { %v3734_v16 = vshll.u32 %v4378_v22, 16  ;;  %v3428_v39 = vmul.f32 %v3339_v49, %v3176_v33  ;;  %v6911_v24 = vpop.f32.mrb[32].mxu0  ;;  %v3174_v31 = vmax.f32 %v3138_v27, 0.0  ;;  %v3141_v43 = vadd.f32 %v4934_v45, %v6695_v15 }
 0x2ad   : > { %v3728_v18 = vsel %vm6714_vm1, %v3719_v1, %v3727_v10  ;;  %v3729_v51 = vrot.slane %v3727_v10, 4  ;;  %v3753_v40 = vrot.slane %v3751_v0, 6  ;;  %v3756_v19 = vrot.slane %v3754_v60, 7  ;;  %v6915_v12 = vpop.f32.mrb[33].mxu0 }
 0x2ae   : > { %3978 = vst.msk [vmem:[%s6362_s21 + $0x48] sm:$0xf] %vm3460_vm7, %v3728_v18  ;;  %v3733_v13 = vrot.slane %v3731_v55, 6  ;;  %v3736_v42 = vrot.slane %v3734_v16, 7  ;;  %v4383_v53 = vpack.c.bf16 %v3428_v39, %v3428_v39  ;;  %v4935_v1 = vadd.f32 %v6824_v32, %v6767_v41  ;;  %v6920_v29 = vpop.f32.mrb[34].mxu0 }
 0x2af   : > { %v3757_v17 = vor.u32 %v3756_v19, %v3753_v40  ;;  %v4936_v56 = vadd.f32 %v6849_v6, %v6786_v50  ;;  %v4937_v2 = vadd.f32 %v6853_v61, %v6794_v52  ;;  %v6926_v8 = vpop.f32.mrb[35].mxu0  ;;  %v3426_v41 = vmul.f32 %v6879_v44, %v3174_v31  ;;  %v3359_v19 = vpop.permute.xlu1 %3358 }
 0x2b0   : > { %v3737_v59 = vor.u32 %v3736_v42, %v3733_v13  ;;  %v3781_v3 = vshrl.u32 %v4383_v53, 16  ;;  %v3784_v22 = vshll.u32 %v4383_v53, 16  ;;  %v3177_v32 = vmax.f32 %v3141_v43, 0.0 }
 0x2b1   : > { %v3758_v54 = vsel %vm6714_vm1, %v3749_v26, %v3757_v17  ;;  %v3759_v49 = vrot.slane %v3757_v17, 4  ;;  %v4381_v61 = vpack.c.bf16 %v3426_v41, %v3426_v41  ;;  %v3139_v45 = vadd.f32 %v4935_v1, %v6695_v15 }
 0x2b2   : > { %v3738_v10 = vsel %vm6714_vm1, %v3729_v51, %v3737_v59  ;;  %v3739_v50 = vrot.slane %v3737_v59, 4  ;;  %3981 = vst.msk [vmem:[%s6362_s21 + $0x54] sm:$0xf] %vm3460_vm7, %v3758_v54  ;;  %v3783_v52 = vrot.slane %v3781_v3, 6  ;;  %v3786_v6 = vrot.slane %v3784_v22, 7  ;;  %v6946_v51 = vpop.permute.xlu0 %3353 }
 0x2b3   : > { %3979 = vst.msk [vmem:[%s6362_s21 + $0x4c] sm:$0xf] %vm3460_vm7, %v3738_v10  ;;  %v3429_v33 = vmul.f32 %v3344_v46, %v3177_v32  ;;  %v3144_v26 = vadd.f32 %v4936_v56, %v6695_v15  ;;  %v3142_v0 = vadd.f32 %v4937_v2, %v6695_v15  ;;  %v3761_v55 = vshrl.u32 %v4381_v61, 16 }
 0x2b4   : > { %v3748_v44 = vsel %vm6714_vm1, %v3739_v50, %v3747_v63  ;;  %v6944_v60 = vor.u32 %v3786_v6, %v3783_v52  ;;  %v3764_v16 = vshll.u32 %v4381_v61, 16  ;;  %v3175_v39 = vmax.f32 %v3139_v45, 0.0 }
 0x2b5   : > { %3980 = vst.msk [vmem:[%s6362_s21 + $0x50] sm:$0xf] %vm3460_vm7, %v3748_v44  ;;  %v4384_v18 = vpack.c.bf16 %v3429_v33, %v3429_v33  ;;  %v3180_v27 = vmax.f32 %v3144_v26, 0.0  ;;  %v3178_v40 = vmax.f32 %v3142_v0, 0.0  ;;  %v4938_v63 = vadd.f32 %v6859_v34, %v6802_v5 }
 0x2b6   : > { %v3789_v13 = vrot.slane %v6944_v60, 4  ;;  %v3763_v42 = vrot.slane %v3761_v55, 6  ;;  %v3766_v53 = vrot.slane %v3764_v16, 7  ;;  %v3427_v1 = vmul.f32 %v6898_v57, %v3175_v39 }
 0x2b7   : > { %v3791_v31 = vshrl.u32 %v4384_v18, 16  ;;  %v3794_v43 = vshll.u32 %v4384_v18, 16  ;;  %v3432_v46 = vmul.f32 %v3359_v19, %v3180_v27  ;;  %v3430_v17 = vmul.f32 %v3349_v9, %v3178_v40  ;;  %v3364_v9 = vpop.permute.xlu0 %3363 }
 0x2b8   : > { %v3767_v59 = vor.u32 %v3766_v53, %v3763_v42  ;;  %v3145_v2 = vadd.f32 %v4938_v63, %v6695_v15  ;;  %v4939_v3 = vadd.f32 %v6861_v14, %v6806_v37  ;;  %v4382_v34 = vpack.c.bf16 %v3427_v1, %v3427_v1  ;;  %v3369_v37 = vpop.permute.xlu1 %3368 }
 0x2b9   : > { %v3793_v56 = vrot.slane %v3791_v31, 6  ;;  %v3796_v5 = vrot.slane %v3794_v43, 7  ;;  %v4387_v22 = vpack.c.bf16 %v3432_v46, %v3432_v46  ;;  %v4385_v41 = vpack.c.bf16 %v3430_v17, %v3430_v17 }
 0x2ba   : > { %v3768_v32 = vsel %vm6714_vm1, %v3759_v49, %v3767_v59  ;;  %v3769_v54 = vrot.slane %v3767_v59, 4  ;;  %v3181_v10 = vmax.f32 %v3145_v2, 0.0  ;;  %v3143_v57 = vadd.f32 %v4939_v3, %v6695_v15 }
 0x2bb   : > { %3982 = vst.msk [vmem:[%s6362_s21 + $0x58] sm:$0xf] %vm3460_vm7, %v3768_v32  ;;  %v3797_v50 = vor.u32 %v3796_v5, %v3793_v56  ;;  %v3771_v52 = vshrl.u32 %v4382_v34, 16  ;;  %v3774_v6 = vshll.u32 %v4382_v34, 16  ;;  %v3821_v61 = vshrl.u32 %v4387_v22, 16  ;;  %v3374_v1 = vpop.permute.xlu0 %3373 }
 0x2bc   : > { %v3824_v14 = vshll.u32 %v4387_v22, 16  ;;  %v3801_v33 = vshrl.u32 %v4385_v41, 16  ;;  %v3804_v44 = vshll.u32 %v4385_v41, 16  ;;  %v3433_v45 = vmul.f32 %v3364_v9, %v3181_v10  ;;  %v3379_v2 = vpop.permute.xlu1 %3378 }
 0x2bd   : > { %v3798_v49 = vsel %vm6714_vm1, %v3789_v13, %v3797_v50  ;;  %v3799_v26 = vrot.slane %v3797_v50, 4  ;;  %v3773_v0 = vrot.slane %v3771_v52, 6  ;;  %v3776_v55 = vrot.slane %v3774_v6, 7 }
 0x2be   : > { %3985 = vst.msk [vmem:[%s6362_s21 + $0x64] sm:$0xf] %vm3460_vm7, %v3798_v49  ;;  %v3823_v16 = vrot.slane %v3821_v61, 6  ;;  %v3826_v18 = vrot.slane %v3824_v14, 7  ;;  %v3803_v39 = vrot.slane %v3801_v33, 6  ;;  %v3806_v27 = vrot.slane %v3804_v44, 7 }
 0x2bf   : > { %v3777_v40 = vor.u32 %v3776_v55, %v3773_v0  ;;  %v4388_v63 = vpack.c.bf16 %v3433_v45, %v3433_v45  ;;  %v3179_v19 = vmax.f32 %v3143_v57, 0.0  ;;  %v4940_v42 = vadd.f32 %v6881_v21, %v6827_v7  ;;  %v3384_v6 = vpop.permute.xlu0 %3383 }
 0x2c0   : > { %v6966_v53 = vor.u32 %v3826_v18, %v3823_v16  ;;  %v3807_v13 = vor.u32 %v3806_v27, %v3803_v39  ;;  %v4941_v31 = vadd.f32 %v6885_v20, %v6833_v38  ;;  %v4942_v43 = vadd.f32 %v6889_v23, %v6839_v11 }
 0x2c1   : > { %v3778_v46 = vsel %vm6714_vm1, %v3769_v54, %v3777_v40  ;;  %v3779_v17 = vrot.slane %v3777_v40, 4  ;;  %v3831_v59 = vshrl.u32 %v4388_v63, 16  ;;  %v3834_v56 = vshll.u32 %v4388_v63, 16 }
 0x2c2   : > { %3983 = vst.msk [vmem:[%s6362_s21 + $0x5c] sm:$0xf] %vm3460_vm7, %v3778_v46  ;;  %v3829_v7 = vrot.slane %v6966_v53, 4  ;;  %v3808_v21 = vsel %vm6714_vm1, %v3799_v26, %v3807_v13  ;;  %v3809_v38 = vrot.slane %v3807_v13, 4  ;;  %v3431_v20 = vmul.f32 %v6946_v51, %v3179_v19 }
 0x2c3   : > { %v3788_v11 = vsel %vm6714_vm1, %v3779_v17, %v6944_v60  ;;  %3986 = vst.msk [vmem:[%s6362_s21 + $0x68] sm:$0xf] %vm3460_vm7, %v3808_v21  ;;  %v3833_v23 = vrot.slane %v3831_v59, 6  ;;  %v3836_v3 = vrot.slane %v3834_v56, 7  ;;  %v3148_v5 = vadd.f32 %v4940_v42, %v6695_v15 }
 0x2c4   : > { %3984 = vst.msk [vmem:[%s6362_s21 + $0x60] sm:$0xf] %vm3460_vm7, %v3788_v11  ;;  %v4386_v34 = vpack.c.bf16 %v3431_v20, %v3431_v20  ;;  %v3146_v22 = vadd.f32 %v4941_v31, %v6695_v15  ;;  %v3149_v41 = vadd.f32 %v4942_v43, %v6695_v15  ;;  %v4943_v51 = vadd.f32 %v6893_v28, %v6845_v58  ;;  %v3389_v28 = vpop.permute.xlu1 %3388 }
 0x2c5   : > { %v3837_v32 = vor.u32 %v3836_v3, %v3833_v23  ;;  %v3184_v54 = vmax.f32 %v3148_v5, 0.0  ;;  %v4944_v60 = vadd.f32 %v6911_v24, %v6865_v62  ;;  %v4945_v10 = vadd.f32 %v6915_v12, %v6869_v25 }
 0x2c6   : > { %v3811_v57 = vshrl.u32 %v4386_v34, 16  ;;  %v3814_v9 = vshll.u32 %v4386_v34, 16  ;;  %v3182_v50 = vmax.f32 %v3146_v22, 0.0  ;;  %v3185_v52 = vmax.f32 %v3149_v41, 0.0 }
 0x2c7   : > { %v3838_v61 = vsel %vm6714_vm1, %v3829_v7, %v3837_v32  ;;  %v3839_v14 = vrot.slane %v3837_v32, 4  ;;  %v3436_v33 = vmul.f32 %v3379_v2, %v3184_v54  ;;  %v3147_v58 = vadd.f32 %v4943_v51, %v6695_v15 }
 0x2c8   : > { %3989 = vst.msk [vmem:[%s6362_s21 + $0x74] sm:$0xf] %vm3460_vm7, %v3838_v61  ;;  %v3813_v44 = vrot.slane %v3811_v57, 6  ;;  %v3816_v62 = vrot.slane %v3814_v9, 7  ;;  %v3434_v24 = vmul.f32 %v3369_v37, %v3182_v50  ;;  %v3437_v45 = vmul.f32 %v3384_v6, %v3185_v52  ;;  %v3399_v59 = vpop.permute.xlu1 %3398 }
 0x2c9   : > { %v4391_v25 = vpack.c.bf16 %v3436_v33, %v3436_v33  ;;  %v3183_v12 = vmax.f32 %v3147_v58, 0.0  ;;  %v3152_v49 = vadd.f32 %v4944_v60, %v6695_v15  ;;  %v3150_v26 = vadd.f32 %v4945_v10, %v6695_v15 }
 0x2ca   : > { %v3817_v0 = vor.u32 %v3816_v62, %v3813_v44  ;;  %v4389_v55 = vpack.c.bf16 %v3434_v24, %v3434_v24  ;;  %v4392_v16 = vpack.c.bf16 %v3437_v45, %v3437_v45  ;;  %v4946_v18 = vadd.f32 %v6920_v29, %v6873_v48  ;;  %v5334_v24 = vld [vmem:[#allocation7] ss:$0 sm:$0xff] }
 0x2cb   : > { %v3861_v39 = vshrl.u32 %v4391_v25, 16  ;;  %v3864_v27 = vshll.u32 %v4391_v25, 16  ;;  %v3435_v40 = vmul.f32 %v3374_v1, %v3183_v12  ;;  %v3188_v63 = vmax.f32 %v3152_v49, 0.0  ;;  %v3394_v49 = vpop.permute.xlu0 %3393 }
 0x2cc   : > { %v3818_v37 = vsel %vm6714_vm1, %v3809_v38, %v3817_v0  ;;  %v3819_v19 = vrot.slane %v3817_v0, 4  ;;  %v3841_v42 = vshrl.u32 %v4389_v55, 16  ;;  %v3844_v13 = vshll.u32 %v4389_v55, 16 }
 0x2cd   : > { %3987 = vst.msk [vmem:[%s6362_s21 + $0x6c] sm:$0xf] %vm3460_vm7, %v3818_v37  ;;  %v3863_v31 = vrot.slane %v3861_v39, 6  ;;  %v3866_v43 = vrot.slane %v3864_v27, 7  ;;  %v3871_v46 = vshrl.u32 %v4392_v16, 16  ;;  %v3874_v17 = vshll.u32 %v4392_v16, 16 }
 0x2ce   : > { %v3828_v48 = vsel %vm6714_vm1, %v3819_v19, %v6966_v53  ;;  %v3843_v29 = vrot.slane %v3841_v42, 6  ;;  %v3846_v1 = vrot.slane %v3844_v13, 7  ;;  %v4390_v56 = vpack.c.bf16 %v3435_v40, %v3435_v40  ;;  %v3998_v13 = vld [vmem:[%s6362_s21 + $0x98] sm:$0x3] }
 0x2cf   : > { %3988 = vst.msk [vmem:[%s6362_s21 + $0x70] sm:$0xf] %vm3460_vm7, %v3828_v48  ;;  %v3867_v2 = vor.u32 %v3866_v43, %v3863_v31  ;;  %v3873_v7 = vrot.slane %v3871_v46, 6  ;;  %v3876_v21 = vrot.slane %v3874_v17, 7  ;;  %v3440_v38 = vmul.f32 %v3399_v59, %v3188_v63 }
 0x2d0   : > { %v3847_v20 = vor.u32 %v3846_v1, %v3843_v29  ;;  %v3851_v11 = vshrl.u32 %v4390_v56, 16  ;;  %v3854_v23 = vshll.u32 %v4390_v56, 16  ;;  %v3186_v3 = vmax.f32 %v3150_v26, 0.0 }
 0x2d1   : > { %v3869_v5 = vrot.slane %v3867_v2, 4  ;;  %v3877_v34 = vor.u32 %v3876_v21, %v3873_v7  ;;  %v4395_v22 = vpack.c.bf16 %v3440_v38, %v3440_v38  ;;  %v3153_v53 = vadd.f32 %v4946_v18, %v6695_v15 }
 0x2d2   : > { %v3848_v41 = vsel %vm6714_vm1, %v3839_v14, %v3847_v20  ;;  %v3849_v51 = vrot.slane %v3847_v20, 4  ;;  %v3853_v32 = vrot.slane %v3851_v11, 6  ;;  %v3856_v54 = vrot.slane %v3854_v23, 7 }
 0x2d3   : > { %3990 = vst.msk [vmem:[%s6362_s21 + $0x78] sm:$0xf] %vm3460_vm7, %v3848_v41  ;;  %v3878_v60 = vsel %vm6714_vm1, %v3869_v5, %v3877_v34  ;;  %v3901_v10 = vshrl.u32 %v4395_v22, 16  ;;  %v3904_v57 = vshll.u32 %v4395_v22, 16  ;;  %v3438_v50 = vmul.f32 %v3389_v28, %v3186_v3 }
 0x2d4   : > { %3993 = vst.msk [vmem:[%s6362_s21 + $0x84] sm:$0xf] %vm3460_vm7, %v3878_v60  ;;  %v3857_v9 = vor.u32 %v3856_v54, %v3853_v32  ;;  %v3189_v52 = vmax.f32 %v3153_v53, 0.0  ;;  %v4947_v15 = vadd.f32 %v6926_v8, %v6877_v4  ;;  %v3879_v16 = vrot.slane %v3877_v34, 4 }
 0x2d5   : > { %v3903_v6 = vrot.slane %v3901_v10, 6  ;;  %v3906_v61 = vrot.slane %v3904_v57, 7  ;;  %v4393_v58 = vpack.c.bf16 %v3438_v50, %v3438_v50 }
 0x2d6   : > { %v3858_v14 = vsel %vm6714_vm1, %v3849_v51, %v3857_v9  ;;  %v3859_v33 = vrot.slane %v3857_v9, 4  ;;  %v3441_v44 = vmul.f32 %v6788_v47, %v3189_v52  ;;  %v3151_v45 = vadd.f32 %v5334_v24, %v4947_v15 }
 0x2d7   : > { %3991 = vst.msk [vmem:[%s6362_s21 + $0x7c] sm:$0xf] %vm3460_vm7, %v3858_v14  ;;  %v3907_v62 = vor.u32 %v3906_v61, %v3903_v6  ;;  %v3881_v25 = vshrl.u32 %v4393_v58, 16  ;;  %v3884_v12 = vshll.u32 %v4393_v58, 16 }
 0x2d8   : > { %v3868_v28 = vsel %vm6714_vm1, %v3859_v33, %v3867_v2  ;;  %v4396_v4 = vpack.c.bf16 %v3441_v44, %v3441_v44  ;;  %v3187_v8 = vmax.f32 %v3151_v45, 0.0 }
 0x2d9   : > { %3992 = vst.msk [vmem:[%s6362_s21 + $0x80] sm:$0xf] %vm3460_vm7, %v3868_v28  ;;  %v3883_v26 = vrot.slane %v3881_v25, 6  ;;  %v3886_v0 = vrot.slane %v3884_v12, 7  ;;  %v3909_v39 = vrot.slane %v3907_v62, 4 }
 0x2da   : > { %v3911_v47 = vshrl.u32 %v4396_v4, 16  ;;  %v3914_v55 = vshll.u32 %v4396_v4, 16  ;;  %v3439_v18 = vmul.f32 %v3394_v49, %v3187_v8 }
 0x2db   : > { %v3887_v27 = vor.u32 %v3886_v0, %v3883_v26 }
 0x2dc   : > { %v3913_v40 = vrot.slane %v3911_v47, 6  ;;  %v3916_v63 = vrot.slane %v3914_v55, 7  ;;  %v4394_v37 = vpack.c.bf16 %v3439_v18, %v3439_v18 }
 0x2dd   : > { %v3888_v19 = vsel %vm6714_vm1, %v3879_v16, %v3887_v27  ;;  %v3889_v59 = vrot.slane %v3887_v27, 4 }
 0x2de   : > { %v3917_v42 = vor.u32 %v3916_v63, %v3913_v40  ;;  %3994 = vst.msk [vmem:[%s6362_s21 + $0x88] sm:$0xf] %vm3460_vm7, %v3888_v19  ;;  %v3891_v31 = vshrl.u32 %v4394_v37, 16  ;;  %v3894_v43 = vshll.u32 %v4394_v37, 16 }
 0x2e0   : > { %v3918_v46 = vsel %vm6714_vm1, %v3909_v39, %v3917_v42  ;;  %v3919_v17 = vrot.slane %v3917_v42, 4  ;;  %v3893_v48 = vrot.slane %v3891_v31, 6  ;;  %v3896_v29 = vrot.slane %v3894_v43, 7 }
 0x2e1   : > { %3997 = vst.msk [vmem:[%s6362_s21 + $0x94] sm:$0xf] %vm3460_vm7, %v3918_v46 }
 0x2e2   : > { %v3999_v1 = vsel %vm6659_vm12, %v3919_v17, %v3998_v13  ;;  %v3897_v56 = vor.u32 %v3896_v29, %v3893_v48 }
 0x2e3   : > { %4000 = vst [vmem:[%s6362_s21 + $0x98] sm:$0x3] %v3999_v1 }
 0x2e4   : > { %v3898_v2 = vsel %vm6714_vm1, %v3889_v59, %v3897_v56  ;;  %v3899_v7 = vrot.slane %v3897_v56, 4 }
 0x2e5   : > { %3995 = vst.msk [vmem:[%s6362_s21 + $0x8c] sm:$0xf] %vm3460_vm7, %v3898_v2 }
 0x2e6   : > { %v3908_v21 = vsel %vm6714_vm1, %v3899_v7, %v3907_v62 }
 0x2e7   : > { %3996 = vst.msk [vmem:[%s6362_s21 + $0x90] sm:$0xf] %vm3460_vm7, %v3908_v21 }
 0x2ea   : > { %v4001_v35 = vld [vmem:[%s6362_s21 + $0x98] sm:$0xe] }
 0x2eb   : > { %v4002_v38 = vsel %vm6707_vm0, 0, %v4001_v35 }
 0x2ec   : > { %4003 = vst [vmem:[%s6362_s21 + $0x98] sm:$0xe] %v4002_v38 }
 0x2ed   : > { %5462 = shalt.err (!%p5459_p4)
}
 0x2ee   : > { %s5463_s29 = scalar_lea.hbm %s7059_s28, 2752  ;;  %s5467_s11 = scalar_lea.hbm %s7113_s4, 5504 }
 0x2ef   : > { %p5464_p9 = scmp.ne.s32.totalorder %s7059_s28, %s5463_s29  ;;  %p5468_p8 = scmp.lt.u32.totalorder %s7059_s28, %s7113_s4 }
 0x2f0   : > { %p5469_p13 = scmp.lt.u32.totalorder %s5467_s11, %s5463_s29  ;;  %p5471_p10 = scmp.lt.u32.totalorder %s5463_s29, %s7059_s28 }
 0x2f1   : > { %p5465_p0 = pnand %p5464_p9, %p5710_p5 }
 0x2f2   : > { %p5470_p6 = por %p5469_p13, %p5468_p8 }
 0x2f3   : > { %p5466_p11 = pneg %p5465_p0 }
 0x2f4   : > { %p5472_p3 = por %p5471_p10, %p5470_p6 }
 0x2f6   : > { %p5473_p7 = pnand %p5472_p3, %p5466_p11 }
 0x2f8   : > { %5476 = shalt.err (!%p5473_p7)
}
 0x2f9   : > { %s5537_s21 = smov 64   ;;  %s5538_s23 = smov 4  }
 0x2fa   : > { %5228 = dma.vmem_to_hbm [thread:$0]  (%p5710_p5), %s7062_s5, 2752, %s7059_s28, %s4010_s19, %s5537_s21, %s5537_s21, %s5538_s23  }
 0x2fb PF: > { %s4038_s6 = sand.u32 1, %s5511_s15   ;;  %p7203_p12 = scmp.ne.s32.totalorder %s7149_s22, 0 }
 0x2fc   : > { %p7204_p2 = scmp.ge.s32.totalorder %s5523_s18, 2  ;;  %s4039_s8 = scalar_lea.sflag [#allocation4], %s4038_s6 }
 0x2fe   : > { %p5245_p1 = pnand %p7204_p2, %p7203_p12 }
 0x300   : > { %5506 = dma.done.wait (!%p5245_p1), %s4039_s8, 2752  }
 0x301   : > { %5508 = vsyncadd (!%p5245_p1), %s4039_s8, 4294964544  ;;  %p19_p4 = scmp.ge.s32.totalorder %s5696_s25, 4   ;;  %s7205_s15 = smov %s5515_s16 }
 0x302   : > { %s7206_s16 = smov %s5519_s17  ;;  %s7207_s17 = smov %s5706_s14 }
 0x303   : > { %s7208_s18 = smov %s5696_s25  ;;  %21 = sbr.rel (!%p19_p4) target bundleno = 7 (0x7), region = 101 }
 0x30a   :  { %4044 = vsyncpa [#allocation3], 1 }
 0x30b   :  { %4046 = vsyncpa [#allocation3 + $0x1], 1 }
 0x30c   :  { %4047 = vsyncpa [#allocation6], 1 }
 0x30d   :  { %4048 = vsyncpa [#allocation9], 1 }
 0x30e   :  { %4049 = vsyncpa [#allocation4], 1 }
 0x30f   :  { %4051 = vsyncpa [#allocation4 + $0x1], 1 }

// kernel: resblock_forward.3
= control target key start
LH: loop header
LB: loop body
LE: loop exit
PB: predicated region body
PF: predicated region fallthrough
CT: control target
= control target key end

     0   :  { %s7094_s0 = inlined_call_operand.hbm [shape: bf16[2,342,8], index: 0, kind: input, shape index: {}]   ;;  %s7095_s1 = inlined_call_operand.hbm [shape: bf16[9,8,8], index: 1, kind: input, shape index: {}]   ;;  %s7096_s2 = inlined_call_operand.hbm [shape: f32[1,8], index: 2, kind: input, shape index: {}]   ;;  %s7097_s3 = inlined_call_operand.hbm [shape: bf16[2,342,4], index: 3, kind: input, shape index: {}]   ;;  %s7098_s4 = inlined_call_operand.hbm [shape: bf16[4,8], index: 4, kind: input, shape index: {}]   ;;  %s7099_s5 = inlined_call_operand.hbm [shape: bf16[2,288,8], index: 5, kind: output, shape index: {}]  }
   0x1   :  { %7155 = sst [smem:[#allocation40_spill]] %s7094_s0 }
   0x2   :  { %7156 = sst [smem:[#allocation41_spill]] %s7095_s1 }
   0x3   :  { %10 = vsyncpa [#allocation3], 0 }
   0x4   :  { %12 = vsyncpa [#allocation3 + $0x1], 0 }
   0x5   :  { %13 = vsyncpa [#allocation6], 0 }
   0x6   :  { %14 = vsyncpa [#allocation9], 0 }
   0x7   :  { %16 = vsyncpa [#allocation9 + $0x1], 0 }
   0x8   :  { %17 = vsyncpa [#allocation4], 0 }
   0x9   :  { %19 = vsyncpa [#allocation4 + $0x1], 0  ;;  %s5759_s18 = smov 0   ;;  %s5761_s19 = smov 0  }
   0xa   :  { %s5763_s20 = smov 0   ;;  %s5765_s21 = smov 0  }
   0xb LB: > { %s5780_s22 = sadd.s32 4294967295, %s5717_s21   ;;  %s4146_s23 = sadd.s32 4294967294, %s5717_s21   ;;  %s5717_s21 = sphi %s5765_s21, %s7252_s21   ;;  %s5713_s20 = sphi %s5763_s20, %s7251_s20   ;;  %s5709_s19 = sphi %s5761_s19, %s7250_s19   ;;  %s5705_s18 = sphi %s5759_s18, %s7249_s18  }
   0xc   : > { %p45_p0 = scmp.ne.s32.totalorder %s5709_s19, %s5705_s18  ;;  %p7100_p1 = scmp.eq.s32.totalorder %s5780_s22, 0 }
   0xd   : > { %p164_p3 = scmp.eq.s32.totalorder %s4146_s23, 1  ;;  %p4147_p5 = scmp.ge.s32.totalorder %s5717_s21, 1 }
   0xe   : > { %p5789_p4 = por %p7100_p1, %p45_p0  ;;  %p171_p7 = scmp.lt.s32.totalorder %s5717_s21, 3 }
   0xf   : > { %p5794_p6 = por %p164_p3, %p45_p0  ;;  %s5719_s27 = smov [#allocation5]  }
  0x10   : > { %s7157_s24 = scalar_select %p5789_p4, 1, 0 }
  0x11   : > { %s7158_s25 = scalar_select %p5794_p6, 1, 0 }
  0x12   : > { %p5799_p8 = pnand %p4147_p5, %p171_p7  ;;  %s183_s28 = sshll.u32 %s5719_s27, 4  ;;  %s5803_s28 = int_to_ptr.vmem [resolvable:$true] %s183_s28 }
  0x13   : > { %s5720_s30 = smov [#allocation10]   ;;  %s5721_s7 = smov [#allocation7]  }
  0x14   : > { %s7159_s26 = scalar_select %p5799_p8, 1, 0 }
  0x15   : > { %p5385_p9 = pneg %p5799_p8  ;;  %s208_s6 = sshll.u32 %s5720_s30, 4  ;;  %s5814_s6 = int_to_ptr.vmem [resolvable:$true] %s208_s6 }
  0x16   : > { %s5816_s8 = sshll.u32 %s5721_s7, 4  ;;  %s7161_s1 = sld [smem:[#allocation41_spill]]  ;;  %s198_s8 = int_to_ptr.vmem [resolvable:$true] %s5816_s8 }
  0x17   : > { %p5810_p11 = pnand %p5385_p9, %p7100_p1 }
  0x19   : > { %p5826_p13 = pneg %p5810_p11 }
  0x1c   : > { %s5495_s11 = scalar_lea.hbm %s7161_s1, 576 }
  0x1d   : > { %p5496_p12 = scmp.ne.s32.totalorder %s7161_s1, %s5495_s11  ;;  %p5502_p5 = scmp.lt.u32.totalorder %s5495_s11, %s7161_s1 }
  0x1f   : > { %p5498_p0 = pnand %p5826_p13, %p5496_p12 }
  0x21   : > { %p5499_p3 = pneg %p5498_p0 }
  0x23   : > { %p5504_p7 = pnand %p5502_p5, %p5499_p3 }
  0x25   : > { %5507 = shalt.err (!%p5504_p7)
}
  0x26   : > { %s5508_s17 = scalar_lea.vmem %s5803_s28, 576  ;;  %p5516_p2 = scmp.lt.s32.totalorder %s5803_s28, %s5803_s28 }
  0x27   : > { %p5509_p9 = scmp.ne.s32.totalorder %s5803_s28, %s5508_s17  ;;  %p5517_p6 = scmp.lt.s32.totalorder %s5508_s17, %s5508_s17 }
  0x29   : > { %p5511_p10 = pnand %p5509_p9, %p5826_p13  ;;  %p5518_p12 = por %p5517_p6, %p5516_p2 }
  0x2b   : > { %p5512_p1 = pneg %p5511_p10 }
  0x2d   : > { %p5519_p0 = pnand %p5518_p12, %p5512_p1 }
  0x2f   : > { %5522 = shalt.err (!%p5519_p0)
}
  0x30   : > { %s7104_s23 = smov 64   ;;  %s5723_s27 = smov 4  }
  0x31   : > { %5388 = dma.hbm_to_vmem [thread:$0]  (!%p5810_p11), %s7161_s1, 576, %s5803_s28, [#allocation6], %s7104_s23, %s7104_s23, %s5723_s27  }
  0x32   : > { %s5523_s11 = scalar_lea.hbm %s7098_s4, 32 }
  0x33   : > { %p5524_p1 = scmp.ne.s32.totalorder %s7098_s4, %s5523_s11  ;;  %p5530_p10 = scmp.lt.u32.totalorder %s5523_s11, %s7098_s4 }
  0x35   : > { %p5526_p2 = pnand %p5524_p1, %p5826_p13 }
  0x37   : > { %p5527_p6 = pneg %p5526_p2 }
  0x39   : > { %p5532_p3 = pnand %p5530_p10, %p5527_p6 }
  0x3b   : > { %5535 = shalt.err (!%p5532_p3)
}
  0x3c   : > { %s5536_s28 = scalar_lea.vmem %s5814_s6, 32  ;;  %p5544_p12 = scmp.lt.s32.totalorder %s5814_s6, %s5814_s6 }
  0x3d   : > { %p5537_p5 = scmp.ne.s32.totalorder %s5814_s6, %s5536_s28  ;;  %p5545_p0 = scmp.lt.s32.totalorder %s5536_s28, %s5536_s28 }
  0x3f   : > { %p5539_p7 = pnand %p5537_p5, %p5826_p13  ;;  %p5546_p1 = por %p5545_p0, %p5544_p12 }
  0x41   : > { %p5540_p9 = pneg %p5539_p7 }
  0x43   : > { %p5547_p2 = pnand %p5546_p1, %p5540_p9 }
  0x45   : > { %5550 = shalt.err (!%p5547_p2)
}
  0x46   : > { %5394 = dma.hbm_to_vmem [thread:$0]  (!%p5810_p11), %s7098_s4, 32, %s5814_s6, [#allocation9]  }
  0x47   : > { %s5551_s10 = scalar_lea.hbm %s7096_s2, 16 }
  0x48   : > { %p5552_p6 = scmp.ne.s32.totalorder %s7096_s2, %s5551_s10  ;;  %p5558_p5 = scmp.lt.u32.totalorder %s5551_s10, %s7096_s2 }
  0x4a   : > { %p5554_p10 = pnand %p5552_p6, %p5826_p13 }
  0x4c   : > { %p5555_p3 = pneg %p5554_p10 }
  0x4e   : > { %p5560_p7 = pnand %p5558_p5, %p5555_p3 }
  0x50   : > { %5563 = shalt.err (!%p5560_p7)
}
  0x51   : > { %s5564_s16 = scalar_lea.vmem %s198_s8, 16  ;;  %s5571_s6 = scalar_lea.vmem %s198_s8, 32 }
  0x52   : > { %p5565_p9 = scmp.ne.s32.totalorder %s198_s8, %s5564_s16  ;;  %p5572_p1 = scmp.lt.s32.totalorder %s198_s8, %s198_s8 }
  0x53   : > { %p5573_p2 = scmp.lt.s32.totalorder %s5571_s6, %s5564_s16 }
  0x54   : > { %p5567_p12 = pnand %p5565_p9, %p5826_p13 }
  0x55   : > { %p5574_p4 = por %p5573_p2, %p5572_p1 }
  0x56   : > { %p5568_p0 = pneg %p5567_p12 }
  0x58   : > { %p5575_p8 = pnand %p5574_p4, %p5568_p0 }
  0x5a   : > { %5578 = shalt.err (!%p5575_p8)
}
  0x5b   : > { %5391 = dma.hbm_to_vmem [thread:$0]  (!%p5810_p11), %s7096_s2, 16, %s198_s8, [#allocation6]  }
  0x5c   : > { %s5893_s14 = sadd.s32 1, %s5717_s21   ;;  %s32_s30 = sadd.s32 1, %s5713_s20 }
  0x5d   : > { %s29_s29 = ssub.s32 %s5717_s21, %s5893_s14  ;;  %p39_p8 = scmp.ne.s32.totalorder %s5713_s20, %s5709_s19 }
  0x5e   : > { %p30_p4 = scmp.eq.s32.totalorder %s29_s29, 0  ;;  %p40_p13 = scmp.eq.s32.totalorder %s5717_s21, 0 }
  0x5f   : > { %p5409_p6 = scmp.lt.s32.totalorder %s5717_s21, 2  ;;  %p7163_p3 = scmp.eq.s32.totalorder %s5780_s22, 1 }
  0x60   : > { %s5903_s7 = scalar_select %p30_p4, %s5713_s20, %s32_s30  }
  0x61   : > { %p41_p10 = por %p40_p13, %p39_p8  ;;  %p5907_p5 = por %p7163_p3, %p39_p8 }
  0x62   : > { %s219_s10 = sand.u32 1, %s5713_s20   ;;  %s7103_s8 = smul.u32 2752, %s5717_s21 }
  0x63   : > { %s5913_s11 = smul.u32 172, %s219_s10  ;;  %s7165_s0 = sld [smem:[#allocation40_spill]] }
  0x64   : > { %p5922_p11 = pnand %p5409_p6, %p41_p10  ;;  %s5930_s29 = scalar_lea.sflag [#allocation3], %s219_s10 }
  0x65   : > { %s223_s28 = scalar_lea.vmem [#allocation2], %s5913_s11 }
  0x66   : > { %s230_s17 = sshll.u32 %s223_s28, 4  ;;  %p5581_p9 = pneg %p5922_p11  ;;  %s5928_s17 = int_to_ptr.vmem [resolvable:$true] %s230_s17 }
  0x69   : > { %s5920_s15 = scalar_lea.hbm %s7165_s0, %s7103_s8  ;;  %s5584_s8 = scalar_lea.hbm %s7165_s0, 5504 }
  0x6a   : > { %s5579_s30 = scalar_lea.hbm %s5920_s15, 2752  ;;  %p5585_p1 = scmp.lt.u32.totalorder %s5920_s15, %s7165_s0 }
  0x6b   : > { %p5580_p7 = scmp.ne.s32.totalorder %s5920_s15, %s5579_s30  ;;  %p5586_p2 = scmp.lt.u32.totalorder %s5584_s8, %s5579_s30 }
  0x6c   : > { %p5588_p8 = scmp.lt.u32.totalorder %s5579_s30, %s5920_s15 }
  0x6d   : > { %p5582_p12 = pnand %p5581_p9, %p5580_p7  ;;  %p5587_p4 = por %p5586_p2, %p5585_p1 }
  0x6f   : > { %p5583_p0 = pneg %p5582_p12  ;;  %p5589_p13 = por %p5588_p8, %p5587_p4 }
  0x71   : > { %p5590_p6 = pnand %p5589_p13, %p5583_p0 }
  0x73   : > { %5593 = shalt.err (!%p5590_p6)
}
  0x74   : > { %s5594_s10 = scalar_lea.vmem %s5928_s17, 2752  ;;  %s5724_s28 = smov [#allocation2]  }
  0x75   : > { %p5595_p10 = scmp.ne.s32.totalorder %s5928_s17, %s5594_s10  ;;  %s5599_s12 = sshll.u32 %s5724_s28, 4  ;;  %s5600_s12 = int_to_ptr.vmem [resolvable:$false] %s5599_s12 }
  0x76   : > { %s5601_s23 = scalar_lea.vmem %s5600_s12, 5504  ;;  %p5602_p12 = scmp.lt.s32.totalorder %s5928_s17, %s5600_s12 }
  0x77   : > { %p5597_p3 = pnand %p5595_p10, %p5581_p9  ;;  %p5603_p1 = scmp.lt.s32.totalorder %s5601_s23, %s5594_s10 }
  0x79   : > { %p5598_p7 = pneg %p5597_p3  ;;  %p5604_p2 = por %p5603_p1, %p5602_p12 }
  0x7b   : > { %p5605_p4 = pnand %p5604_p2, %p5598_p7 }
  0x7d   : > { %5608 = shalt.err (!%p5605_p4)
}
  0x7e   : > { %s7167_s8 = smov 64   ;;  %s7168_s6 = smul.u32 2752, %s5717_s21 }
  0x7f   : > { %5398 = dma.hbm_to_vmem [thread:$0]  (!%p5922_p11), %s5920_s15, 2752, %s5928_s17, %s5930_s29, %s7167_s8, %s7167_s8, %s5723_s27  }
  0x80   : > { %s5966_s10 = scalar_lea.hbm %s7097_s3, %s7168_s6  ;;  %s244_s28 = scalar_lea.vmem [#allocation8], %s5913_s11 }
  0x81   : > { %s251_s12 = sshll.u32 %s244_s28, 4  ;;  %s7169_s23 = sand.u32 1, %s5717_s21   ;;  %s5969_s12 = int_to_ptr.vmem [resolvable:$true] %s251_s12 }
  0x82   : > { %s5973_s0 = scalar_lea.sflag [#allocation9], %s7169_s23  ;;  %s5609_s1 = scalar_lea.hbm %s5966_s10, 2752 }
  0x83   : > { %p5610_p0 = scmp.ne.s32.totalorder %s5966_s10, %s5609_s1  ;;  %s5614_s29 = scalar_lea.hbm %s7097_s3, 5504 }
  0x84   : > { %p5615_p6 = scmp.lt.u32.totalorder %s5966_s10, %s7097_s3  ;;  %p5616_p10 = scmp.lt.u32.totalorder %s5614_s29, %s5609_s1 }
  0x85   : > { %p5612_p8 = pnand %p5610_p0, %p5581_p9  ;;  %p5618_p7 = scmp.lt.u32.totalorder %s5609_s1, %s5966_s10 }
  0x86   : > { %p5617_p3 = por %p5616_p10, %p5615_p6 }
  0x87   : > { %p5613_p13 = pneg %p5612_p8 }
  0x88   : > { %p5619_p12 = por %p5618_p7, %p5617_p3 }
  0x8a   : > { %p5620_p1 = pnand %p5619_p12, %p5613_p13 }
  0x8c   : > { %5623 = shalt.err (!%p5620_p1)
}
  0x8d   : > { %s5624_s11 = scalar_lea.vmem %s5969_s12, 2752  ;;  %s5725_s13 = smov [#allocation8]  }
  0x8e   : > { %p5625_p2 = scmp.ne.s32.totalorder %s5969_s12, %s5624_s11  ;;  %s5629_s28 = sshll.u32 %s5725_s13, 4  ;;  %s5630_s28 = int_to_ptr.vmem [resolvable:$false] %s5629_s28 }
  0x8f   : > { %s5631_s23 = scalar_lea.vmem %s5630_s28, 5504  ;;  %p5632_p8 = scmp.lt.s32.totalorder %s5969_s12, %s5630_s28 }
  0x90   : > { %p5627_p4 = pnand %p5625_p2, %p5581_p9  ;;  %p5633_p6 = scmp.lt.s32.totalorder %s5631_s23, %s5624_s11 }
  0x92   : > { %p5628_p0 = pneg %p5627_p4  ;;  %p5634_p10 = por %p5633_p6, %p5632_p8 }
  0x94   : > { %p5635_p3 = pnand %p5634_p10, %p5628_p0 }
  0x96   : > { %5638 = shalt.err (!%p5635_p3)
}
  0x97   : > { %5401 = dma.hbm_to_vmem [thread:$0]  (!%p5922_p11), %s5966_s10, 2752, %s5969_s12, %s5973_s0, %s7167_s8, %s7167_s8, %s5723_s27  }
  0x98   : > { %p7170_p9 = scmp.ne.s32.totalorder %s7159_s26, 0 }
  0x9a   : > { %263 = sbr.rel (%p7170_p9) target bundleno = 777 (0x309), region = 40 }
  0xa1   : > { %s6005_s1 = sand.u32 1, %s5709_s19   ;;  %p7171_p13 = scmp.ne.s32.totalorder %s7157_s24, 0 }
  0xa2   : > { %s5364_s15 = smul.u32 172, %s6005_s1  ;;  %s266_s17 = scalar_lea.sflag [#allocation3], %s6005_s1 }
  0xa4   : > { %s6009_s29 = scalar_lea.vmem [#allocation2], %s5364_s15 }
  0xa5   : > { %5684 = dma.done.wait (%p7171_p13), %s266_s17, 2752  }
  0xa6   : > { %5686 = vsyncadd (%p7171_p13), %s266_s17, 4294964544  ;;  %p7172_p11 = scmp.eq.s32.totalorder %s5780_s22, 0 }
  0xa8   : > { %5688 = dma.done.wait (%p7172_p11), [#allocation6], 592   ;;  %p7173_p7 = pmov %p7172_p11 }
  0xa9   : > { %s282_s0 = sand.u32 1, %s5780_s22   ;;  %s6020_s27 = scalar_lea.vmem [#allocation8], %s5364_s15 }
  0xaa   : > { %5690 = vsyncadd (%p7173_p7), [#allocation6], 4294966704  ;;  %s283_s26 = scalar_lea.sflag [#allocation9], %s282_s0 }
  0xab   : > { %5692 = dma.done.wait (%p7171_p13), %s283_s26, 2752  }
  0xac   : > { %5694 = vsyncadd (%p7171_p13), %s283_s26, 4294964544  ;;  %p7174_p12 = pmov %p7173_p7 }
  0xad   : > { %p7175_p1 = pmov %p7173_p7 }
  0xae   : > { %5696 = dma.done.wait (%p7174_p12), [#allocation9], 32  }
  0xaf   : > { %5698 = vsyncadd (%p7175_p1), [#allocation9], 4294967264  ;;  %vm664_vm0 = vcmask 1043456   ;;  %vm609_vm1 = vcmask 64512   ;;  %vm1965_vm2 = vcmask 1045504   ;;  %v6034_v3 = vld [vmem:[%s6009_s29 + $0x8] sm:$0xff]  }
  0xb0   : > { %v1964_v0 = vld [vmem:[#allocation5 + $0x14] sm:$0xf]  ;;  %v366_v1 = vld [vmem:[#allocation5 + $0x4] sm:$0xf]  ;;  %v1966_v6 = vrot.slane %v6034_v3, 2  ;;  %v7107_v10 = vshll.u32 %v6034_v3, 16 }
  0xb1   : > { %5355 = vmatprep.subr.msk.bf16.mxu0 %vm664_vm0, %v1964_v0  ;;  %v2058_v2 = vsel %vm664_vm0, %v1964_v0, 0  ;;  %5350 = vmatprep.subr.msk.bf16.mxu1 %vm664_vm0, %v366_v1  ;;  %v6037_v4 = vld [vmem:[%s6009_s29 + $0x10] sm:$0xff]   ;;  %v666_v5 = vsel %vm664_vm0, %v366_v1, 0  ;;  %v6042_v7 = vld [vmem:[%s6009_s29 + $0x18] sm:$0xff]   ;;  %v6046_v9 = vld [vmem:[%s6009_s29] sm:$0xff]   ;;  %v7106_v11 = vshrl.u32 %v6034_v3, 16 }
  0xb2   : > { %4837 = vmatpush3.bf16.msra.mxu0 %v2058_v2  ;;  %4647 = vmatpush3.bf16.msra.mxu1 %v666_v5  ;;  %v1967_v8 = vrot.slane %v6037_v4, 2  ;;  %v1969_v12 = vrot.slane %v6042_v7, 2  ;;  %v364_v13 = vld [vmem:[#allocation5] sm:$0xf]  ;;  %v2274_v14 = vld [vmem:[#allocation5 + $0x18] sm:$0xf] }
  0xb3   : > { %v6052_v15 = vshll.u32 %v6037_v4, 16  ;;  %v462_v17 = vshrl.u32 %v6046_v9, 16  ;;  %v464_v18 = vshll.u32 %v6046_v9, 16  ;;  %v471_v19 = vrot.slane %v7107_v10, 1  ;;  %5351 = vmatprep.subr.msk.bf16.mxu1 %vm664_vm0, %v364_v13  ;;  %5356 = vmatprep.subr.msk.bf16.mxu0 %vm664_vm0, %v2274_v14  ;;  %v6062_v20 = vld [vmem:[%s6009_s29 + $0x20] sm:$0xff]   ;;  %v6070_v23 = vld [vmem:[%s6009_s29 + $0x28] sm:$0xff]  }
  0xb4   : > { %v1968_v16 = vsel %vm1965_vm2, %v1966_v6, %v1967_v8  ;;  %v6066_v21 = vsel %vm1965_vm2, %v1967_v8, %v1969_v12  ;;  %vm460_vm3 = vsmask.f32 7424  ;;  %v2292_v26 = vsel %vm664_vm0, %v2274_v14, 0  ;;  %v6079_v28 = vld [vmem:[%s6009_s29 + $0x30] sm:$0xff]   ;;  %v6114_v45 = vld [vmem:[%s6009_s29 + $0x38] sm:$0xff]   ;;  %v6125_v49 = vld [vmem:[%s6009_s29 + $0x40] sm:$0xff]  }
  0xb5   : > { %4838 = vmatprep.mubr.msk.bf16.mxu0 %vm609_vm1, %v1968_v16  ;;  %v479_v22 = vrot.slane %v6052_v15, 1  ;;  %v466_v24 = vrot.slane %v464_v18, 1  ;;  %v475_v25 = vor.u32 %v7106_v11, %v471_v19  ;;  %v1971_v27 = vrot.slane %v6062_v20, 2  ;;  %v6155_v62 = vld [vmem:[%s6009_s29 + $0x48] sm:$0xff]   ;;  %v6163_v1 = vld [vmem:[%s6009_s29 + $0x50] sm:$0xff]   ;;  %s5365_s24 = smul.u32 144, %s6005_s1 }
  0xb6   : > { %4839 = vmatmul.mubr.msk.bf16.vlgmr.msra.gmra.mrb[0].mxu0 %vm609_vm1, %v6066_v21  ;;  %v1973_v29 = vrot.slane %v6070_v23, 2  ;;  %v6083_v30 = vshrl.u32 %v6037_v4, 16  ;;  %v6086_v31 = vshll.u32 %v6042_v7, 16  ;;  %v6092_v34 = vshrl.u32 %v6042_v7, 16  ;;  %s5366_s8 = smul.u32 2304, %s5780_s22  ;;  %s4009_s22 = scalar_lea.sflag [#allocation4], %s6005_s1 }
  0xb7   : > { %4875 = vmatpush3.bf16.msra.mxu0 %v2292_v26  ;;  %v467_v32 = vor.u32 %v466_v24, %v462_v17  ;;  %v6089_v33 = vsel %vm1965_vm2, %v1969_v12, %v1971_v27  ;;  %v6095_v35 = vshll.u32 %v6062_v20, 16  ;;  %v480_v36 = vsel %vm460_vm3, %v475_v25, %v479_v22  ;;  %v6183_v17 = vld [vmem:[%s6009_s29 + $0x58] sm:$0xff]   ;;  %v6196_v25 = vld [vmem:[#allocation5 + $0x1c] sm:$0xf]  ;;  %s6937_s16 = scalar_lea.vmem [#allocation11], %s5365_s24  ;;  %s5726_s13 = smov [#allocation11]  }
  0xb8   : > { %4842 = vmatprep.mubr.msk.bf16.mxu0 %vm609_vm1, %v6089_v33  ;;  %v483_v37 = vor.u32 %v6083_v30, %v479_v22  ;;  %v487_v38 = vrot.slane %v6086_v31, 1  ;;  %v1975_v39 = vrot.slane %v6079_v28, 2  ;;  %v882_v41 = vsel %vm664_vm0, %v364_v13, 0  ;;  %5357 = vmatprep.subr.msk.bf16.mxu0 %vm664_vm0, %v6196_v25  ;;  %s4022_s10 = sshll.u32 %s6937_s16, 4  ;;  %s7042_s30 = scalar_lea.hbm %s7099_s5, %s5366_s8  ;;  %s7044_s10 = int_to_ptr.vmem [resolvable:$true] %s4022_s10 }
  0xb9   : > { %v472_v40 = vsel %vm460_vm3, %v467_v32, %v471_v19  ;;  %v6106_v42 = vshrl.u32 %v6062_v20, 16  ;;  %v6110_v43 = vsel %vm1965_vm2, %v1971_v27, %v1973_v29  ;;  %v6117_v46 = vshll.u32 %v6070_v23, 16  ;;  %v6188_v19 = vld [vmem:[#allocation5 + $0x8] sm:$0xf]  ;;  %s5639_s11 = scalar_lea.vmem %s7044_s10, 2304  ;;  %s5643_s28 = sshll.u32 %s5726_s13, 4  ;;  %s5644_s28 = int_to_ptr.vmem [resolvable:$false] %s5643_s28 }
  0xba   : > { %4648 = vmatprep.mubr.msk.bf16.mxu1 %vm609_vm1, %v472_v40  ;;  %v488_v44 = vsel %vm460_vm3, %v483_v37, %v487_v38  ;;  %v495_v47 = vrot.slane %v6095_v35, 1  ;;  %v6122_v48 = vsel %vm1965_vm2, %v1973_v29, %v1975_v39  ;;  %v491_v50 = vor.u32 %v6092_v34, %v487_v38  ;;  %v6209_v32 = vld [vmem:[%s6009_s29 + $0x60] sm:$0xff]   ;;  %v6219_v40 = vld [vmem:[%s6009_s29 + $0x90] sm:$0xf]  ;;  %p5640_p2 = scmp.ne.s32.totalorder %s7044_s10, %s5639_s11  ;;  %s5645_s23 = scalar_lea.vmem %s5644_s28, 4608 }
  0xbb   : > { %4649 = vmatmul.mubr.msk.bf16.vlgmr.msra.gmra.mrb[0].mxu1 %vm609_vm1, %v480_v36  ;;  %v503_v52 = vrot.slane %v6117_v46, 1  ;;  %v1977_v53 = vrot.slane %v6114_v45, 2  ;;  %v6137_v54 = vshll.u32 %v6079_v28, 16  ;;  %v1979_v55 = vrot.slane %v6125_v49, 2  ;;  %p5646_p8 = scmp.lt.s32.totalorder %s7044_s10, %s5644_s28  ;;  %p5647_p6 = scmp.lt.s32.totalorder %s5645_s23, %s5639_s11 }
  0xbc   : > { %4685 = vmatpush3.bf16.msra.mxu1 %v882_v41  ;;  %4652 = vmatprep.mubr.msk.bf16.mxu1 %vm609_vm1, %v488_v44  ;;  %v499_v51 = vor.u32 %v6106_v42, %v495_v47  ;;  %v496_v56 = vsel %vm460_vm3, %v491_v50, %v495_v47  ;;  %v6142_v57 = vshrl.u32 %v6070_v23, 16  ;;  %v6146_v59 = vshrl.u32 %v6079_v28, 16  ;;  %v360_v41 = vld [vmem:[%s6009_s29 + $0x94] sm:$0xf]  ;;  %p5641_p4 = pnand %p5640_p2, %p5907_p5 }
  0xbd   : > { %v6149_v60 = vshll.u32 %v6114_v45, 16  ;;  %v6152_v61 = vsel %vm1965_vm2, %v1975_v39, %v1977_v53  ;;  %v511_v63 = vrot.slane %v6137_v54, 1  ;;  %v6160_v0 = vsel %vm1965_vm2, %v1977_v53, %v1979_v55  ;;  %5352 = vmatprep.subr.msk.bf16.mxu1 %vm664_vm0, %v6188_v19  ;;  %v362_v53 = vld [vmem:[%s6009_s29 + $0x9c] sm:$0xf]  ;;  %p5648_p10 = por %p5647_p6, %p5646_p8 }
  0xbe   : > { %4843 = vmatmul.mubr.msk.bf16.gmra.mrb[4].mxu0 %vm609_vm1, %v6110_v43  ;;  %v504_v58 = vsel %vm460_vm3, %v499_v51, %v503_v52  ;;  %v507_v2 = vor.u32 %v6142_v57, %v503_v52  ;;  %v1981_v8 = vrot.slane %v6155_v62, 2  ;;  %v6175_v12 = vshll.u32 %v6125_v49, 16  ;;  %v6233_v52 = vld [vmem:[%s6009_s29 + $0x68] sm:$0xff]   ;;  %p5642_p0 = pneg %p5641_p4 }
  0xbf   : > { %4846 = vmatprep.mubr.msk.bf16.mxu0 %vm609_vm1, %v6122_v48  ;;  %7176 = vst [vmem:[#allocation17_spill] sm:$0xff] %v6149_v60  ;;  %v515_v5 = vor.u32 %v6146_v59, %v511_v63  ;;  %v519_v6 = vrot.slane %v6149_v60, 1  ;;  %v1983_v13 = vrot.slane %v6163_v1, 2  ;;  %v6180_v16 = vshrl.u32 %v6114_v45, 16 }
  0xc0   : > { %7177 = vst [vmem:[#allocation18_spill] sm:$0xff] %v6175_v12  ;;  %v512_v14 = vsel %vm460_vm3, %v507_v2, %v511_v63  ;;  %v6186_v18 = vshll.u32 %v6155_v62, 16  ;;  %v6192_v24 = vshrl.u32 %v6125_v49, 16  ;;  %v6199_v26 = vsel %vm1965_vm2, %v1979_v55, %v1981_v8  ;;  %p5649_p3 = pnand %p5648_p10, %p5642_p0 }
  0xc1   : > { %7178 = vst [vmem:[#allocation19_spill] sm:$0xff] %v6180_v16  ;;  %v520_v22 = vsel %vm460_vm3, %v515_v5, %v519_v6  ;;  %v527_v27 = vrot.slane %v6175_v12, 1  ;;  %v6206_v29 = vsel %vm1965_vm2, %v1981_v8, %v1983_v13  ;;  %v523_v36 = vor.u32 %v6180_v16, %v519_v6  ;;  %v6250_v5 = vld [vmem:[%s6009_s29 + $0x98] sm:$0xf] }
  0xc2   : > { %7179 = vst [vmem:[#allocation20_spill] sm:$0xff] %v6186_v18  ;;  %7180 = vst [vmem:[#allocation21_spill] sm:$0xff] %v6192_v24  ;;  %v1985_v37 = vrot.slane %v6183_v17, 2  ;;  %v535_v38 = vrot.slane %v6186_v18, 1  ;;  %v6225_v44 = vshll.u32 %v6163_v1, 16  ;;  %v1987_v47 = vrot.slane %v6209_v32, 2 }
  0xc3   : > { %4653 = vmatmul.mubr.msk.bf16.gmra.mrb[4].mxu1 %vm609_vm1, %v496_v56  ;;  %v531_v39 = vor.u32 %v6192_v24, %v527_v27  ;;  %v528_v50 = vsel %vm460_vm3, %v523_v36, %v527_v27  ;;  %v6230_v51 = vshrl.u32 %v6155_v62, 16  ;;  %v6238_v56 = vshrl.u32 %v6163_v1, 16  ;;  %v6340_v24 = vld [vmem:[%s6009_s29 + $0x88] sm:$0xff]  }
  0xc4   : > { %4656 = vmatprep.mubr.msk.bf16.mxu1 %vm609_vm1, %v504_v58  ;;  %7181 = vst [vmem:[#allocation22_spill] sm:$0xff] %v6225_v44  ;;  %v6241_v58 = vshll.u32 %v6183_v17, 16  ;;  %v6244_v63 = vcombine.low %v6219_v40, %v360_v41  ;;  %v6247_v2 = vsel %vm1965_vm2, %v1983_v13, %v1985_v37  ;;  %v543_v6 = vrot.slane %v6225_v44, 1 }
  0xc5   : > { %7182 = vst [vmem:[#allocation23_spill] sm:$0xff] %v6230_v51  ;;  %v536_v55 = vsel %vm460_vm3, %v531_v39, %v535_v38  ;;  %7183 = vst [vmem:[#allocation24_spill] sm:$0xff] %v6238_v56  ;;  %v6255_v8 = vsel %vm1965_vm2, %v1985_v37, %v1987_v47  ;;  %v539_v27 = vor.u32 %v6230_v51, %v535_v38  ;;  %v1989_v41 = vrot.slane %v6233_v52, 2 }
  0xc6   : > { %4847 = vmatmul.mubr.msk.bf16.gmra.mrb[8].mxu0 %vm609_vm1, %v6152_v61  ;;  %7184 = vst [vmem:[#allocation25_spill] sm:$0xff] %v6241_v58  ;;  %7185 = vst [vmem:[#allocation26_spill] sm:$0xff] %v6244_v63  ;;  %v547_v13 = vor.u32 %v6238_v56, %v543_v6  ;;  %v551_v36 = vrot.slane %v6241_v58, 1  ;;  %v6270_v37 = vrot.slane %v6244_v63, 2  ;;  %v6277_v38 = vshll.u32 %v6209_v32, 16  ;;  %v6301_v56 = vld [vmem:[%s6009_s29 + $0x78] sm:$0xff]  }
  0xc7   : > { %4850 = vmatprep.mubr.msk.bf16.mxu0 %vm609_vm1, %v6160_v0  ;;  %v6288_v11 = vshrl.u32 %v6183_v17, 16  ;;  %v6292_v63 = vshrl.u32 %v6209_v32, 16  ;;  %v6295_v58 = vshll.u32 %v6233_v52, 16  ;;  %v6298_v44 = vsel %vm1965_vm2, %v1987_v47, %v1989_v41 }
  0xc8   : > { %7186 = vst [vmem:[#allocation27_spill] sm:$0xff] %v6277_v38  ;;  %v552_v10 = vsel %vm460_vm3, %v547_v13, %v551_v36  ;;  %v6374_v60 = vcombine.low %v6250_v5, %v6250_v5  ;;  %vm3531_vm4 = vcmask 1041408   ;;  %vm2509_vm5 = vsmask.f32 5376 }
  0xc9   : > { %7187 = vst [vmem:[#allocation28_spill] sm:$0xff] %v6288_v11  ;;  %7188 = vst [vmem:[#allocation29_spill] sm:$0xff] %v6292_v63  ;;  %v555_v13 = vor.u32 %v6288_v11, %v551_v36  ;;  %v567_v18 = vrot.slane %v6295_v58, 1  ;;  %v6326_v36 = vshrl.u32 %v6233_v52, 16  ;;  %vm1063_vm6 = vcmask 1046528  }
  0xca   : > { %7189 = vst [vmem:[#allocation30_spill] sm:$0xff] %v6295_v58  ;;  %v6333_v58 = vshll.u32 %v6301_v56, 16  ;;  %vm2867_vm7 = vcmask 1044480   ;;  %vm1607_vm8 = vsmask.f32 6400  ;;  %vm3476_vm9 = vcmask 31744  }
  0xcb   : > { %4657 = vmatmul.mubr.msk.bf16.gmra.mrb[8].mxu1 %vm609_vm1, %v512_v14  ;;  %v6258_v14 = vld [vmem:[%s6009_s29 + $0x70] sm:$0xff]   ;;  %7191 = vst [vmem:[#allocation32_spill] sm:$0xff] %v6326_v36  ;;  %vm3971_vm10 = vcmask 60416  }
  0xcc   : > { %4660 = vmatprep.mubr.msk.bf16.mxu1 %vm609_vm1, %v520_v22  ;;  %v6261_v22 = vcombine.low %v6250_v5, %v362_v53  ;;  %7193 = vst [vmem:[#allocation34_spill] sm:$0xff] %v6333_v58 }
  0xce   : > { %4851 = vmatmul.mubr.msk.bf16.gmra.mrb[12].mxu0 %vm609_vm1, %v6199_v26  ;;  %v7116_v39 = vrot.slane %v6261_v22, 2 }
  0xcf   : > { %4854 = vmatprep.mubr.msk.bf16.mxu0 %vm609_vm1, %v6206_v29 }
  0xd0   : > { %v6284_v53 = vsel %vm1965_vm2, %v6270_v37, %v7116_v39  ;;  %v6309_v39 = vld [vmem:[%s6009_s29 + $0x80] sm:$0xff]  }
  0xd3   : > { %4661 = vmatmul.mubr.msk.bf16.gmra.mrb[12].mxu1 %vm609_vm1, %v528_v50  ;;  %v1991_v50 = vrot.slane %v6258_v14, 2 }
  0xd4   : > { %4664 = vmatprep.mubr.msk.bf16.mxu1 %vm609_vm1, %v536_v55  ;;  %v544_v55 = vsel %vm460_vm3, %v539_v27, %v543_v6  ;;  %v559_v6 = vrot.slane %v6277_v38, 1 }
  0xd5   : > { %v6306_v27 = vsel %vm1965_vm2, %v1989_v41, %v1991_v50  ;;  %v1993_v41 = vrot.slane %v6301_v56, 2 }
  0xd6   : > { %4855 = vmatmul.mubr.msk.bf16.gmra.mrb[16].mxu0 %vm609_vm1, %v6247_v2  ;;  %v563_v47 = vor.u32 %v6292_v63, %v559_v6  ;;  %v560_v38 = vsel %vm460_vm3, %v555_v13, %v559_v6  ;;  %v6330_v63 = vshrl.u32 %v6258_v14, 16  ;;  %v571_v13 = vor.u32 %v6326_v36, %v567_v18 }
  0xd7   : > { %4858 = vmatprep.mubr.msk.bf16.mxu0 %vm609_vm1, %v6255_v8  ;;  %v6336_v51 = vsel %vm1965_vm2, %v1991_v50, %v1993_v41  ;;  %v583_v50 = vrot.slane %v6333_v58, 1  ;;  %v6364_v36 = vshrl.u32 %v6309_v39, 16  ;;  %v6367_v58 = vshll.u32 %v6340_v24, 16 }
  0xd8   : > { %v568_v11 = vsel %vm460_vm3, %v563_v47, %v567_v18  ;;  %7192 = vst [vmem:[#allocation33_spill] sm:$0xff] %v6330_v63 }
  0xd9   : > { %7196 = vst [vmem:[#allocation37_spill] sm:$0xff] %v6364_v36  ;;  %7197 = vst [vmem:[#allocation38_spill] sm:$0xff] %v6367_v58 }
  0xdb   : > { %4665 = vmatmul.mubr.msk.bf16.gmra.mrb[16].mxu1 %vm609_vm1, %v544_v55  ;;  %v6321_v55 = vshll.u32 %v6258_v14, 16 }
  0xdc   : > { %4668 = vmatprep.mubr.msk.bf16.mxu1 %vm609_vm1, %v552_v10  ;;  %v1995_v10 = vrot.slane %v6309_v39, 2 }
  0xdd   : > { %7190 = vst [vmem:[#allocation31_spill] sm:$0xff] %v6321_v55  ;;  %v575_v12 = vrot.slane %v6321_v55, 1  ;;  %v1997_v55 = vrot.slane %v6340_v24, 2 }
  0xde   : > { %4859 = vmatmul.mubr.msk.bf16.gmra.mrb[20].mxu0 %vm609_vm1, %v6298_v44  ;;  %v6344_v6 = vsel %vm1965_vm2, %v1993_v41, %v1995_v10 }
  0xdf   : > { %4862 = vmatprep.mubr.msk.bf16.mxu0 %vm609_vm1, %v6306_v27  ;;  %v579_v47 = vor.u32 %v6330_v63, %v575_v12  ;;  %v576_v41 = vsel %vm460_vm3, %v571_v13, %v575_v12  ;;  %v6370_v63 = vsel %vm1965_vm2, %v1995_v10, %v1997_v55  ;;  %v6380_v13 = vsel %vm1965_vm2, %v1997_v55, %v6270_v37 }
  0xe0   : > { %v6386_v10 = vcombine.low %v6219_v40, %v6219_v40  ;;  %v2001_v55 = vrot.slane %v6374_v60, 2 }
  0xe1   : > { %v584_v18 = vsel %vm460_vm3, %v579_v47, %v583_v50 }
  0xe2   : > { %v605_v40 = vshll.u32 %v6386_v10, 16 }
  0xe3   : > { %4669 = vmatmul.mubr.msk.bf16.gmra.mrb[20].mxu1 %vm609_vm1, %v560_v38  ;;  %v6356_v38 = vshll.u32 %v6309_v39, 16 }
  0xe4   : > { %4672 = vmatprep.mubr.msk.bf16.mxu1 %vm609_vm1, %v568_v11  ;;  %v6360_v11 = vshrl.u32 %v6301_v56, 16 }
  0xe5   : > { %7194 = vst [vmem:[#allocation35_spill] sm:$0xff] %v6356_v38  ;;  %v591_v12 = vrot.slane %v6356_v38, 1 }
  0xe6   : > { %4863 = vmatmul.mubr.msk.bf16.gmra.mrb[24].mxu0 %vm609_vm1, %v6336_v51  ;;  %7195 = vst [vmem:[#allocation36_spill] sm:$0xff] %v6360_v11  ;;  %v587_v47 = vor.u32 %v6360_v11, %v583_v50  ;;  %v6397_v50 = vshrl.u32 %v6340_v24, 16  ;;  %v2002_v11 = vsel %vm1965_vm2, %v6270_v37, %v2001_v55  ;;  %v6415_v37 = vld [vmem:[#allocation5 + $0x20] sm:$0xf]  ;;  %v2525_v55 = vrot.slane %v6146_v59, 2 }
  0xe7   : > { %4866 = vmatprep.mubr.msk.bf16.mxu0 %vm609_vm1, %v6344_v6  ;;  %v595_v5 = vor.u32 %v6364_v36, %v591_v12  ;;  %v607_v36 = vrot.slane %v605_v40, 1 }
  0xe8   : > { %7198 = vst [vmem:[#allocation39_spill] sm:$0xff] %v6397_v50 }
  0xeb   : > { %4673 = vmatmul.mubr.msk.bf16.gmra.mrb[24].mxu1 %vm609_vm1, %v576_v41  ;;  %v599_v41 = vrot.slane %v6367_v58, 1 }
  0xec   : > { %4676 = vmatprep.mubr.msk.bf16.mxu1 %vm609_vm1, %v584_v18  ;;  %v592_v18 = vsel %vm460_vm3, %v587_v47, %v591_v12  ;;  %v2650_v47 = vsel %vm664_vm0, %v6196_v25, 0  ;;  %v2514_v25 = vrot.slane %v6086_v31, 3 }
  0xed   : > { %v600_v38 = vsel %vm460_vm3, %v595_v5, %v599_v41  ;;  %v603_v58 = vor.u32 %v6397_v50, %v599_v41 }
  0xee   : > { %4867 = vmatmul.mubr.msk.bf16.gmra.mrb[28].mxu0 %vm609_vm1, %v6370_v63 }
  0xef   : > { %4870 = vmatprep.mubr.msk.bf16.mxu0 %vm609_vm1, %v6380_v13  ;;  %v608_v12 = vsel %vm460_vm3, %v603_v58, %v607_v36  ;;  %v6425_v58 = vld [vmem:[#allocation5 + $0xc] sm:$0xf]  ;;  %v2522_v36 = vrot.slane %v6117_v46, 3 }
  0xf3   : > { %4677 = vmatmul.mubr.msk.bf16.gmra.mrb[28].mxu1 %vm609_vm1, %v592_v18  ;;  %v2526_v18 = vrot.slane %v6137_v54, 3 }
  0xf4   : > { %4680 = vmatprep.mubr.msk.bf16.mxu1 %vm609_vm1, %v600_v38  ;;  %v1065_v38 = vrot.slane %v6034_v3, 1 }
  0xf6   : > { %4871 = vmatmul.mubr.msk.bf16.gmra.mrb[32].mxu0 %vm609_vm1, %v2002_v11 }
  0xf7   : > { %4876 = vmatprep.mubr.msk.bf16.mxu0 %vm609_vm1, %v6066_v21  ;;  %v1156_v21 = vsel %vm664_vm0, %v6188_v19, 0  ;;  %v2513_v19 = vrot.slane %v6092_v34, 2 }
  0xfb   : > { %4681 = vmatmul.mubr.msk.bf16.gmra.mrb[32].mxu1 %vm609_vm1, %v608_v12  ;;  %v2529_v12 = vrot.slane %v6180_v16, 2 }
  0xfc   : > { %4686 = vmatprep.mubr.msk.bf16.mxu1 %vm609_vm1, %v6046_v9 }
  0xfe   : > { %4877 = vmatmul.mubr.msk.bf16.vlgmr.msra.gmra.mrb[0].mxu0 %vm609_vm1, %v6089_v33  ;;  %v6445_v33 = vld [vmem:[#allocation10] sm:$0x3] }
  0xff   : > { %4913 = vmatpush3.bf16.msra.mxu0 %v2650_v47  ;;  %4880 = vmatprep.mubr.msk.bf16.mxu0 %vm609_vm1, %v6110_v43  ;;  %v6453_v43 = vsel %vm3531_vm4, %v6445_v33, 0  ;;  %v7200_v47 = vld [vmem:[#allocation17_spill] sm:$0xff] }
 0x100   : > { %5358 = vmatprep.subr.msk.bf16.mxu0 %vm664_vm0, %v6415_v37 }
 0x103   : > { %4687 = vmatmul.mubr.msk.bf16.vlgmr.msra.gmra.mrb[0].mxu1 %vm609_vm1, %v6034_v3 }
 0x104   : > { %4723 = vmatpush3.bf16.msra.mxu1 %v1156_v21  ;;  %4690 = vmatprep.mubr.msk.bf16.mxu1 %vm609_vm1, %v6037_v4  ;;  %v2530_v21 = vrot.slane %v7200_v47, 3 }
 0x105   : > { %5353 = vmatprep.subr.msk.bf16.mxu1 %vm664_vm0, %v6425_v58 }
 0x106   : > { %4881 = vmatmul.mubr.msk.bf16.gmra.mrb[4].mxu0 %vm609_vm1, %v6122_v48  ;;  %v6484_v48 = vld [vmem:[%s6009_s29 + $0xa0] ss:$0 sps:$4 sm:$0xff]  }
 0x107   : > { %4884 = vmatprep.mubr.msk.bf16.mxu0 %vm609_vm1, %v6152_v61  ;;  %v2510_v61 = vrot.slane %v6083_v30, 2 }
 0x10b   : > { %4691 = vmatmul.mubr.msk.bf16.gmra.mrb[4].mxu1 %vm609_vm1, %v6042_v7 }
 0x10c   : > { %4694 = vmatprep.mubr.msk.bf16.mxu1 %vm609_vm1, %v6062_v20 }
 0x10e   : > { %4885 = vmatmul.mubr.msk.bf16.gmra.mrb[8].mxu0 %vm609_vm1, %v6160_v0  ;;  %v2511_v0 = vrot.slane %v6052_v15, 3 }
 0x10f   : > { %4888 = vmatprep.mubr.msk.bf16.mxu0 %vm609_vm1, %v6199_v26  ;;  %v2283_v26 = vrot.slane %v6484_v48, 2 }
 0x113   : > { %4695 = vmatmul.mubr.msk.bf16.gmra.mrb[8].mxu1 %vm609_vm1, %v6070_v23 }
 0x114   : > { %4698 = vmatprep.mubr.msk.bf16.mxu1 %vm609_vm1, %v6079_v28 }
 0x116   : > { %4889 = vmatmul.mubr.msk.bf16.gmra.mrb[12].mxu0 %vm609_vm1, %v6206_v29  ;;  %v2512_v29 = vor.u32 %v2511_v0, %v2510_v61  ;;  %v1067_v61 = vrot.slane %v6037_v4, 1  ;;  %v1069_v0 = vrot.slane %v6042_v7, 1 }
 0x117   : > { %4892 = vmatprep.mubr.msk.bf16.mxu0 %vm609_vm1, %v6247_v2  ;;  %v2517_v2 = vrot.slane %v6106_v42, 2 }
 0x11b   : > { %4699 = vmatmul.mubr.msk.bf16.gmra.mrb[12].mxu1 %vm609_vm1, %v6114_v45 }
 0x11c   : > { %4702 = vmatprep.mubr.msk.bf16.mxu1 %vm609_vm1, %v6125_v49 }
 0x11e   : > { %4893 = vmatmul.mubr.msk.bf16.gmra.mrb[16].mxu0 %vm609_vm1, %v6255_v8  ;;  %v2518_v8 = vrot.slane %v6095_v35, 3 }
 0x11f   : > { %4896 = vmatprep.mubr.msk.bf16.mxu0 %vm609_vm1, %v6298_v44  ;;  %v2515_v44 = vor.u32 %v2514_v25, %v2513_v19  ;;  %v2527_v19 = vor.u32 %v2526_v18, %v2525_v55  ;;  %v2531_v25 = vor.u32 %v2530_v21, %v2529_v12  ;;  %v7206_v12 = vld [vmem:[#allocation22_spill] sm:$0xff] }
 0x120   : > { %v2519_v11 = vor.u32 %v2518_v8, %v2517_v2  ;;  %v7202_v2 = vld [vmem:[#allocation18_spill] sm:$0xff]  ;;  %v2542_v21 = vrot.slane %v7206_v12, 3 }
 0x121   : > { %v2534_v8 = vrot.slane %v7202_v2, 3 }
 0x122   : > { %v2520_v41 = vsel %vm2509_vm5, %v2515_v44, %v2519_v11 }
 0x123   : > { %4703 = vmatmul.mubr.msk.bf16.gmra.mrb[16].mxu1 %vm609_vm1, %v6155_v62 }
 0x124   : > { %4706 = vmatprep.mubr.msk.bf16.mxu1 %vm609_vm1, %v6163_v1 }
 0x126   : > { %4897 = vmatmul.mubr.msk.bf16.gmra.mrb[20].mxu0 %vm609_vm1, %v6306_v27  ;;  %v2516_v27 = vsel %vm2509_vm5, %v2512_v29, %v2515_v44  ;;  %v6539_v29 = vsel %vm1063_vm6, %v1067_v61, %v1069_v0 }
 0x127   : > { %4900 = vmatprep.mubr.msk.bf16.mxu0 %vm609_vm1, %v6336_v51  ;;  %v7199_v51 = vrot.slane %v6261_v22, 2 }
 0x12b   : > { %4707 = vmatmul.mubr.msk.bf16.gmra.mrb[20].mxu1 %vm609_vm1, %v6183_v17 }
 0x12c   : > { %4710 = vmatprep.mubr.msk.bf16.mxu1 %vm609_vm1, %v6209_v32 }
 0x12e   : > { %4901 = vmatmul.mubr.msk.bf16.gmra.mrb[24].mxu0 %vm609_vm1, %v6344_v6  ;;  %v1064_v6 = vrot.slane %v6046_v9, 1  ;;  %v2960_v9 = vsel %vm664_vm0, %v6415_v37, 0  ;;  %v6534_v37 = vsel %vm1063_vm6, %v1065_v38, %v1067_v61 }
 0x12f   : > { %4904 = vmatprep.mubr.msk.bf16.mxu0 %vm609_vm1, %v6370_v63  ;;  %v2284_v63 = vsel %vm1965_vm2, %v7199_v51, %v2283_v26  ;;  %v1390_v26 = vsel %vm664_vm0, %v6425_v58, 0  ;;  %v7201_v51 = vld [vmem:[#allocation21_spill] sm:$0xff] }
 0x130   : > { %v1066_v5 = vsel %vm1063_vm6, %v1064_v6, %v1065_v38  ;;  %v7204_v6 = vld [vmem:[#allocation20_spill] sm:$0xff]  ;;  %v1071_v38 = vrot.slane %v6062_v20, 1 }
 0x131   : > { %v2538_v58 = vrot.slane %v7204_v6, 3 }
 0x133   : > { %4711 = vmatmul.mubr.msk.bf16.gmra.mrb[24].mxu1 %vm609_vm1, %v6233_v52 }
 0x134   : > { %4714 = vmatprep.mubr.msk.bf16.mxu1 %vm609_vm1, %v6258_v14 }
 0x136   : > { %4905 = vmatmul.mubr.msk.bf16.gmra.mrb[28].mxu0 %vm609_vm1, %v6380_v13 }
 0x137   : > { %4908 = vmatprep.mubr.msk.bf16.mxu0 %vm609_vm1, %v6284_v53  ;;  %v2521_v53 = vrot.slane %v6142_v57, 2 }
 0x139   : > { %v2523_v13 = vor.u32 %v2522_v36, %v2521_v53  ;;  %v7203_v53 = vld [vmem:[#allocation23_spill] sm:$0xff] }
 0x13a   : > { %v2537_v36 = vrot.slane %v7203_v53, 2  ;;  %v7218_v53 = vld [vmem:[#allocation35_spill] sm:$0xff] }
 0x13b   : > { %4715 = vmatmul.mubr.msk.bf16.gmra.mrb[28].mxu1 %vm609_vm1, %v6301_v56  ;;  %v2524_v40 = vsel %vm2509_vm5, %v2519_v11, %v2523_v13  ;;  %v2528_v44 = vsel %vm2509_vm5, %v2523_v13, %v2527_v19  ;;  %v1073_v11 = vrot.slane %v6070_v23, 1  ;;  %v2566_v2 = vrot.slane %v7218_v53, 3 }
 0x13c   : > { %4718 = vmatprep.mubr.msk.bf16.mxu1 %vm609_vm1, %v6309_v39 }
 0x13d   : > { %v6563_v55 = vsel %vm1063_vm6, %v1071_v38, %v1073_v11 }
 0x13e   : > { %4909 = vmatmul.mubr.msk.bf16.gmra.mrb[32].mxu0 %vm609_vm1, %v2284_v63  ;;  %v2533_v63 = vrot.slane %v7201_v51, 2 }
 0x13f   : > { %4914 = vmatprep.mubr.msk.bf16.mxu0 %vm609_vm1, %v2516_v27  ;;  %v6544_v27 = vld [vmem:[#allocation5 + $0x10] sm:$0xf] }
 0x140   : > { %v2535_v13 = vor.u32 %v2534_v8, %v2533_v63 }
 0x142   : > { %v2536_v18 = vsel %vm2509_vm5, %v2531_v25, %v2535_v13 }
 0x143   : > { %4719 = vmatmul.mubr.msk.bf16.gmra.mrb[32].mxu1 %vm609_vm1, %v6340_v24 }
 0x144   : > { %4724 = vmatprep.mubr.msk.bf16.mxu1 %vm609_vm1, %v1066_v5  ;;  %v2539_v5 = vor.u32 %v2538_v58, %v2537_v36 }
 0x146   : > { %4915 = vmatmul.mubr.msk.bf16.vlgmr.msra.gmra.mrb[0].mxu0 %vm609_vm1, %v2520_v41  ;;  %v6560_v41 = vsel %vm1063_vm6, %v1069_v0, %v1071_v38  ;;  %v2540_v61 = vsel %vm2509_vm5, %v2535_v13, %v2539_v5  ;;  %v1075_v0 = vrot.slane %v6079_v28, 1  ;;  %v7209_v13 = vld [vmem:[#allocation29_spill] sm:$0xff] }
 0x147   : > { %4951 = vmatpush3.bf16.msra.mxu0 %v2960_v9  ;;  %4918 = vmatprep.mubr.msk.bf16.mxu0 %vm609_vm1, %v2524_v40  ;;  %v7205_v9 = vld [vmem:[#allocation24_spill] sm:$0xff] }
 0x148   : > { %5359 = vmatprep.subr.msk.bf16.mxu0 %vm3531_vm4, %v6445_v33  ;;  %v2532_v33 = vsel %vm2509_vm5, %v2527_v19, %v2531_v25  ;;  %v2541_v40 = vrot.slane %v7205_v9, 2  ;;  %v7207_v19 = vld [vmem:[#allocation28_spill] sm:$0xff]  ;;  %v1077_v25 = vrot.slane %v6114_v45, 1  ;;  %v6580_v36 = vsel %vm1063_vm6, %v1073_v11, %v1075_v0  ;;  %v7214_v9 = vld [vmem:[#allocation31_spill] sm:$0xff] }
 0x149   : > { %v1079_v11 = vrot.slane %v6125_v49, 1  ;;  %v2558_v6 = vrot.slane %v7214_v9, 3 }
 0x14a   : > { %v2543_v8 = vor.u32 %v2542_v21, %v2541_v40  ;;  %v6583_v58 = vsel %vm1063_vm6, %v1075_v0, %v1077_v25  ;;  %v7212_v21 = vld [vmem:[#allocation30_spill] sm:$0xff] }
 0x14b   : > { %4725 = vmatmul.mubr.msk.bf16.vlgmr.msra.gmra.mrb[0].mxu1 %vm609_vm1, %v6534_v37 }
 0x14c   : > { %4761 = vmatpush3.bf16.msra.mxu1 %v1390_v26  ;;  %4728 = vmatprep.mubr.msk.bf16.mxu1 %vm609_vm1, %v6539_v29  ;;  %v2545_v26 = vrot.slane %v7207_v19, 2  ;;  %v2544_v38 = vsel %vm2509_vm5, %v2539_v5, %v2543_v8  ;;  %v7210_v19 = vld [vmem:[#allocation27_spill] sm:$0xff]  ;;  %v1081_v5 = vrot.slane %v6155_v62, 1 }
 0x14d   : > { %5354 = vmatprep.subr.msk.bf16.mxu1 %vm664_vm0, %v6544_v27  ;;  %v2550_v12 = vrot.slane %v7210_v19, 3  ;;  %v6600_v19 = vsel %vm1063_vm6, %v1077_v25, %v1079_v11  ;;  %v1083_v25 = vrot.slane %v6163_v1, 1 }
 0x14e   : > { %4919 = vmatmul.mubr.msk.bf16.gmra.mrb[4].mxu0 %vm609_vm1, %v2528_v44  ;;  %v7208_v44 = vld [vmem:[#allocation25_spill] sm:$0xff] }
 0x14f   : > { %4922 = vmatprep.mubr.msk.bf16.mxu0 %vm609_vm1, %v2532_v33  ;;  %v2546_v63 = vrot.slane %v7208_v44, 3  ;;  %v2549_v44 = vrot.slane %v7209_v13, 2  ;;  %v6620_v9 = vsel %vm1063_vm6, %v1081_v5, %v1083_v25 }
 0x151   : > { %v2547_v33 = vor.u32 %v2546_v63, %v2545_v26  ;;  %v2554_v26 = vrot.slane %v7212_v21, 3  ;;  %v2551_v63 = vor.u32 %v2550_v12, %v2549_v44  ;;  %v7216_v44 = vld [vmem:[#allocation34_spill] sm:$0xff] }
 0x153   : > { %4729 = vmatmul.mubr.msk.bf16.gmra.mrb[4].mxu1 %vm609_vm1, %v6560_v41  ;;  %v2552_v21 = vsel %vm2509_vm5, %v2547_v33, %v2551_v63 }
 0x154   : > { %4732 = vmatprep.mubr.msk.bf16.mxu1 %vm609_vm1, %v6563_v55 }
 0x156   : > { %4923 = vmatmul.mubr.msk.bf16.gmra.mrb[8].mxu0 %vm609_vm1, %v2536_v18  ;;  %v2548_v18 = vsel %vm2509_vm5, %v2543_v8, %v2547_v33  ;;  %v6603_v8 = vsel %vm1063_vm6, %v1079_v11, %v1081_v5  ;;  %v1085_v33 = vrot.slane %v6183_v17, 1  ;;  %v1087_v5 = vrot.slane %v6209_v32, 1 }
 0x157   : > { %4926 = vmatprep.mubr.msk.bf16.mxu0 %vm609_vm1, %v2540_v61  ;;  %v7211_v61 = vld [vmem:[#allocation32_spill] sm:$0xff] }
 0x158   : > { %v2553_v40 = vrot.slane %v7211_v61, 2  ;;  %v7213_v61 = vld [vmem:[#allocation33_spill] sm:$0xff] }
 0x159   : > { %v2557_v13 = vrot.slane %v7213_v61, 2 }
 0x15a   : > { %v2555_v0 = vor.u32 %v2554_v26, %v2553_v40  ;;  %v2562_v40 = vrot.slane %v7216_v44, 3 }
 0x15b   : > { %4733 = vmatmul.mubr.msk.bf16.gmra.mrb[8].mxu1 %vm609_vm1, %v6580_v36  ;;  %v2559_v26 = vor.u32 %v2558_v6, %v2557_v13  ;;  %v2569_v6 = vrot.slane %v6397_v50, 2  ;;  %v7219_v13 = vld [vmem:[#allocation38_spill] sm:$0xff]  ;;  %v2578_v50 = vshrl.u32 %v6261_v22, 16 }
 0x15c   : > { %4736 = vmatprep.mubr.msk.bf16.mxu1 %vm609_vm1, %v6583_v58 }
 0x15d   : > { %v2560_v44 = vsel %vm2509_vm5, %v2555_v0, %v2559_v26 }
 0x15e   : > { %4927 = vmatmul.mubr.msk.bf16.gmra.mrb[12].mxu0 %vm609_vm1, %v2544_v38  ;;  %v2556_v38 = vsel %vm2509_vm5, %v2551_v63, %v2555_v0  ;;  %v6623_v63 = vsel %vm1063_vm6, %v1083_v25, %v1085_v33  ;;  %v1089_v0 = vrot.slane %v6233_v52, 1 }
 0x15f   : > { %4930 = vmatprep.mubr.msk.bf16.mxu0 %vm609_vm1, %v2548_v18  ;;  %v7215_v18 = vld [vmem:[#allocation36_spill] sm:$0xff] }
 0x160   : > { %v2561_v12 = vrot.slane %v7215_v18, 2  ;;  %v7217_v18 = vld [vmem:[#allocation37_spill] sm:$0xff]  ;;  %v6647_v51 = vsel %vm1063_vm6, %v1087_v5, %v1089_v0 }
 0x161   : > { %v2565_v61 = vrot.slane %v7217_v18, 2  ;;  %v6644_v18 = vsel %vm1063_vm6, %v1085_v33, %v1087_v5  ;;  %v1091_v33 = vrot.slane %v6258_v14, 1 }
 0x162   : > { %v2563_v11 = vor.u32 %v2562_v40, %v2561_v12  ;;  %v7220_v40 = vld [vmem:[#allocation26_spill] sm:$0xff] }
 0x163   : > { %4737 = vmatmul.mubr.msk.bf16.gmra.mrb[12].mxu1 %vm609_vm1, %v6600_v19  ;;  %v2567_v12 = vor.u32 %v2566_v2, %v2565_v61  ;;  %v7153_v25 = vshrl.u32 %v7220_v40, 16 }
 0x164   : > { %4740 = vmatprep.mubr.msk.bf16.mxu1 %vm609_vm1, %v6603_v8 }
 0x165   : > { %v2573_v2 = vrot.slane %v7153_v25, 2  ;;  %v2590_v25 = vshll.u32 %v6484_v48, 16 }
 0x166   : > { %4931 = vmatmul.mubr.msk.bf16.gmra.mrb[16].mxu0 %vm609_vm1, %v2552_v21  ;;  %v2564_v21 = vsel %vm2509_vm5, %v2559_v26, %v2563_v11  ;;  %v7152_v26 = vshll.u32 %v7220_v40, 16 }
 0x167   : > { %4934 = vmatprep.mubr.msk.bf16.mxu0 %vm609_vm1, %v2556_v38  ;;  %v2570_v38 = vrot.slane %v7219_v13, 3  ;;  %v2581_v13 = vshll.u32 %v6261_v22, 16 }
 0x168   : > { %v2574_v61 = vrot.slane %v7152_v26, 3  ;;  %v2587_v26 = vshrl.u32 %v6484_v48, 16 }
 0x169   : > { %v2571_v53 = vor.u32 %v2570_v38, %v2569_v6  ;;  %v2580_v6 = vrot.slane %v2578_v50, 2  ;;  %v2583_v38 = vrot.slane %v2581_v13, 3  ;;  %v6666_v50 = vsel %vm1063_vm6, %v1089_v0, %v1091_v33 }
 0x16a   : > { %v2575_v5 = vor.u32 %v2574_v61, %v2573_v2  ;;  %v2589_v16 = vrot.slane %v2587_v26, 2  ;;  %v1095_v61 = vrot.slane %v6309_v39, 1  ;;  %v6680_v0 = vrot.slane %v6340_v24, 1 }
 0x16b   : > { %4741 = vmatmul.mubr.msk.bf16.gmra.mrb[16].mxu1 %vm609_vm1, %v6620_v9  ;;  %v2584_v47 = vor.u32 %v2583_v38, %v2580_v6  ;;  %v2869_v26 = vrot.slane %v6042_v7, 3  ;;  %v2871_v7 = vrot.slane %v6062_v20, 3  ;;  %v2875_v20 = vrot.slane %v6079_v28, 3 }
 0x16c   : > { %4744 = vmatprep.mubr.msk.bf16.mxu1 %vm609_vm1, %v6623_v63  ;;  %v6690_v6 = vsel %vm1063_vm6, %v1095_v61, %v6680_v0  ;;  %v2879_v28 = vrot.slane %v6125_v49, 3  ;;  %v2885_v49 = vrot.slane %v6183_v17, 3 }
 0x16d   : > { %v2585_v2 = vsel %vm2509_vm5, %v2575_v5, %v2584_v47 }
 0x16e   : > { %4935 = vmatmul.mubr.msk.bf16.gmra.mrb[20].mxu0 %vm609_vm1, %v2560_v44  ;;  %v2568_v44 = vsel %vm2509_vm5, %v2563_v11, %v2567_v12  ;;  %v1093_v11 = vrot.slane %v6301_v56, 1 }
 0x16f   : > { %4938 = vmatprep.mubr.msk.bf16.mxu0 %vm609_vm1, %v2564_v21  ;;  %v2572_v21 = vsel %vm2509_vm5, %v2567_v12, %v2571_v53  ;;  %v2576_v12 = vsel %vm2509_vm5, %v2571_v53, %v2575_v5 }
 0x170   : > { %v6669_v13 = vsel %vm1063_vm6, %v1091_v33, %v1093_v11 }
 0x173   : > { %4745 = vmatmul.mubr.msk.bf16.gmra.mrb[20].mxu1 %vm609_vm1, %v6644_v18 }
 0x174   : > { %4748 = vmatprep.mubr.msk.bf16.mxu1 %vm609_vm1, %v6647_v51 }
 0x176   : > { %4939 = vmatmul.mubr.msk.bf16.gmra.mrb[24].mxu0 %vm609_vm1, %v2568_v44  ;;  %v2592_v44 = vrot.slane %v2590_v25, 3  ;;  %v2868_v25 = vrot.slane %v6037_v4, 3  ;;  %v1099_v4 = vrot.slane %v6386_v10, 1  ;;  %v1748_v10 = vsel %vm664_vm0, %v6544_v27, 0 }
 0x177   : > { %4942 = vmatprep.mubr.msk.bf16.mxu0 %vm609_vm1, %v2572_v21  ;;  %v6686_v21 = vsel %vm1063_vm6, %v1093_v11, %v1095_v61  ;;  %v2872_v11 = vsel %vm2867_vm7, %v2869_v26, %v2871_v7  ;;  %v2883_v27 = vrot.slane %v6163_v1, 3  ;;  %v2889_v1 = vrot.slane %v6233_v52, 3 }
 0x178   : > { %v2593_v53 = vor.u32 %v2592_v44, %v2589_v16  ;;  %v2870_v33 = vsel %vm2867_vm7, %v2868_v25, %v2869_v26  ;;  %v2873_v16 = vrot.slane %v6070_v23, 3  ;;  %v2877_v23 = vrot.slane %v6114_v45, 3  ;;  %v5477_v44 = vld [vmem:[%s6020_s27 + $0x10] sm:$0xff]   ;;  %v5478_v26 = vld [vmem:[%s6020_s27 + $0x18] sm:$0xff]  }
 0x179   : > { %v2881_v45 = vrot.slane %v6155_v62, 3  ;;  %v2893_v52 = vrot.slane %v6301_v56, 3  ;;  %v3315_v61 = vshrl.u32 %v5477_v44, 16 }
 0x17a   : > { %v2594_v38 = vsel %vm2509_vm5, %v2584_v47, %v2593_v53  ;;  %v1100_v47 = vsel %vm1063_vm6, %v6680_v0, %v1099_v4  ;;  %v2874_v5 = vsel %vm2867_vm7, %v2871_v7, %v2873_v16  ;;  %v5479_v7 = vld [vmem:[%s6020_s27 + $0x20] sm:$0xff]  }
 0x17b   : > { %4749 = vmatmul.mubr.msk.bf16.gmra.mrb[24].mxu1 %vm609_vm1, %v6666_v50  ;;  %v2884_v62 = vsel %vm2867_vm7, %v2881_v45, %v2883_v27 }
 0x17c   : > { %4752 = vmatprep.mubr.msk.bf16.mxu1 %vm609_vm1, %v6669_v13 }
 0x17e   : > { %4943 = vmatmul.mubr.msk.bf16.gmra.mrb[28].mxu0 %vm609_vm1, %v2576_v12  ;;  %v2876_v12 = vsel %vm2867_vm7, %v2873_v16, %v2875_v20  ;;  %v2903_v16 = vrot.slane %v6484_v48, 3  ;;  %v1611_v48 = vrot.slane %v6083_v30, 1 }
 0x17f   : > { %4946 = vmatprep.mubr.msk.bf16.mxu0 %vm609_vm1, %v2585_v2 }
 0x183   : > { %4753 = vmatmul.mubr.msk.bf16.gmra.mrb[28].mxu1 %vm609_vm1, %v6686_v21 }
 0x184   : > { %4756 = vmatprep.mubr.msk.bf16.mxu1 %vm609_vm1, %v6690_v6 }
 0x186   : > { %4947 = vmatmul.mubr.msk.bf16.gmra.mrb[32].mxu0 %vm609_vm1, %v2594_v38 }
 0x187   : > { %4952 = vmatprep.mubr.msk.bf16.mxu0 %vm609_vm1, %v2870_v33  ;;  %v3317_v33 = vrot.slane %v3315_v61, 1 }
 0x18b   : > { %4757 = vmatmul.mubr.msk.bf16.gmra.mrb[32].mxu1 %vm609_vm1, %v1100_v47  ;;  %v3324_v47 = vshrl.u32 %v5478_v26, 16 }
 0x18c   : > { %4762 = vmatprep.mubr.msk.bf16.mxu1 %vm609_vm1, %v6534_v37  ;;  %v2878_v37 = vsel %vm2867_vm7, %v2875_v20, %v2877_v23  ;;  %v3333_v20 = vshrl.u32 %v5479_v7, 16 }
 0x18e   : > { %4953 = vmatmul.mubr.msk.bf16.vlgmr.msra.gmra.mrb[0].mxu0 %vm609_vm1, %v2872_v11  ;;  %v3327_v11 = vshll.u32 %v5478_v26, 16 }
 0x18f   : > { %4989 = vmatpush3.bf16.msra.mxu0 %v6453_v43  ;;  %4956 = vmatprep.mubr.msk.bf16.mxu0 %vm609_vm1, %v2874_v5  ;;  %v2880_v43 = vsel %vm2867_vm7, %v2877_v23, %v2879_v28  ;;  %v3336_v23 = vshll.u32 %v5479_v7, 16 }
 0x193   : > { %4763 = vmatmul.mubr.msk.bf16.vlgmr.msra.gmra.mrb[0].mxu1 %vm609_vm1, %v6539_v29  ;;  %v2882_v29 = vsel %vm2867_vm7, %v2879_v28, %v2881_v45  ;;  %v1612_v45 = vrot.slane %v6052_v15, 2 }
 0x194   : > { %4799 = vmatpush3.bf16.msra.mxu1 %v1748_v10  ;;  %4766 = vmatprep.mubr.msk.bf16.mxu1 %vm609_vm1, %v6560_v41  ;;  %v2886_v41 = vsel %vm2867_vm7, %v2883_v27, %v2885_v49  ;;  %v7221_v10 = vshll.u32 %v6034_v3, 16  ;;  %v3329_v27 = vrot.slane %v3327_v11, 2 }
 0x195   : > { %v1613_v30 = vor.u32 %v1612_v45, %v1611_v48 }
 0x196   : > { %4957 = vmatmul.mubr.msk.bf16.gmra.mrb[4].mxu0 %vm609_vm1, %v2876_v12  ;;  %v1609_v12 = vrot.slane %v7221_v10, 2 }
 0x197   : > { %4960 = vmatprep.mubr.msk.bf16.mxu0 %vm609_vm1, %v2878_v37  ;;  %v7222_v37 = vshrl.u32 %v6034_v3, 16  ;;  %v1381_v3 = vrot.slane %v6374_v60, 1 }
 0x199   : > { %v1608_v28 = vrot.slane %v7222_v37, 1 }
 0x19b   : > { %4767 = vmatmul.mubr.msk.bf16.gmra.mrb[4].mxu1 %vm609_vm1, %v6563_v55  ;;  %v2887_v55 = vrot.slane %v6209_v32, 3  ;;  %v2891_v32 = vrot.slane %v6258_v14, 3  ;;  %v2897_v14 = vrot.slane %v6340_v24, 3  ;;  %v2899_v24 = vrot.slane %v7220_v40, 3 }
 0x19c   : > { %4770 = vmatprep.mubr.msk.bf16.mxu1 %vm609_vm1, %v6580_v36  ;;  %v1610_v15 = vor.u32 %v1609_v12, %v1608_v28 }
 0x19d   : > { %v2888_v17 = vsel %vm2867_vm7, %v2885_v49, %v2887_v55  ;;  %v2890_v36 = vsel %vm2867_vm7, %v2887_v55, %v2889_v1  ;;  %v2900_v53 = vsel %vm2867_vm7, %v2897_v14, %v2899_v24  ;;  %v5480_v49 = vld [vmem:[%s6020_s27 + $0x28] sm:$0xff]   ;;  %v5481_v55 = vld [vmem:[%s6020_s27 + $0x30] sm:$0xff]  }
 0x19e   : > { %4961 = vmatmul.mubr.msk.bf16.gmra.mrb[8].mxu0 %vm609_vm1, %v2880_v43 }
 0x19f   : > { %4964 = vmatprep.mubr.msk.bf16.mxu0 %vm609_vm1, %v2882_v29  ;;  %v3326_v29 = vrot.slane %v3324_v47, 1 }
 0x1a3   : > { %4771 = vmatmul.mubr.msk.bf16.gmra.mrb[8].mxu1 %vm609_vm1, %v6583_v58  ;;  %v2894_v58 = vsel %vm2867_vm7, %v2891_v32, %v2893_v52 }
 0x1a4   : > { %4774 = vmatprep.mubr.msk.bf16.mxu1 %vm609_vm1, %v6600_v19  ;;  %v2892_v19 = vsel %vm2867_vm7, %v2889_v1, %v2891_v32  ;;  %v3330_v1 = vor.u32 %v3329_v27, %v3326_v29  ;;  %v3351_v32 = vshrl.u32 %v5481_v55, 16  ;;  %v7224_v27 = vld [vmem:[#allocation17_spill] sm:$0xff] }
 0x1a6   : > { %4965 = vmatmul.mubr.msk.bf16.gmra.mrb[12].mxu0 %vm609_vm1, %v2884_v62 }
 0x1a7   : > { %4968 = vmatprep.mubr.msk.bf16.mxu0 %vm609_vm1, %v2886_v41  ;;  %v3335_v41 = vrot.slane %v3333_v20, 1 }
 0x1ab   : > { %4775 = vmatmul.mubr.msk.bf16.gmra.mrb[12].mxu1 %vm609_vm1, %v6603_v8 }
 0x1ac   : > { %4778 = vmatprep.mubr.msk.bf16.mxu1 %vm609_vm1, %v6620_v9  ;;  %v2895_v9 = vrot.slane %v6309_v39, 3  ;;  %v2901_v39 = vrot.slane %v6261_v22, 3  ;;  %v1379_v22 = vrot.slane %v7220_v40, 1 }
 0x1ae   : > { %4969 = vmatmul.mubr.msk.bf16.gmra.mrb[16].mxu0 %vm609_vm1, %v2888_v17  ;;  %v2896_v56 = vsel %vm2867_vm7, %v2893_v52, %v2895_v9  ;;  %v2898_v8 = vsel %vm2867_vm7, %v2895_v9, %v2897_v14  ;;  %v2902_v25 = vsel %vm2867_vm7, %v2899_v24, %v2901_v39  ;;  %v2904_v43 = vsel %vm2867_vm7, %v2901_v39, %v2903_v16  ;;  %v5482_v39 = vld [vmem:[%s6020_s27 + $0x38] sm:$0xff]  }
 0x1af   : > { %4972 = vmatprep.mubr.msk.bf16.mxu0 %vm609_vm1, %v2890_v36  ;;  %v3342_v17 = vshrl.u32 %v5480_v49, 16  ;;  %v3354_v52 = vshll.u32 %v5481_v55, 16  ;;  %v1616_v9 = vrot.slane %v6086_v31, 2  ;;  %v1614_v14 = vsel %vm1607_vm8, %v1610_v15, %v1613_v30  ;;  %v7226_v55 = vld [vmem:[#allocation18_spill] sm:$0xff] }
 0x1b0   : > { %v1628_v16 = vrot.slane %v6137_v54, 2 }
 0x1b1   : > { %v3356_v61 = vrot.slane %v3354_v52, 2  ;;  %v5487_v52 = vld [vmem:[%s6020_s27 + $0x60] sm:$0xff]  }
 0x1b3   : > { %4779 = vmatmul.mubr.msk.bf16.gmra.mrb[16].mxu1 %vm609_vm1, %v6623_v63  ;;  %v5476_v63 = vld [vmem:[%s6020_s27 + $0x8] sm:$0xff]  }
 0x1b4   : > { %4782 = vmatprep.mubr.msk.bf16.mxu1 %vm609_vm1, %v6644_v18  ;;  %v3307_v18 = vshrl.u32 %v5476_v63, 16  ;;  %v3310_v2 = vshll.u32 %v5476_v63, 16 }
 0x1b6   : > { %4973 = vmatmul.mubr.msk.bf16.gmra.mrb[20].mxu0 %vm609_vm1, %v2892_v19  ;;  %v3312_v38 = vrot.slane %v3310_v2, 2  ;;  %v1382_v19 = vsel %vm1063_vm6, %v1379_v22, %v1381_v3  ;;  %v3353_v2 = vrot.slane %v3351_v32, 1  ;;  %v1636_v3 = vrot.slane %v7226_v55, 2 }
 0x1b7   : > { %4976 = vmatprep.mubr.msk.bf16.mxu0 %vm609_vm1, %v2894_v58  ;;  %v1615_v58 = vrot.slane %v6092_v34, 1  ;;  %v5483_v34 = vld [vmem:[%s6020_s27 + $0x40] sm:$0xff]  }
 0x1b8   : > { %v3369_v26 = vshrl.u32 %v5483_v34, 16 }
 0x1b9   : > { %v1617_v31 = vor.u32 %v1616_v9, %v1615_v58 }
 0x1bb   : > { %4783 = vmatmul.mubr.msk.bf16.gmra.mrb[20].mxu1 %vm609_vm1, %v6647_v51  ;;  %v3318_v51 = vshll.u32 %v5477_v44, 16  ;;  %v3344_v44 = vrot.slane %v3342_v17, 1  ;;  %v5486_v17 = vld [vmem:[%s6020_s27 + $0x58] sm:$0xff]  }
 0x1bc   : > { %4786 = vmatprep.mubr.msk.bf16.mxu1 %vm609_vm1, %v6666_v50  ;;  %v3309_v50 = vrot.slane %v3307_v18, 1 }
 0x1bd   : > { %v3320_v4 = vrot.slane %v3318_v51, 2  ;;  %v3360_v51 = vshrl.u32 %v5482_v39, 16 }
 0x1be   : > { %4977 = vmatmul.mubr.msk.bf16.gmra.mrb[24].mxu0 %vm609_vm1, %v2896_v56  ;;  %v1619_v56 = vrot.slane %v6106_v42, 1 }
 0x1bf   : > { %4980 = vmatprep.mubr.msk.bf16.mxu0 %vm609_vm1, %v2898_v8  ;;  %v3321_v5 = vor.u32 %v3320_v4, %v3317_v33  ;;  %v1620_v8 = vrot.slane %v6095_v35, 2  ;;  %v1623_v33 = vrot.slane %v6142_v57, 1  ;;  %v1624_v4 = vrot.slane %v6117_v46, 2  ;;  %v5485_v57 = vld [vmem:[%s6020_s27 + $0x50] sm:$0xff]  }
 0x1c0   : > { %v3362_v11 = vrot.slane %v3360_v51, 1  ;;  %v3387_v28 = vshrl.u32 %v5485_v57, 16  ;;  %v3390_v48 = vshll.u32 %v5485_v57, 16  ;;  %v7231_v57 = vld [vmem:[#allocation28_spill] sm:$0xff] }
 0x1c1   : > { %v3331_v63 = vsel %vm1607_vm8, %v3321_v5, %v3330_v1  ;;  %v1621_v42 = vor.u32 %v1620_v8, %v1619_v56  ;;  %v1625_v46 = vor.u32 %v1624_v4, %v1623_v33  ;;  %v3399_v56 = vshll.u32 %v5486_v17, 16 }
 0x1c2   : > { %v3392_v32 = vrot.slane %v3390_v48, 2 }
 0x1c3   : > { %4787 = vmatmul.mubr.msk.bf16.gmra.mrb[24].mxu1 %vm609_vm1, %v6669_v13  ;;  %v3313_v13 = vor.u32 %v3312_v38, %v3309_v50  ;;  %v3372_v50 = vshll.u32 %v5483_v34, 16  ;;  %v1618_v38 = vsel %vm1607_vm8, %v1613_v30, %v1617_v31  ;;  %v1622_v7 = vsel %vm1607_vm8, %v1617_v31, %v1621_v42  ;;  %v7229_v31 = vld [vmem:[#allocation24_spill] sm:$0xff] }
 0x1c4   : > { %4790 = vmatprep.mubr.msk.bf16.mxu1 %vm609_vm1, %v6686_v21  ;;  %v1380_v21 = vsel %vm1063_vm6, %v6680_v0, %v1379_v22  ;;  %v3338_v0 = vrot.slane %v3336_v23, 2  ;;  %v1627_v22 = vrot.slane %v6146_v59, 1  ;;  %v3371_v23 = vrot.slane %v3369_v26, 1 }
 0x1c5   : > { %v3322_v62 = vsel %vm1607_vm8, %v3313_v13, %v3321_v5  ;;  %v5484_v5 = vld [vmem:[%s6020_s27 + $0x48] sm:$0xff]   ;;  %v3374_v10 = vrot.slane %v3372_v50, 2  ;;  %v1626_v45 = vsel %vm1607_vm8, %v1621_v42, %v1625_v46  ;;  %v1643_v42 = vrot.slane %v7229_v31, 1 }
 0x1c6   : > { %4981 = vmatmul.mubr.msk.bf16.gmra.mrb[28].mxu0 %vm609_vm1, %v2900_v53  ;;  %v3339_v36 = vor.u32 %v3338_v0, %v3335_v41  ;;  %v3363_v53 = vshll.u32 %v5482_v39, 16  ;;  %v1629_v59 = vor.u32 %v1628_v16, %v1627_v22  ;;  %v3378_v12 = vshrl.u32 %v5484_v5, 16  ;;  %v7225_v41 = vld [vmem:[#allocation21_spill] sm:$0xff]  ;;  %v7227_v39 = vld [vmem:[#allocation23_spill] sm:$0xff] }
 0x1c7   : > { %4984 = vmatprep.mubr.msk.bf16.mxu0 %vm609_vm1, %v2902_v25  ;;  %v3357_v25 = vor.u32 %v3356_v61, %v3353_v2  ;;  %v3375_v37 = vor.u32 %v3374_v10, %v3371_v23  ;;  %v1635_v0 = vrot.slane %v7225_v41, 1  ;;  %v7228_v2 = vld [vmem:[#allocation20_spill] sm:$0xff]  ;;  %v3401_v26 = vrot.slane %v3399_v56, 2  ;;  %v7237_v56 = vld [vmem:[#allocation33_spill] sm:$0xff] }
 0x1c8   : > { %v3340_v18 = vsel %vm1607_vm8, %v3330_v1, %v3339_v36  ;;  %v3365_v13 = vrot.slane %v3363_v53, 2  ;;  %v3380_v30 = vrot.slane %v3378_v12, 1  ;;  %v1640_v61 = vrot.slane %v7228_v2, 2  ;;  %v5488_v50 = vld [vmem:[%s6020_s27 + $0x68] sm:$0xff]  }
 0x1c9   : > { %v1637_v58 = vor.u32 %v1636_v3, %v1635_v0  ;;  %v5491_v0 = vld [vmem:[%s6020_s27 + $0x80] sm:$0xff]   ;;  %v5492_v2 = vld [vmem:[%s6020_s27 + $0x88] sm:$0xff]  }
 0x1ca   : > { %v3366_v54 = vor.u32 %v3365_v13, %v3362_v11  ;;  %v3414_v11 = vshrl.u32 %v5488_v50, 16  ;;  %v3417_v13 = vshll.u32 %v5488_v50, 16 }
 0x1cb   : > { %4791 = vmatmul.mubr.msk.bf16.gmra.mrb[28].mxu1 %vm609_vm1, %v6690_v6  ;;  %v3345_v6 = vshll.u32 %v5480_v49, 16  ;;  %v1632_v49 = vrot.slane %v7224_v27, 2  ;;  %v5490_v27 = vld [vmem:[%s6020_s27 + $0x78] sm:$0xff]  }
 0x1cc   : > { %4794 = vmatprep.mubr.msk.bf16.mxu1 %vm609_vm1, %v1380_v21  ;;  %v3381_v21 = vshll.u32 %v5484_v5, 16  ;;  %v3367_v15 = vsel %vm1607_vm8, %v3357_v25, %v3366_v54 }
 0x1cd   : > { %v3347_v24 = vrot.slane %v3345_v6, 2  ;;  %v3376_v6 = vsel %vm1607_vm8, %v3366_v54, %v3375_v37 }
 0x1ce   : > { %4985 = vmatmul.mubr.msk.bf16.gmra.mrb[32].mxu0 %vm609_vm1, %v2904_v43  ;;  %v7223_v43 = vld [vmem:[#allocation19_spill] sm:$0xff]  ;;  %v3383_v1 = vrot.slane %v3381_v21, 2  ;;  %v7233_v21 = vld [vmem:[#allocation29_spill] sm:$0xff] }
 0x1cf   : > { %4990 = vmatprep.mubr.msk.bf16.mxu0 %vm3476_vm9, %v3322_v62  ;;  %v3348_v35 = vor.u32 %v3347_v24, %v3344_v44  ;;  %v1631_v29 = vrot.slane %v7223_v43, 1  ;;  %v1630_v62 = vsel %vm1607_vm8, %v1625_v46, %v1629_v59  ;;  %v3408_v44 = vshll.u32 %v5487_v52, 16 }
 0x1d0   : > { %v3384_v9 = vor.u32 %v3383_v1, %v3380_v30  ;;  %v1647_v46 = vrot.slane %v7231_v57, 1  ;;  %v3416_v43 = vrot.slane %v3414_v11, 1  ;;  %v3432_v30 = vshrl.u32 %v5490_v27, 16 }
 0x1d1   : > { %v3349_v47 = vsel %vm1607_vm8, %v3339_v36, %v3348_v35  ;;  %v3358_v20 = vsel %vm1607_vm8, %v3348_v35, %v3357_v25  ;;  %v3389_v36 = vrot.slane %v3387_v28, 1  ;;  %v7230_v35 = vld [vmem:[#allocation22_spill] sm:$0xff]  ;;  %v3410_v4 = vrot.slane %v3408_v44, 2  ;;  %v7234_v28 = vld [vmem:[#allocation27_spill] sm:$0xff] }
 0x1d2   : > { %v1644_v51 = vrot.slane %v7230_v35, 2  ;;  %v3385_v53 = vsel %vm1607_vm8, %v3375_v37, %v3384_v9  ;;  %v1651_v37 = vrot.slane %v7233_v21, 1  ;;  %v1652_v48 = vrot.slane %v7234_v28, 2 }
 0x1d3   : > { %4795 = vmatmul.mubr.msk.bf16.gmra.mrb[32].mxu1 %vm609_vm1, %v1382_v19  ;;  %v1633_v19 = vor.u32 %v1632_v49, %v1631_v29  ;;  %v3393_v8 = vor.u32 %v3392_v32, %v3389_v36  ;;  %v3419_v29 = vrot.slane %v3417_v13, 2  ;;  %v3435_v1 = vshll.u32 %v5490_v27, 16  ;;  %v7241_v13 = vld [vmem:[#allocation37_spill] sm:$0xff] }
 0x1d4   : > { %4800 = vmatprep.mubr.msk.bf16.mxu1 %vm609_vm1, %v1614_v14  ;;  %v3396_v14 = vshrl.u32 %v5486_v17, 16  ;;  %v1645_v16 = vor.u32 %v1644_v51, %v1643_v42  ;;  %v1653_v3 = vor.u32 %v1652_v48, %v1651_v37  ;;  %v3444_v36 = vshll.u32 %v5491_v0, 16  ;;  %v5493_v42 = vld [vmem:[%s6020_s27 + $0x90] sm:$0xff]  }
 0x1d5   : > { %v1634_v24 = vsel %vm1607_vm8, %v1629_v59, %v1633_v19  ;;  %v1638_v34 = vsel %vm1607_vm8, %v1633_v19, %v1637_v58  ;;  %v7232_v59 = vld [vmem:[#allocation25_spill] sm:$0xff] }
 0x1d6   : > { %4991 = vmatmul.mubr.msk.bf16.vlgmr.msra.gmra.mrb[0].mxu0 %vm3476_vm9, %v3331_v63  ;;  %v3405_v63 = vshrl.u32 %v5487_v52, 16  ;;  %v3398_v25 = vrot.slane %v3396_v14, 1  ;;  %v1648_v54 = vrot.slane %v7232_v59, 2  ;;  %v7235_v52 = vld [vmem:[#allocation32_spill] sm:$0xff]  ;;  %v3446_v31 = vrot.slane %v3444_v36, 2 }
 0x1d7   : > { %4994 = vmatprep.mubr.msk.bf16.mxu0 %vm3476_vm9, %v3340_v18  ;;  %v1639_v18 = vrot.slane %v7227_v39, 1  ;;  %v1655_v19 = vrot.slane %v7235_v52, 1  ;;  %v3434_v39 = vrot.slane %v3432_v30, 1  ;;  %v5494_v59 = vld [vmem:[%s6020_s27 + $0x98] ss:$0 sps:$4 sm:$0xff]   ;;  %v7246_v30 = vshll.u32 %v7220_v40, 16 }
 0x1d8   : > { %v3407_v33 = vrot.slane %v3405_v63, 1  ;;  %v1649_v55 = vor.u32 %v1648_v54, %v1647_v46  ;;  %v7238_v63 = vld [vmem:[#allocation31_spill] sm:$0xff] }
 0x1d9   : > { %v1641_v22 = vor.u32 %v1640_v61, %v1639_v18  ;;  %v1660_v44 = vrot.slane %v7238_v63, 2  ;;  %v3437_v18 = vrot.slane %v3435_v1, 2  ;;  %v1681_v1 = vrot.slane %v7246_v30, 2 }
 0x1da   : > { %v3411_v5 = vor.u32 %v3410_v4, %v3407_v33  ;;  %v1650_v32 = vsel %vm1607_vm8, %v1645_v16, %v1649_v55  ;;  %v1654_v14 = vsel %vm1607_vm8, %v1649_v55, %v1653_v3  ;;  %v3462_v33 = vshll.u32 %v5493_v42, 16 }
 0x1db   : > { %4801 = vmatmul.mubr.msk.bf16.vlgmr.msra.gmra.mrb[0].mxu1 %vm609_vm1, %v1618_v38  ;;  %v3394_v38 = vsel %vm1607_vm8, %v3384_v9, %v3393_v8  ;;  %v1642_v10 = vsel %vm1607_vm8, %v1637_v58, %v1641_v22  ;;  %v1646_v12 = vsel %vm1607_vm8, %v1641_v22, %v1645_v16  ;;  %v7236_v58 = vld [vmem:[#allocation30_spill] sm:$0xff] }
 0x1dc   : > { %4804 = vmatprep.mubr.msk.bf16.mxu1 %vm609_vm1, %v1622_v7  ;;  %v5489_v7 = vld [vmem:[%s6020_s27 + $0x70] sm:$0xff]   ;;  %v1656_v9 = vrot.slane %v7236_v58, 2  ;;  %v3464_v21 = vrot.slane %v3462_v33, 2  ;;  %v1688_v58 = vshll.u32 %v6374_v60, 16 }
 0x1dd   : > { %v3426_v23 = vshll.u32 %v5489_v7, 16  ;;  %v7240_v16 = vld [vmem:[#allocation34_spill] sm:$0xff] }
 0x1de   : > { %4995 = vmatmul.mubr.msk.bf16.gmra.mrb[4].mxu0 %vm3476_vm9, %v3349_v47  ;;  %v3402_v47 = vor.u32 %v3401_v26, %v3398_v25  ;;  %v1657_v35 = vor.u32 %v1656_v9, %v1655_v19  ;;  %v3450_v25 = vshrl.u32 %v5492_v2, 16  ;;  %v3453_v26 = vshll.u32 %v5492_v2, 16 }
 0x1df   : > { %4998 = vmatprep.mubr.msk.bf16.mxu0 %vm3476_vm9, %v3358_v20  ;;  %v3423_v20 = vshrl.u32 %v5489_v7, 16  ;;  %v3428_v41 = vrot.slane %v3426_v23, 2  ;;  %v7239_v7 = vld [vmem:[#allocation36_spill] sm:$0xff]  ;;  %v1685_v19 = vshrl.u32 %v6374_v60, 16 }
 0x1e0   : > { %v3412_v49 = vsel %vm1607_vm8, %v3402_v47, %v3411_v5  ;;  %v1658_v4 = vsel %vm1607_vm8, %v1653_v3, %v1657_v35  ;;  %v1663_v22 = vrot.slane %v7239_v7, 1  ;;  %v3452_v57 = vrot.slane %v3450_v25, 1 }
 0x1e1   : > { %v3455_v46 = vrot.slane %v3453_v26, 2  ;;  %v7245_v3 = vshrl.u32 %v7220_v40, 16 }
 0x1e3   : > { %4805 = vmatmul.mubr.msk.bf16.gmra.mrb[4].mxu1 %vm609_vm1, %v1626_v45  ;;  %v3403_v45 = vsel %vm1607_vm8, %v3393_v8, %v3402_v47  ;;  %v1659_v8 = vrot.slane %v7237_v56, 1  ;;  %v1664_v47 = vrot.slane %v7240_v16, 2  ;;  %v3456_v48 = vor.u32 %v3455_v46, %v3452_v57 }
 0x1e4   : > { %4808 = vmatprep.mubr.msk.bf16.mxu1 %vm609_vm1, %v1630_v62  ;;  %v3425_v62 = vrot.slane %v3423_v20, 1  ;;  %v7242_v20 = vld [vmem:[#allocation35_spill] sm:$0xff]  ;;  %v1687_v56 = vrot.slane %v1685_v19, 1 }
 0x1e5   : > { %v1661_v51 = vor.u32 %v1660_v44, %v1659_v8  ;;  %v1668_v23 = vrot.slane %v7242_v20, 2  ;;  %v1665_v37 = vor.u32 %v1664_v47, %v1663_v22  ;;  %v1690_v8 = vrot.slane %v1688_v58, 2 }
 0x1e6   : > { %4999 = vmatmul.mubr.msk.bf16.gmra.mrb[8].mxu0 %vm3476_vm9, %v3367_v15  ;;  %v3420_v15 = vor.u32 %v3419_v29, %v3416_v43  ;;  %v3429_v17 = vor.u32 %v3428_v41, %v3425_v62  ;;  %v3471_v43 = vshll.u32 %v5494_v59, 16  ;;  %v7244_v41 = vld [vmem:[#allocation38_spill] sm:$0xff] }
 0x1e7   : > { %5002 = vmatprep.mubr.msk.bf16.mxu0 %vm3476_vm9, %v3376_v6  ;;  %v3441_v6 = vshrl.u32 %v5491_v0, 16  ;;  %v1662_v11 = vsel %vm1607_vm8, %v1657_v35, %v1661_v51  ;;  %v1666_v27 = vsel %vm1607_vm8, %v1661_v51, %v1665_v37  ;;  %v1672_v0 = vrot.slane %v7244_v41, 2 }
 0x1e8   : > { %v3430_v61 = vsel %vm1607_vm8, %v3420_v15, %v3429_v17  ;;  %v3473_v36 = vrot.slane %v3471_v43, 2  ;;  %v1691_v60 = vor.u32 %v1690_v8, %v1687_v56 }
 0x1eb   : > { %4809 = vmatmul.mubr.msk.bf16.gmra.mrb[8].mxu1 %vm609_vm1, %v1634_v24  ;;  %v3421_v24 = vsel %vm1607_vm8, %v3411_v5, %v3420_v15  ;;  %v1667_v5 = vrot.slane %v7241_v13, 1  ;;  %v1678_v15 = vrot.slane %v7245_v3, 1 }
 0x1ec   : > { %4812 = vmatprep.mubr.msk.bf16.mxu1 %vm609_vm1, %v1638_v34  ;;  %v3443_v34 = vrot.slane %v3441_v6, 1 }
 0x1ed   : > { %v1669_v28 = vor.u32 %v1668_v23, %v1667_v5  ;;  %v1682_v9 = vor.u32 %v1681_v1, %v1678_v15 }
 0x1ee   : > { %5003 = vmatmul.mubr.msk.bf16.gmra.mrb[12].mxu0 %vm3476_vm9, %v3385_v53  ;;  %v3438_v53 = vor.u32 %v3437_v18, %v3434_v39  ;;  %v3447_v50 = vor.u32 %v3446_v31, %v3443_v34  ;;  %v6930_v31 = vld [vmem:[#allocation7] ss:$0 sm:$0xff] }
 0x1ef   : > { %5006 = vmatprep.mubr.msk.bf16.mxu0 %vm3476_vm9, %v3394_v38  ;;  %v3459_v38 = vshrl.u32 %v5493_v42, 16  ;;  %v1670_v55 = vsel %vm1607_vm8, %v1665_v37, %v1669_v28 }
 0x1f0   : > { %v3448_v54 = vsel %vm1607_vm8, %v3438_v53, %v3447_v50 }
 0x1f3   : > { %4813 = vmatmul.mubr.msk.bf16.gmra.mrb[12].mxu1 %vm609_vm1, %v1642_v10  ;;  %v3439_v10 = vsel %vm1607_vm8, %v3429_v17, %v3438_v53  ;;  %v3457_v17 = vsel %vm1607_vm8, %v3447_v50, %v3456_v48 }
 0x1f4   : > { %4816 = vmatprep.mubr.msk.bf16.mxu1 %vm609_vm1, %v1646_v12  ;;  %v3461_v12 = vrot.slane %v3459_v38, 1 }
 0x1f6   : > { %5007 = vmatmul.mubr.msk.bf16.gmra.mrb[16].mxu0 %vm3476_vm9, %v3403_v45  ;;  %v3468_v45 = vshrl.u32 %v5494_v59, 16  ;;  %v3465_v29 = vor.u32 %v3464_v21, %v3461_v12 }
 0x1f7   : > { %5010 = vmatprep.mubr.msk.bf16.mxu0 %vm3476_vm9, %v3412_v49  ;;  %v7243_v49 = vld [vmem:[#allocation39_spill] sm:$0xff] }
 0x1f8   : > { %v1671_v62 = vrot.slane %v7243_v49, 1  ;;  %v3470_v6 = vrot.slane %v3468_v45, 1 }
 0x1fa   : > { %v1673_v52 = vor.u32 %v1672_v0, %v1671_v62  ;;  %v3474_v40 = vor.u32 %v3473_v36, %v3470_v6 }
 0x1fb   : > { %4817 = vmatmul.mubr.msk.bf16.gmra.mrb[16].mxu1 %vm609_vm1, %v1650_v32  ;;  %v3466_v32 = vsel %vm1607_vm8, %v3456_v48, %v3465_v29 }
 0x1fc   : > { %4820 = vmatprep.mubr.msk.bf16.mxu1 %vm609_vm1, %v1654_v14  ;;  %v1674_v14 = vsel %vm1607_vm8, %v1669_v28, %v1673_v52  ;;  %v1683_v63 = vsel %vm1607_vm8, %v1673_v52, %v1682_v9  ;;  %v3475_v44 = vsel %vm1607_vm8, %v3465_v29, %v3474_v40 }
 0x1fe   : > { %5011 = vmatmul.mubr.msk.bf16.gmra.mrb[20].mxu0 %vm3476_vm9, %v3421_v24  ;;  %v1692_v24 = vsel %vm1607_vm8, %v1682_v9, %v1691_v60 }
 0x1ff   : > { %5014 = vmatprep.mubr.msk.bf16.mxu0 %vm3476_vm9, %v3430_v61 }
 0x203   : > { %4821 = vmatmul.mubr.msk.bf16.gmra.mrb[20].mxu1 %vm609_vm1, %v1658_v4 }
 0x204   : > { %4824 = vmatprep.mubr.msk.bf16.mxu1 %vm609_vm1, %v1662_v11 }
 0x206   : > { %5015 = vmatmul.mubr.msk.bf16.gmra.mrb[24].mxu0 %vm3476_vm9, %v3439_v10 }
 0x207   : > { %5018 = vmatprep.mubr.msk.bf16.mxu0 %vm3476_vm9, %v3448_v54 }
 0x20b   : > { %4825 = vmatmul.mubr.msk.bf16.gmra.mrb[24].mxu1 %vm609_vm1, %v1666_v27 }
 0x20c   : > { %4828 = vmatprep.mubr.msk.bf16.mxu1 %vm609_vm1, %v1670_v55 }
 0x20e   : > { %5019 = vmatmul.mubr.msk.bf16.gmra.mrb[28].mxu0 %vm3476_vm9, %v3457_v17 }
 0x20f   : > { %5022 = vmatprep.mubr.msk.bf16.mxu0 %vm3476_vm9, %v3466_v32 }
 0x213   : > { %4829 = vmatmul.mubr.msk.bf16.gmra.mrb[28].mxu1 %vm609_vm1, %v1674_v14 }
 0x214   : > { %4832 = vmatprep.mubr.msk.bf16.mxu1 %vm609_vm1, %v1683_v63 }
 0x216   : > { %5023 = vmatmul.mubr.msk.bf16.gmra.mrb[32].mxu0 %vm3476_vm9, %v3475_v44 }
 0x21b   : > { %4833 = vmatmul.mubr.msk.bf16.gmra.mrb[32].mxu1 %vm609_vm1, %v1692_v24 }
 0x2a9   : > { %v4992_v39 = vpop.f32.mrb[0].mxu0 }
 0x2aa   : > { %v3569_v18 = vpop.f32.mrb[1].mxu0 }
 0x2ab   : > { %v4993_v2 = vpop.f32.mrb[2].mxu0 }
 0x2ac   : > { %v3572_v61 = vpop.f32.mrb[3].mxu0 }
 0x2ae   : > { %v4802_v34 = vpop.f32.mrb[0].mxu1 }
 0x2af   : > { %v5026_v42 = vadd.f32 %v4992_v39, %v4802_v34  ;;  %v1784_v35 = vpop.f32.mrb[1].mxu1 }
 0x2b0   : > { %v5027_v51 = vadd.f32 %v3569_v18, %v1784_v35  ;;  %v4803_v53 = vpop.f32.mrb[2].mxu1 }
 0x2b1   : > { %v4996_v25 = vpop.f32.mrb[4].mxu0  ;;  %v3757_v26 = vadd.f32 %v5026_v42, %v6930_v31  ;;  %v5028_v50 = vadd.f32 %v4993_v2, %v4803_v53  ;;  %v1787_v38 = vpop.f32.mrb[3].mxu1 }
 0x2b2   : > { %v3585_v33 = vpop.f32.mrb[5].mxu0  ;;  %v3755_v4 = vadd.f32 %v5027_v51, %v6930_v31  ;;  %v5029_v7 = vadd.f32 %v3572_v61, %v1787_v38 }
 0x2b3   : > { %v4997_v22 = vpop.f32.mrb[6].mxu0  ;;  %v3793_v16 = vmax.f32 %v3757_v26, 0.0  ;;  %v3758_v47 = vadd.f32 %v5028_v50, %v6930_v31 }
 0x2b4   : > { %v3588_v11 = vpop.f32.mrb[7].mxu0  ;;  %v3791_v13 = vmax.f32 %v3755_v4, 0.0  ;;  %v3756_v5 = vadd.f32 %v5029_v7, %v6930_v31 }
 0x2b5   : > { %v4422_v20 = vpack.c.bf16 %v3793_v16, %v3793_v16  ;;  %v3794_v23 = vmax.f32 %v3758_v47, 0.0 }
 0x2b6   : > { %v4420_v10 = vpack.c.bf16 %v3791_v13, %v3791_v13  ;;  %v3792_v57 = vmax.f32 %v3756_v5, 0.0  ;;  %v4806_v46 = vpop.f32.mrb[4].mxu1 }
 0x2b7   : > { %3974 = vst.msk [vmem:[%s6937_s16 + $0x8] sm:$0xf] %vm3971_vm10, %v4422_v20  ;;  %v4423_v59 = vpack.c.bf16 %v3794_v23, %v3794_v23  ;;  %v5030_v54 = vadd.f32 %v4996_v25, %v4806_v46  ;;  %v1800_v12 = vpop.f32.mrb[5].mxu1 }
 0x2b8   : > { %3972 = vst.msk [vmem:[%s6937_s16] sm:$0xf] %vm3971_vm10, %v4420_v10  ;;  %v4421_v21 = vpack.c.bf16 %v3792_v57, %v3792_v57  ;;  %v5031_v37 = vadd.f32 %v3585_v33, %v1800_v12  ;;  %v4807_v28 = vpop.f32.mrb[6].mxu1 }
 0x2b9   : > { %v5000_v48 = vpop.f32.mrb[8].mxu0  ;;  %3975 = vst.msk [vmem:[%s6937_s16 + $0xc] sm:$0xf] %vm3971_vm10, %v4423_v59  ;;  %v3761_v45 = vadd.f32 %v5030_v54, %v6930_v31  ;;  %v5032_v43 = vadd.f32 %v4997_v22, %v4807_v28  ;;  %v1803_v29 = vpop.f32.mrb[7].mxu1 }
 0x2ba   : > { %v3601_v27 = vpop.f32.mrb[9].mxu0  ;;  %3973 = vst.msk [vmem:[%s6937_s16 + $0x4] sm:$0xf] %vm3971_vm10, %v4421_v21  ;;  %v3759_v49 = vadd.f32 %v5031_v37, %v6930_v31  ;;  %v5033_v62 = vadd.f32 %v3588_v11, %v1803_v29 }
 0x2bb   : > { %v5001_v41 = vpop.f32.mrb[10].mxu0  ;;  %v3797_v0 = vmax.f32 %v3761_v45, 0.0  ;;  %v3762_v55 = vadd.f32 %v5032_v43, %v6930_v31 }
 0x2bc   : > { %v3604_v3 = vpop.f32.mrb[11].mxu0  ;;  %v3795_v15 = vmax.f32 %v3759_v49, 0.0  ;;  %v3760_v30 = vadd.f32 %v5033_v62, %v6930_v31 }
 0x2bd   : > { %v4426_v1 = vpack.c.bf16 %v3797_v0, %v3797_v0  ;;  %v3798_v17 = vmax.f32 %v3762_v55, 0.0 }
 0x2be   : > { %v4424_v6 = vpack.c.bf16 %v3795_v15, %v3795_v15  ;;  %v3796_v36 = vmax.f32 %v3760_v30, 0.0  ;;  %v4810_v32 = vpop.f32.mrb[8].mxu1 }
 0x2bf   : > { %3978 = vst.msk [vmem:[%s6937_s16 + $0x18] sm:$0xf] %vm3971_vm10, %v4426_v1  ;;  %v4427_v52 = vpack.c.bf16 %v3798_v17, %v3798_v17  ;;  %v5034_v19 = vadd.f32 %v5000_v48, %v4810_v32  ;;  %v1816_v58 = vpop.f32.mrb[9].mxu1 }
 0x2c0   : > { %3976 = vst.msk [vmem:[%s6937_s16 + $0x10] sm:$0xf] %vm3971_vm10, %v4424_v6  ;;  %v4425_v9 = vpack.c.bf16 %v3796_v36, %v3796_v36  ;;  %v5035_v40 = vadd.f32 %v3601_v27, %v1816_v58  ;;  %v4811_v14 = vpop.f32.mrb[10].mxu1 }
 0x2c1   : > { %v5004_v56 = vpop.f32.mrb[12].mxu0  ;;  %3979 = vst.msk [vmem:[%s6937_s16 + $0x1c] sm:$0xf] %vm3971_vm10, %v4427_v52  ;;  %v3765_v8 = vadd.f32 %v5034_v19, %v6930_v31  ;;  %v5036_v63 = vadd.f32 %v5001_v41, %v4811_v14  ;;  %v1819_v44 = vpop.f32.mrb[11].mxu1 }
 0x2c2   : > { %v3617_v60 = vpop.f32.mrb[13].mxu0  ;;  %3977 = vst.msk [vmem:[%s6937_s16 + $0x14] sm:$0xf] %vm3971_vm10, %v4425_v9  ;;  %v3763_v24 = vadd.f32 %v5035_v40, %v6930_v31  ;;  %v5037_v39 = vadd.f32 %v3604_v3, %v1819_v44 }
 0x2c3   : > { %v5005_v18 = vpop.f32.mrb[14].mxu0  ;;  %v3801_v2 = vmax.f32 %v3765_v8, 0.0  ;;  %v3766_v61 = vadd.f32 %v5036_v63, %v6930_v31 }
 0x2c4   : > { %v3620_v34 = vpop.f32.mrb[15].mxu0  ;;  %v3799_v42 = vmax.f32 %v3763_v24, 0.0  ;;  %v3764_v35 = vadd.f32 %v5037_v39, %v6930_v31 }
 0x2c5   : > { %v4430_v51 = vpack.c.bf16 %v3801_v2, %v3801_v2  ;;  %v3802_v53 = vmax.f32 %v3766_v61, 0.0 }
 0x2c6   : > { %v4428_v25 = vpack.c.bf16 %v3799_v42, %v3799_v42  ;;  %v3800_v26 = vmax.f32 %v3764_v35, 0.0  ;;  %v4814_v50 = vpop.f32.mrb[12].mxu1 }
 0x2c7   : > { %3982 = vst.msk [vmem:[%s6937_s16 + $0x28] sm:$0xf] %vm3971_vm10, %v4430_v51  ;;  %v4431_v38 = vpack.c.bf16 %v3802_v53, %v3802_v53  ;;  %v5038_v33 = vadd.f32 %v5004_v56, %v4814_v50  ;;  %v1832_v4 = vpop.f32.mrb[13].mxu1 }
 0x2c8   : > { %3980 = vst.msk [vmem:[%s6937_s16 + $0x20] sm:$0xf] %vm3971_vm10, %v4428_v25  ;;  %v4429_v7 = vpack.c.bf16 %v3800_v26, %v3800_v26  ;;  %v5039_v22 = vadd.f32 %v3617_v60, %v1832_v4  ;;  %v4815_v16 = vpop.f32.mrb[14].mxu1 }
 0x2c9   : > { %v5008_v47 = vpop.f32.mrb[16].mxu0  ;;  %3983 = vst.msk [vmem:[%s6937_s16 + $0x2c] sm:$0xf] %vm3971_vm10, %v4431_v38  ;;  %v3769_v11 = vadd.f32 %v5038_v33, %v6930_v31  ;;  %v5040_v13 = vadd.f32 %v5005_v18, %v4815_v16  ;;  %v1835_v5 = vpop.f32.mrb[15].mxu1 }
 0x2ca   : > { %v3633_v20 = vpop.f32.mrb[17].mxu0  ;;  %3981 = vst.msk [vmem:[%s6937_s16 + $0x24] sm:$0xf] %vm3971_vm10, %v4429_v7  ;;  %v3767_v23 = vadd.f32 %v5039_v22, %v6930_v31  ;;  %v5041_v10 = vadd.f32 %v3620_v34, %v1835_v5 }
 0x2cb   : > { %v5009_v57 = vpop.f32.mrb[18].mxu0  ;;  %v3805_v46 = vmax.f32 %v3769_v11, 0.0  ;;  %v3770_v59 = vadd.f32 %v5040_v13, %v6930_v31 }
 0x2cc   : > { %v3636_v54 = vpop.f32.mrb[19].mxu0  ;;  %v3803_v12 = vmax.f32 %v3767_v23, 0.0  ;;  %v3768_v21 = vadd.f32 %v5041_v10, %v6930_v31 }
 0x2cd   : > { %v4434_v37 = vpack.c.bf16 %v3805_v46, %v3805_v46  ;;  %v3806_v28 = vmax.f32 %v3770_v59, 0.0 }
 0x2ce   : > { %v4432_v48 = vpack.c.bf16 %v3803_v12, %v3803_v12  ;;  %v3804_v45 = vmax.f32 %v3768_v21, 0.0  ;;  %v4818_v43 = vpop.f32.mrb[16].mxu1 }
 0x2cf   : > { %3986 = vst.msk [vmem:[%s6937_s16 + $0x38] sm:$0xf] %vm3971_vm10, %v4434_v37  ;;  %v4435_v29 = vpack.c.bf16 %v3806_v28, %v3806_v28  ;;  %v5042_v27 = vadd.f32 %v5008_v47, %v4818_v43  ;;  %v1848_v49 = vpop.f32.mrb[17].mxu1 }
 0x2d0   : > { %3984 = vst.msk [vmem:[%s6937_s16 + $0x30] sm:$0xf] %vm3971_vm10, %v4432_v48  ;;  %v4433_v62 = vpack.c.bf16 %v3804_v45, %v3804_v45  ;;  %v5043_v41 = vadd.f32 %v3633_v20, %v1848_v49  ;;  %v4819_v0 = vpop.f32.mrb[18].mxu1 }
 0x2d1   : > { %v5012_v55 = vpop.f32.mrb[20].mxu0  ;;  %3987 = vst.msk [vmem:[%s6937_s16 + $0x3c] sm:$0xf] %vm3971_vm10, %v4435_v29  ;;  %v3773_v3 = vadd.f32 %v5042_v27, %v6930_v31  ;;  %v5044_v15 = vadd.f32 %v5009_v57, %v4819_v0  ;;  %v1851_v30 = vpop.f32.mrb[19].mxu1 }
 0x2d2   : > { %v3649_v1 = vpop.f32.mrb[21].mxu0  ;;  %3985 = vst.msk [vmem:[%s6937_s16 + $0x34] sm:$0xf] %vm3971_vm10, %v4433_v62  ;;  %v3771_v17 = vadd.f32 %v5043_v41, %v6930_v31  ;;  %v5045_v6 = vadd.f32 %v3636_v54, %v1851_v30 }
 0x2d3   : > { %v5013_v36 = vpop.f32.mrb[22].mxu0  ;;  %v3809_v32 = vmax.f32 %v3773_v3, 0.0  ;;  %v3774_v52 = vadd.f32 %v5044_v15, %v6930_v31 }
 0x2d4   : > { %v3652_v19 = vpop.f32.mrb[23].mxu0  ;;  %v3807_v58 = vmax.f32 %v3771_v17, 0.0  ;;  %v3772_v9 = vadd.f32 %v5045_v6, %v6930_v31 }
 0x2d5   : > { %v4438_v40 = vpack.c.bf16 %v3809_v32, %v3809_v32  ;;  %v3810_v14 = vmax.f32 %v3774_v52, 0.0 }
 0x2d6   : > { %v4436_v56 = vpack.c.bf16 %v3807_v58, %v3807_v58  ;;  %v3808_v8 = vmax.f32 %v3772_v9, 0.0  ;;  %v4822_v63 = vpop.f32.mrb[20].mxu1 }
 0x2d7   : > { %3990 = vst.msk [vmem:[%s6937_s16 + $0x48] sm:$0xf] %vm3971_vm10, %v4438_v40  ;;  %v4439_v44 = vpack.c.bf16 %v3810_v14, %v3810_v14  ;;  %v5046_v60 = vadd.f32 %v5012_v55, %v4822_v63  ;;  %v1864_v24 = vpop.f32.mrb[21].mxu1 }
 0x2d8   : > { %3988 = vst.msk [vmem:[%s6937_s16 + $0x40] sm:$0xf] %vm3971_vm10, %v4436_v56  ;;  %v4437_v39 = vpack.c.bf16 %v3808_v8, %v3808_v8  ;;  %v5047_v18 = vadd.f32 %v3649_v1, %v1864_v24  ;;  %v4823_v2 = vpop.f32.mrb[22].mxu1 }
 0x2d9   : > { %v5016_v61 = vpop.f32.mrb[24].mxu0  ;;  %3991 = vst.msk [vmem:[%s6937_s16 + $0x4c] sm:$0xf] %vm3971_vm10, %v4439_v44  ;;  %v3777_v34 = vadd.f32 %v5046_v60, %v6930_v31  ;;  %v5048_v42 = vadd.f32 %v5013_v36, %v4823_v2  ;;  %v1867_v35 = vpop.f32.mrb[23].mxu1 }
 0x2da   : > { %v3665_v51 = vpop.f32.mrb[25].mxu0  ;;  %3989 = vst.msk [vmem:[%s6937_s16 + $0x44] sm:$0xf] %vm3971_vm10, %v4437_v39  ;;  %v3775_v53 = vadd.f32 %v5047_v18, %v6930_v31  ;;  %v5049_v25 = vadd.f32 %v3652_v19, %v1867_v35 }
 0x2db   : > { %v5017_v26 = vpop.f32.mrb[26].mxu0  ;;  %v3813_v50 = vmax.f32 %v3777_v34, 0.0  ;;  %v3778_v38 = vadd.f32 %v5048_v42, %v6930_v31 }
 0x2dc   : > { %v3668_v33 = vpop.f32.mrb[27].mxu0  ;;  %v3811_v4 = vmax.f32 %v3775_v53, 0.0  ;;  %v3776_v7 = vadd.f32 %v5049_v25, %v6930_v31 }
 0x2dd   : > { %v4442_v22 = vpack.c.bf16 %v3813_v50, %v3813_v50  ;;  %v3814_v16 = vmax.f32 %v3778_v38, 0.0 }
 0x2de   : > { %v4440_v47 = vpack.c.bf16 %v3811_v4, %v3811_v4  ;;  %v3812_v11 = vmax.f32 %v3776_v7, 0.0  ;;  %v4826_v13 = vpop.f32.mrb[24].mxu1 }
 0x2df   : > { %3994 = vst.msk [vmem:[%s6937_s16 + $0x58] sm:$0xf] %vm3971_vm10, %v4442_v22  ;;  %v4443_v5 = vpack.c.bf16 %v3814_v16, %v3814_v16  ;;  %v5050_v20 = vadd.f32 %v5016_v61, %v4826_v13  ;;  %v1880_v23 = vpop.f32.mrb[25].mxu1 }
 0x2e0   : > { %3992 = vst.msk [vmem:[%s6937_s16 + $0x50] sm:$0xf] %vm3971_vm10, %v4440_v47  ;;  %v4441_v10 = vpack.c.bf16 %v3812_v11, %v3812_v11  ;;  %v5051_v57 = vadd.f32 %v3665_v51, %v1880_v23  ;;  %v4827_v46 = vpop.f32.mrb[26].mxu1 }
 0x2e1   : > { %v5020_v59 = vpop.f32.mrb[28].mxu0  ;;  %3995 = vst.msk [vmem:[%s6937_s16 + $0x5c] sm:$0xf] %vm3971_vm10, %v4443_v5  ;;  %v3781_v54 = vadd.f32 %v5050_v20, %v6930_v31  ;;  %v5052_v12 = vadd.f32 %v5017_v26, %v4827_v46  ;;  %v1883_v21 = vpop.f32.mrb[27].mxu1 }
 0x2e2   : > { %v3681_v37 = vpop.f32.mrb[29].mxu0  ;;  %3993 = vst.msk [vmem:[%s6937_s16 + $0x54] sm:$0xf] %vm3971_vm10, %v4441_v10  ;;  %v3779_v28 = vadd.f32 %v5051_v57, %v6930_v31  ;;  %v5053_v48 = vadd.f32 %v3668_v33, %v1883_v21 }
 0x2e3   : > { %v5021_v45 = vpop.f32.mrb[30].mxu0  ;;  %v3817_v43 = vmax.f32 %v3781_v54, 0.0  ;;  %v3782_v29 = vadd.f32 %v5052_v12, %v6930_v31 }
 0x2e4   : > { %v3684_v27 = vpop.f32.mrb[31].mxu0  ;;  %v3815_v49 = vmax.f32 %v3779_v28, 0.0  ;;  %v3780_v62 = vadd.f32 %v5053_v48, %v6930_v31 }
 0x2e5   : > { %v4446_v41 = vpack.c.bf16 %v3817_v43, %v3817_v43  ;;  %v3818_v0 = vmax.f32 %v3782_v29, 0.0 }
 0x2e6   : > { %v4444_v55 = vpack.c.bf16 %v3815_v49, %v3815_v49  ;;  %v3816_v3 = vmax.f32 %v3780_v62, 0.0  ;;  %v4830_v15 = vpop.f32.mrb[28].mxu1 }
 0x2e7   : > { %3998 = vst.msk [vmem:[%s6937_s16 + $0x68] sm:$0xf] %vm3971_vm10, %v4446_v41  ;;  %v4447_v30 = vpack.c.bf16 %v3818_v0, %v3818_v0  ;;  %v5054_v1 = vadd.f32 %v5020_v59, %v4830_v15  ;;  %v1896_v17 = vpop.f32.mrb[29].mxu1 }
 0x2e8   : > { %3996 = vst.msk [vmem:[%s6937_s16 + $0x60] sm:$0xf] %vm3971_vm10, %v4444_v55  ;;  %v4445_v6 = vpack.c.bf16 %v3816_v3, %v3816_v3  ;;  %v5055_v36 = vadd.f32 %v3681_v37, %v1896_v17  ;;  %v4831_v32 = vpop.f32.mrb[30].mxu1 }
 0x2e9   : > { %v5024_v52 = vpop.f32.mrb[32].mxu0  ;;  %3999 = vst.msk [vmem:[%s6937_s16 + $0x6c] sm:$0xf] %vm3971_vm10, %v4447_v30  ;;  %v3785_v19 = vadd.f32 %v5054_v1, %v6930_v31  ;;  %v5056_v58 = vadd.f32 %v5021_v45, %v4831_v32  ;;  %v1899_v9 = vpop.f32.mrb[31].mxu1 }
 0x2ea   : > { %v3697_v40 = vpop.f32.mrb[33].mxu0  ;;  %3997 = vst.msk [vmem:[%s6937_s16 + $0x64] sm:$0xf] %vm3971_vm10, %v4445_v6  ;;  %v3783_v14 = vadd.f32 %v5055_v36, %v6930_v31  ;;  %v5057_v56 = vadd.f32 %v3684_v27, %v1899_v9 }
 0x2eb   : > { %v5025_v8 = vpop.f32.mrb[34].mxu0  ;;  %v3821_v63 = vmax.f32 %v3785_v19, 0.0  ;;  %v3786_v44 = vadd.f32 %v5056_v58, %v6930_v31 }
 0x2ec   : > { %v3700_v60 = vpop.f32.mrb[35].mxu0  ;;  %v3819_v24 = vmax.f32 %v3783_v14, 0.0  ;;  %v3784_v39 = vadd.f32 %v5057_v56, %v6930_v31 }
 0x2ed   : > { %v4450_v18 = vpack.c.bf16 %v3821_v63, %v3821_v63  ;;  %v3822_v2 = vmax.f32 %v3786_v44, 0.0 }
 0x2ee   : > { %v4448_v61 = vpack.c.bf16 %v3819_v24, %v3819_v24  ;;  %v3820_v34 = vmax.f32 %v3784_v39, 0.0  ;;  %v4834_v42 = vpop.f32.mrb[32].mxu1 }
 0x2ef   : > { %4002 = vst.msk [vmem:[%s6937_s16 + $0x78] sm:$0xf] %vm3971_vm10, %v4450_v18  ;;  %v4451_v35 = vpack.c.bf16 %v3822_v2, %v3822_v2  ;;  %v5058_v51 = vadd.f32 %v5024_v52, %v4834_v42  ;;  %v1912_v53 = vpop.f32.mrb[33].mxu1 }
 0x2f0   : > { %4000 = vst.msk [vmem:[%s6937_s16 + $0x70] sm:$0xf] %vm3971_vm10, %v4448_v61  ;;  %v4449_v25 = vpack.c.bf16 %v3820_v34, %v3820_v34  ;;  %v5059_v26 = vadd.f32 %v3697_v40, %v1912_v53  ;;  %v4835_v50 = vpop.f32.mrb[34].mxu1 }
 0x2f1   : > { %4003 = vst.msk [vmem:[%s6937_s16 + $0x7c] sm:$0xf] %vm3971_vm10, %v4451_v35  ;;  %v3789_v38 = vadd.f32 %v5058_v51, %v6930_v31  ;;  %v5060_v33 = vadd.f32 %v5025_v8, %v4835_v50  ;;  %v1915_v4 = vpop.f32.mrb[35].mxu1 }
 0x2f2   : > { %4001 = vst.msk [vmem:[%s6937_s16 + $0x74] sm:$0xf] %vm3971_vm10, %v4449_v25  ;;  %v3787_v7 = vadd.f32 %v5059_v26, %v6930_v31  ;;  %v5061_v22 = vadd.f32 %v3700_v60, %v1915_v4 }
 0x2f3   : > { %v3825_v16 = vmax.f32 %v3789_v38, 0.0  ;;  %v3790_v47 = vadd.f32 %v5060_v33, %v6930_v31 }
 0x2f4   : > { %v3823_v11 = vmax.f32 %v3787_v7, 0.0  ;;  %v3788_v13 = vadd.f32 %v5061_v22, %v6930_v31 }
 0x2f5   : > { %v4454_v5 = vpack.c.bf16 %v3825_v16, %v3825_v16  ;;  %v3826_v20 = vmax.f32 %v3790_v47, 0.0 }
 0x2f6   : > { %v4452_v23 = vpack.c.bf16 %v3823_v11, %v3823_v11  ;;  %v3824_v10 = vmax.f32 %v3788_v13, 0.0 }
 0x2f7   : > { %4006 = vst.msk [vmem:[%s6937_s16 + $0x88] sm:$0xf] %vm3971_vm10, %v4454_v5  ;;  %v4455_v57 = vpack.c.bf16 %v3826_v20, %v3826_v20 }
 0x2f8   : > { %4004 = vst.msk [vmem:[%s6937_s16 + $0x80] sm:$0xf] %vm3971_vm10, %v4452_v23  ;;  %v4453_v31 = vpack.c.bf16 %v3824_v10, %v3824_v10 }
 0x2f9   : > { %4007 = vst.msk [vmem:[%s6937_s16 + $0x8c] sm:$0xf] %vm3971_vm10, %v4455_v57 }
 0x2fa   : > { %4005 = vst.msk [vmem:[%s6937_s16 + $0x84] sm:$0xf] %vm3971_vm10, %v4453_v31 }
 0x2fb   : > { %5652 = shalt.err (!%p5649_p3)
}
 0x2fc   : > { %s5653_s15 = scalar_lea.hbm %s7042_s30, 2304  ;;  %s5657_s0 = scalar_lea.hbm %s7099_s5, 4608 }
 0x2fd   : > { %p5654_p9 = scmp.ne.s32.totalorder %s7042_s30, %s5653_s15  ;;  %p5658_p7 = scmp.lt.u32.totalorder %s7042_s30, %s7099_s5 }
 0x2fe   : > { %p5659_p12 = scmp.lt.u32.totalorder %s5657_s0, %s5653_s15  ;;  %p5661_p2 = scmp.lt.u32.totalorder %s5653_s15, %s7042_s30 }
 0x2ff   : > { %p5655_p13 = pnand %p5654_p9, %p5907_p5 }
 0x300   : > { %p5660_p1 = por %p5659_p12, %p5658_p7 }
 0x301   : > { %p5656_p11 = pneg %p5655_p13 }
 0x302   : > { %p5662_p4 = por %p5661_p2, %p5660_p1 }
 0x304   : > { %p5663_p0 = pnand %p5662_p4, %p5656_p11 }
 0x306   : > { %5666 = shalt.err (!%p5663_p0)
}
 0x307   : > { %s5727_s24 = smov 64   ;;  %s5728_s16 = smov 4  }
 0x308   : > { %5383 = dma.vmem_to_hbm [thread:$0]  (%p5907_p5), %s7044_s10, 2304, %s7042_s30, %s4009_s22, %s5727_s24, %s5727_s24, %s5728_s16  }
 0x309 PF: > { %s4037_s8 = sand.u32 1, %s5705_s18   ;;  %p7247_p8 = scmp.ne.s32.totalorder %s7158_s25, 0 }
 0x30a   : > { %p7248_p6 = scmp.ge.s32.totalorder %s5717_s21, 2  ;;  %s4038_s12 = scalar_lea.sflag [#allocation4], %s4037_s8 }
 0x30c   : > { %p5403_p10 = pnand %p7248_p6, %p7247_p8 }
 0x30e   : > { %5700 = dma.done.wait (!%p5403_p10), %s4038_s12, 2304  }
 0x30f   : > { %5702 = vsyncadd (!%p5403_p10), %s4038_s12, 4294964992  ;;  %p22_p3 = scmp.ge.s32.totalorder %s5893_s14, 4   ;;  %s7249_s18 = smov %s5709_s19 }
 0x310   : > { %s7250_s19 = smov %s5713_s20  ;;  %s7251_s20 = smov %s5903_s7 }
 0x311   : > { %s7252_s21 = smov %s5893_s14  ;;  %24 = sbr.rel (!%p22_p3) target bundleno = 11 (0xb), region = 118 }
 0x318   :  { %4043 = vsyncpa [#allocation3], 1 }
 0x319   :  { %4045 = vsyncpa [#allocation3 + $0x1], 1 }
 0x31a   :  { %4046 = vsyncpa [#allocation6], 1 }
 0x31b   :  { %4047 = vsyncpa [#allocation9], 1 }
 0x31c   :  { %4049 = vsyncpa [#allocation9 + $0x1], 1 }
 0x31d   :  { %4050 = vsyncpa [#allocation4], 1 }
 0x31e   :  { %4052 = vsyncpa [#allocation4 + $0x1], 1 }

</bundles_post_ra>
